<compile_context>
chip_gen: v6e
topology: v6e:2x2x1
jax: 0.10.0
libtpu: 0.0.40
codegen_flags: <defaults>
</compile_context>

<pallas_src>
import numpy as np

import jax
import jax.numpy as jnp
from jax.experimental import pallas as pl
from jax.experimental.pallas import tpu as pltpu

NEG_SLOPE = 0.01  # nn.LeakyReLU default negative_slope


def _leaky(y):
    return jnp.where(y >= 0, y, NEG_SLOPE * y)


# -----------------------------------------------------------------------------
# Fused kernel: one grid step per sample.
#   feature extraction -> self-attention -> 2x2 avg pool -> deconv1 -> deconv2
#   -> flatten -> [gender linear | concat] -> classifier MLP -> scalar output
# -----------------------------------------------------------------------------
def _regressor_kernel(
        # SMEM scalars
        gamma_ref, y_ref, b2_ref,
        # per-sample input
        x_ref,
        # auto-pipelined (small) weights
        few_ref, feb_ref,
        wq_ref, bq_ref, wk_ref, bk_ref, bv_ref,
        pool_ref, d1b_ref, d2w_ref, d2b_ref,
        gw_ref, gb_ref, w1g_ref, b1_ref, w2_ref,
        # HBM-resident (manually DMA'd) weights
        wv_hbm, d1w_hbm, c1x_hbm,
        # output
        o_ref,
        # scratch
        wv_buf, d1_buf, c1x_buf, sems):
    b = pl.program_id(0)
    f32 = jnp.float32
    bf16 = jnp.bfloat16

    # ---- start the big-weight DMAs immediately (hidden behind FE/attention) ----
    cp_wv = pltpu.make_async_copy(wv_hbm, wv_buf, sems.at[0])
    cp_d1 = pltpu.make_async_copy(d1w_hbm, d1_buf, sems.at[1])
    cp_c1x = pltpu.make_async_copy(c1x_hbm, c1x_buf, sems.at[2])
    cp_wv.start()
    cp_d1.start()
    cp_c1x.start()

    # ---- Featuer_Extraction (approx: 1x1 conv Cin->512 + LeakyReLU) -----------
    # TODO(synk): Featuer_Extraction definition not provided; approximated as a
    # single 1x1 conv + LeakyReLU preserving spatial dims.  x/255 is folded into
    # few at init; Cin is zero-padded to 8 host-side so this is a clean K=8 dot.
    xm = x_ref[0]                                     # (N, 8) f32
    feat = _leaky(jnp.dot(xm, few_ref[...], preferred_element_type=f32)
                  + feb_ref[...])                     # (N, C) f32

    # ---- Self_Attn(512, 8): q/k projections + softmax -------------------------
    fb = feat.astype(bf16)                            # bf16 MXU operands, f32 acc
    q = jnp.dot(fb, wq_ref[...], preferred_element_type=f32) + bq_ref[...]
    k = jnp.dot(fb, wk_ref[...], preferred_element_type=f32) + bk_ref[...]

    energy = jax.lax.dot_general(
        q.astype(bf16), k.astype(bf16),
        dimension_numbers=(((1,), (1,)), ((), ())),
        preferred_element_type=f32)                   # (N, N)
    energy = energy - jnp.max(energy, axis=-1, keepdims=True)     # stable softmax
    pexp = jnp.exp(energy)
    attn = pexp * pl.reciprocal(jnp.sum(pexp, axis=-1, keepdims=True), approx=True)

    # value projection uses the manually prefetched wv
    cp_wv.wait()
    v = jnp.dot(fb, wv_buf[...], preferred_element_type=f32) + bv_ref[...]
    ctx = jnp.dot(attn.astype(bf16), v.astype(bf16),
                  preferred_element_type=f32)         # (N, C)
    att = gamma_ref[0] * ctx + feat                   # residual, f32

    # ---- AvgPool2d(2,2) as a constant bf16 pooling-matrix matmul --------------
    pooled = jnp.dot(pool_ref[...], att.astype(bf16),
                     preferred_element_type=f32)      # (HoWo, C)

    # ---- deconv1 (1x1, 512->256) + LeakyReLU, deconv2 (1x1, 256->128) ---------
    cp_d1.wait()
    h1 = _leaky(jnp.dot(pooled.astype(bf16), d1_buf[...],
                        preferred_element_type=f32) + d1b_ref[...])
    h2 = _leaky(jnp.dot(h1.astype(bf16), d2w_ref[...],
                        preferred_element_type=f32) + d2b_ref[...])  # (HoWo, 128)
    h2b = h2.astype(bf16)

    # ---- fused head: gender Linear(1,64) + concat + Classifier MLP ------------
    g = y_ref[b] * gw_ref[...] + gb_ref[...]          # (1, 64), VPU broadcast FMA
    c1 = b1_ref[...] + jnp.dot(g.astype(bf16), w1g_ref[...],
                               preferred_element_type=f32)          # (1, 512)

    # Flatten (NCHW channel-major, handled by the init-time row permutation of
    # cls1_wx) expressed as HoWo per-pixel dots -- no in-kernel reshape needed.
    cp_c1x.wait()
    howo, c2 = h2.shape
    for p in range(howo):                             # static unroll (HoWo = 9)
        c1 = c1 + jnp.dot(h2b[p:p + 1, :],
                          c1x_buf[p * c2:(p + 1) * c2, :],
                          preferred_element_type=f32)
    c1 = _leaky(c1)                                   # (1, 512)

    # Classifier layer 2 (512 -> 1): multiply + lane reduction.
    out = jnp.sum(c1 * w2_ref[...], axis=1, keepdims=True) + b2_ref[0]   # (1, 1)

    # Lane-dense store: broadcast the scalar across 128 lanes; wrapper slices lane 0.
    o_ref[...] = jnp.broadcast_to(out.reshape(1, 1, 1), o_ref.shape)


def fused_regressor(params, xm, y):
    B, N, Cpad = xm.shape
    C = params["wq"].shape[0]            # 512
    Dq = params["wq"].shape[1]           # 64
    C1 = params["d1_b"].shape[0]         # 256
    C2 = params["d2_b"].shape[0]         # 128
    G = params["g_w"].shape[1]           # 64
    Hd = params["cls1_wg"].shape[1]      # 512
    HoWo = params["pool"].shape[0]       # 9

    const2 = lambda b: (0, 0)
    smem_spec = pl.BlockSpec(memory_space=pltpu.MemorySpace.SMEM)
    any_spec = pl.BlockSpec(memory_space=pl.ANY)

    out3 = pl.pallas_call(
        _regressor_kernel,
        out_shape=jax.ShapeDtypeStruct((B, 1, 128), jnp.float32),
        grid=(B,),
        in_specs=[
            smem_spec,                                       # gamma
            smem_spec,                                       # y (gender scalars)
            smem_spec,                                       # cls2_b
            pl.BlockSpec((1, N, Cpad), lambda b: (b, 0, 0)),  # x (per sample)
            pl.BlockSpec((Cpad, C), const2),                 # fe_w
            pl.BlockSpec((1, C), const2),                    # fe_b
            pl.BlockSpec((C, Dq), const2),                   # wq
            pl.BlockSpec((1, Dq), const2),                   # bq
            pl.BlockSpec((C, Dq), const2),                   # wk
            pl.BlockSpec((1, Dq), const2),                   # bk
            pl.BlockSpec((1, C), const2),                    # bv
            pl.BlockSpec((HoWo, N), const2),                 # pool (bf16)
            pl.BlockSpec((1, C1), const2),                   # d1_b
            pl.BlockSpec((C1, C2), const2),                  # d2_w
            pl.BlockSpec((1, C2), const2),                   # d2_b
            pl.BlockSpec((1, G), const2),                    # g_w
            pl.BlockSpec((1, G), const2),                    # g_b
            pl.BlockSpec((G, Hd), const2),                   # cls1_wg
            pl.BlockSpec((1, Hd), const2),                   # cls1_b
            pl.BlockSpec((1, Hd), const2),                   # cls2_w
            any_spec,                                        # wv       (HBM, manual DMA)
            any_spec,                                        # d1_w     (HBM, manual DMA)
            any_spec,                                        # cls1_wx  (HBM, manual DMA)
        ],
        out_specs=pl.BlockSpec((1, 1, 128), lambda b: (b, 0, 0)),
        scratch_shapes=[
            pltpu.VMEM((C, C), jnp.bfloat16),                # wv buffer
            pltpu.VMEM((C, C1), jnp.bfloat16),               # d1_w buffer
            pltpu.VMEM((HoWo * C2, Hd), jnp.bfloat16),       # cls1_wx buffer
            pltpu.SemaphoreType.DMA((3,)),
        ],
        compiler_params=pltpu.CompilerParams(
            dimension_semantics=("parallel",)),              # v7x: 2 TCs split batch
    )(params["gamma"], y, params["cls2_b"],
      xm,
      params["fe_w"], params["fe_b"].reshape(1, -1),
      params["wq"], params["bq"].reshape(1, -1),
      params["wk"], params["bk"].reshape(1, -1),
      params["bv"].reshape(1, -1),
      params["pool"],
      params["d1_b"].reshape(1, -1),
      params["d2_w"], params["d2_b"].reshape(1, -1),
      params["g_w"], params["g_b"].reshape(1, -1),
      params["cls1_wg"], params["cls1_b"].reshape(1, -1),
      params["cls2_w"],
      params["wv"], params["d1_w"], params["cls1_wx"])

    return out3[:, 0, 0:1]                                   # (B, 1)


# -----------------------------------------------------------------------------
# Parameters (deterministic synthetic init)
# -----------------------------------------------------------------------------
def init_params(key, cin=4, h=6, w=6, att_ch=512, gender=64, cin_pad=8):
    ho, wo = h // 2, w // 2
    flat = 128 * ho * wo                  # nn.Flatten() output (must be 1152)
    ks = jax.random.split(key, 16)
    s = 0.05

    def rnd(k, shape):
        return jax.random.normal(k, shape, dtype=jnp.float32) * s

    # Constant AvgPool2d(2,2) matrix (0.25 is exact in bf16).
    P = np.zeros((ho * wo, h * w), np.float32)
    for i in range(ho):
        for j in range(wo):
            for di in range(2):
                for dj in range(2):
                    P[i * wo + j, (2 * i + di) * w + (2 * j + dj)] = 0.25

    # Classifier flatten weight is defined in PyTorch nn.Flatten (channel-major
    # NCHW) row order, then permuted ONCE to the kernel's pixel-major order so
    # the kernel needs no in-kernel transpose/reshape.
    cls1_wx_torch = rnd(ks[14], (flat, 512))
    p_idx = np.repeat(np.arange(ho * wo), 128)     # kernel row -> pixel index
    c_idx = np.tile(np.arange(128), ho * wo)       # kernel row -> channel index
    perm = c_idx * (ho * wo) + p_idx               # kernel row -> torch row
    cls1_wx = cls1_wx_torch[perm]

    # Feature-extraction weight: /255 folded in, Cin zero-padded to cin_pad.
    fe_w = jnp.zeros((cin_pad, att_ch), jnp.float32)
    fe_w = fe_w.at[:cin].set(rnd(ks[0], (cin, att_ch)) / 255.0)

    bf16 = jnp.bfloat16
    params = {
        # TODO(synk): Featuer_Extraction definition not provided; approximated
        # as a single 1x1 conv (cin -> 512) + LeakyReLU preserving spatial dims.
        "fe_w": fe_w,
        "fe_b": rnd(ks[1], (att_ch,)),
        # Self_Attn(512, 8): q/k dim = 512 // 8 = 64 (bf16 MXU operands).
        "wq": rnd(ks[2], (att_ch, att_ch // 8)).astype(bf16),
        "bq": rnd(ks[3], (att_ch // 8,)),
        "wk": rnd(ks[4], (att_ch, att_ch // 8)).astype(bf16),
        "bk": rnd(ks[5], (att_ch // 8,)),
        "wv": rnd(ks[6], (att_ch, att_ch)).astype(bf16),
        "bv": rnd(ks[7], (att_ch,)),
        # Note: SAGAN conventionally initializes gamma=0; nonzero here so the
        # attention path is actually exercised in this synthetic run.
        "gamma": jnp.array([0.5], jnp.float32),
        "pool": jnp.asarray(P, dtype=bf16),
        # deconv1 / deconv2 (1x1 convs)
        "d1_w": rnd(ks[8], (att_ch, 256)).astype(bf16),
        "d1_b": rnd(ks[9], (256,)),
        "d2_w": rnd(ks[10], (256, 128)).astype(bf16),
        "d2_b": rnd(ks[11], (128,)),
        # gender Linear(1, 64)
        "g_w": rnd(ks[12], (1, gender)),
        "g_b": rnd(ks[13], (gender,)),
        # TODO(synk): Classifier(1152 + 64) definition not provided; approximated
        # as Linear(1216 -> 512) + LeakyReLU + Linear(512 -> 1), split into the
        # flatten part and the gender part of the first-layer weight.
        "cls1_wx": cls1_wx.astype(bf16),
        "cls1_wg": rnd(ks[15], (gender, 512)).astype(bf16),
        "cls1_b": jnp.zeros((512,), jnp.float32),
        "cls2_w": rnd(jax.random.fold_in(key, 99), (1, 512)),
        "cls2_b": jnp.zeros((1,), jnp.float32),
    }
    return params


# -----------------------------------------------------------------------------
# Forward pass (mirrors Regressor.forward)
# -----------------------------------------------------------------------------
def regressor_forward(params, x, y):
    # x: (B, Cin, H, W) NCHW, y: (B,) gender scalar per sample.
    B, Cin, H, W = x.shape
    N = H * W
    Cpad = params["fe_w"].shape[0]

    # NCHW -> (B, H*W, Cin) channels-last, zero-pad Cin to 8 (tiny, wrapper-side).
    xm = x.astype(jnp.float32).transpose(0, 2, 3, 1).reshape(B, N, Cin)
    xm = jnp.pad(xm, ((0, 0), (0, 0), (0, Cpad - Cin)))

    # Single fused kernel: backbone + head, everything resident in VMEM.
    return fused_regressor(params, xm, y.astype(jnp.float32).reshape(B))


# -----------------------------------------------------------------------------
# Main
# -----------------------------------------------------------------------------
if __name__ == "__main__":
    key = jax.random.PRNGKey(0)
    k_param, k_img, k_sex = jax.random.split(key, 3)

    # Small shapes: B=2, Cin=4, spatial 6x6 so pooled 3x3 -> 128*3*3 = 1152
    # flattened features, matching Classifier(1152 + 64).
    B, Cin, H, W = 2, 4, 6, 6
    x = jax.random.uniform(k_img, (B, Cin, H, W), minval=0.0, maxval=255.0,
                           dtype=jnp.float32)
    y = jax.random.bernoulli(k_sex, 0.5, (B,)).astype(jnp.float32)

    params = init_params(k_param, cin=Cin, h=H, w=W)

    fwd = jax.jit(regressor_forward)
    out = jax.block_until_ready(fwd(params, x, y))

    assert out.shape == (B, 1), out.shape
    assert bool(jnp.all(jnp.isfinite(out)))
    print("KERNEL_OK")
</pallas_src>

<mosaic_0001>
module attributes {stable_mosaic.version = 11 : i64} {
  func.func @_regressor_kernel(%arg0: i32, %arg1: memref<1xf32, #tpu.memory_space<smem>>, %arg2: memref<2xf32, #tpu.memory_space<smem>>, %arg3: memref<1xf32, #tpu.memory_space<smem>>, %arg4: memref<1x36x8xf32, #tpu.memory_space<vmem>>, %arg5: memref<8x512xf32, #tpu.memory_space<vmem>>, %arg6: memref<1x512xf32, #tpu.memory_space<vmem>>, %arg7: memref<512x64xbf16, #tpu.memory_space<vmem>>, %arg8: memref<1x64xf32, #tpu.memory_space<vmem>>, %arg9: memref<512x64xbf16, #tpu.memory_space<vmem>>, %arg10: memref<1x64xf32, #tpu.memory_space<vmem>>, %arg11: memref<1x512xf32, #tpu.memory_space<vmem>>, %arg12: memref<9x36xbf16, #tpu.memory_space<vmem>>, %arg13: memref<1x256xf32, #tpu.memory_space<vmem>>, %arg14: memref<256x128xbf16, #tpu.memory_space<vmem>>, %arg15: memref<1x128xf32, #tpu.memory_space<vmem>>, %arg16: memref<1x64xf32, #tpu.memory_space<vmem>>, %arg17: memref<1x64xf32, #tpu.memory_space<vmem>>, %arg18: memref<64x512xbf16, #tpu.memory_space<vmem>>, %arg19: memref<1x512xf32, #tpu.memory_space<vmem>>, %arg20: memref<1x512xf32, #tpu.memory_space<vmem>>, %arg21: memref<512x512xbf16, #tpu.memory_space<any>>, %arg22: memref<512x256xbf16, #tpu.memory_space<any>>, %arg23: memref<1152x512xbf16, #tpu.memory_space<any>>, %arg24: memref<1x1x128xf32, #tpu.memory_space<vmem>>, %arg25: memref<512x512xbf16, #tpu.memory_space<vmem>>, %arg26: memref<512x256xbf16, #tpu.memory_space<vmem>>, %arg27: memref<1152x512xbf16, #tpu.memory_space<vmem>>, %arg28: memref<3x!tpu.dma_semaphore, #tpu.memory_space<semaphore_mem>>) attributes {dimension_semantics = [#tpu.dimension_semantics<parallel>], iteration_bounds = array<i64: 2>, scalar_prefetch = 0 : i64, scratch_operands = 4 : i64, tpu.core_type = #tpu.core_type<tc>, window_params = [{transform_indices = @transform_0, window_bounds = array<i64: 1>}, {transform_indices = @transform_1, window_bounds = array<i64: 2>}, {transform_indices = @transform_2, window_bounds = array<i64: 1>}, {transform_indices = @transform_3, window_bounds = array<i64: 1, 36, 8>}, {pipeline_mode = #tpu.pipeline_mode<synchronous>, transform_indices = @transform_4, window_bounds = array<i64: 8, 512>}, {pipeline_mode = #tpu.pipeline_mode<synchronous>, transform_indices = @transform_5, window_bounds = array<i64: 1, 512>}, {pipeline_mode = #tpu.pipeline_mode<synchronous>, transform_indices = @transform_6, window_bounds = array<i64: 512, 64>}, {pipeline_mode = #tpu.pipeline_mode<synchronous>, transform_indices = @transform_7, window_bounds = array<i64: 1, 64>}, {pipeline_mode = #tpu.pipeline_mode<synchronous>, transform_indices = @transform_8, window_bounds = array<i64: 512, 64>}, {pipeline_mode = #tpu.pipeline_mode<synchronous>, transform_indices = @transform_9, window_bounds = array<i64: 1, 64>}, {pipeline_mode = #tpu.pipeline_mode<synchronous>, transform_indices = @transform_10, window_bounds = array<i64: 1, 512>}, {pipeline_mode = #tpu.pipeline_mode<synchronous>, transform_indices = @transform_11, window_bounds = array<i64: 9, 36>}, {pipeline_mode = #tpu.pipeline_mode<synchronous>, transform_indices = @transform_12, window_bounds = array<i64: 1, 256>}, {pipeline_mode = #tpu.pipeline_mode<synchronous>, transform_indices = @transform_13, window_bounds = array<i64: 256, 128>}, {pipeline_mode = #tpu.pipeline_mode<synchronous>, transform_indices = @transform_14, window_bounds = array<i64: 1, 128>}, {pipeline_mode = #tpu.pipeline_mode<synchronous>, transform_indices = @transform_15, window_bounds = array<i64: 1, 64>}, {pipeline_mode = #tpu.pipeline_mode<synchronous>, transform_indices = @transform_16, window_bounds = array<i64: 1, 64>}, {pipeline_mode = #tpu.pipeline_mode<synchronous>, transform_indices = @transform_17, window_bounds = array<i64: 64, 512>}, {pipeline_mode = #tpu.pipeline_mode<synchronous>, transform_indices = @transform_18, window_bounds = array<i64: 1, 512>}, {pipeline_mode = #tpu.pipeline_mode<synchronous>, transform_indices = @transform_19, window_bounds = array<i64: 1, 512>}, {}, {}, {}, {transform_indices = @transform_23, window_bounds = array<i64: 1, 1, 128>}]} {
    %c0_i32 = arith.constant 0 : i32
    %0 = tpu.memref_slice %arg28[%c0_i32] : memref<3x!tpu.dma_semaphore, #tpu.memory_space<semaphore_mem>> -> memref<1x!tpu.dma_semaphore, #tpu.memory_space<semaphore_mem>>
    %1 = tpu.memref_squeeze %0 : memref<1x!tpu.dma_semaphore, #tpu.memory_space<semaphore_mem>> -> memref<!tpu.dma_semaphore, #tpu.memory_space<semaphore_mem>>
    tpu.enqueue_dma source(%arg21 : memref<512x512xbf16, #tpu.memory_space<any>>) target(%arg25 : memref<512x512xbf16, #tpu.memory_space<vmem>>) target_semaphore(%1 : memref<!tpu.dma_semaphore, #tpu.memory_space<semaphore_mem>>)
    %c1_i32 = arith.constant 1 : i32
    %2 = tpu.memref_slice %arg28[%c1_i32] : memref<3x!tpu.dma_semaphore, #tpu.memory_space<semaphore_mem>> -> memref<1x!tpu.dma_semaphore, #tpu.memory_space<semaphore_mem>>
    %3 = tpu.memref_squeeze %2 : memref<1x!tpu.dma_semaphore, #tpu.memory_space<semaphore_mem>> -> memref<!tpu.dma_semaphore, #tpu.memory_space<semaphore_mem>>
    tpu.enqueue_dma source(%arg22 : memref<512x256xbf16, #tpu.memory_space<any>>) target(%arg26 : memref<512x256xbf16, #tpu.memory_space<vmem>>) target_semaphore(%3 : memref<!tpu.dma_semaphore, #tpu.memory_space<semaphore_mem>>)
    %c2_i32 = arith.constant 2 : i32
    %4 = tpu.memref_slice %arg28[%c2_i32] : memref<3x!tpu.dma_semaphore, #tpu.memory_space<semaphore_mem>> -> memref<1x!tpu.dma_semaphore, #tpu.memory_space<semaphore_mem>>
    %5 = tpu.memref_squeeze %4 : memref<1x!tpu.dma_semaphore, #tpu.memory_space<semaphore_mem>> -> memref<!tpu.dma_semaphore, #tpu.memory_space<semaphore_mem>>
    tpu.enqueue_dma source(%arg23 : memref<1152x512xbf16, #tpu.memory_space<any>>) target(%arg27 : memref<1152x512xbf16, #tpu.memory_space<vmem>>) target_semaphore(%5 : memref<!tpu.dma_semaphore, #tpu.memory_space<semaphore_mem>>)
    %c0 = arith.constant 0 : index
    %c0_0 = arith.constant 0 : index
    %c0_1 = arith.constant 0 : index
    %6 = vector.load %arg4[%c0, %c0_0, %c0_1] : memref<1x36x8xf32, #tpu.memory_space<vmem>>, vector<1x36x8xf32>
    %7 = vector.shape_cast %6 : vector<1x36x8xf32> to vector<36x8xf32>
    %c0_2 = arith.constant 0 : index
    %c0_3 = arith.constant 0 : index
    %8 = vector.load %arg5[%c0_2, %c0_3] : memref<8x512xf32, #tpu.memory_space<vmem>>, vector<8x512xf32>
    %cst = arith.constant dense<0.000000e+00> : vector<36x512xf32>
    %9 = tpu.matmul %7, %8, %cst {dimension_numbers = #tpu.dot_dimension_numbers<[1], [0], [0], [1], [0, 0, 1, 1], [], []>} : vector<36x8xf32>, vector<8x512xf32>, vector<36x512xf32> -> vector<36x512xf32>
    %c0_4 = arith.constant 0 : index
    %c0_5 = arith.constant 0 : index
    %10 = vector.load %arg6[%c0_4, %c0_5] : memref<1x512xf32, #tpu.memory_space<vmem>>, vector<1x512xf32>
    %11 = vector.broadcast %10 : vector<1x512xf32> to vector<36x512xf32>
    %12 = arith.addf %9, %11 : vector<36x512xf32>
    %cst_6 = arith.constant 0.000000e+00 : f32
    %13 = vector.broadcast %cst_6 : f32 to vector<36x512xf32>
    %14 = arith.cmpf oge, %12, %13 : vector<36x512xf32>
    %cst_7 = arith.constant 0.00999999977 : f32
    %15 = vector.broadcast %cst_7 : f32 to vector<36x512xf32>
    %16 = arith.mulf %15, %12 : vector<36x512xf32>
    %17 = arith.select %14, %12, %16 : vector<36x512xi1>, vector<36x512xf32>
    %18 = arith.truncf %17 : vector<36x512xf32> to vector<36x512xbf16>
    %c0_8 = arith.constant 0 : index
    %c0_9 = arith.constant 0 : index
    %19 = vector.load %arg7[%c0_8, %c0_9] : memref<512x64xbf16, #tpu.memory_space<vmem>>, vector<512x64xbf16>
    %cst_10 = arith.constant dense<0.000000e+00> : vector<36x64xf32>
    %20 = tpu.matmul %18, %19, %cst_10 {dimension_numbers = #tpu.dot_dimension_numbers<[1], [0], [0], [1], [0, 0, 1, 1], [], []>} : vector<36x512xbf16>, vector<512x64xbf16>, vector<36x64xf32> -> vector<36x64xf32>
    %c0_11 = arith.constant 0 : index
    %c0_12 = arith.constant 0 : index
    %21 = vector.load %arg8[%c0_11, %c0_12] : memref<1x64xf32, #tpu.memory_space<vmem>>, vector<1x64xf32>
    %22 = vector.broadcast %21 : vector<1x64xf32> to vector<36x64xf32>
    %23 = arith.addf %20, %22 : vector<36x64xf32>
    %c0_13 = arith.constant 0 : index
    %c0_14 = arith.constant 0 : index
    %24 = vector.load %arg9[%c0_13, %c0_14] : memref<512x64xbf16, #tpu.memory_space<vmem>>, vector<512x64xbf16>
    %cst_15 = arith.constant dense<0.000000e+00> : vector<36x64xf32>
    %25 = tpu.matmul %18, %24, %cst_15 {dimension_numbers = #tpu.dot_dimension_numbers<[1], [0], [0], [1], [0, 0, 1, 1], [], []>} : vector<36x512xbf16>, vector<512x64xbf16>, vector<36x64xf32> -> vector<36x64xf32>
    %c0_16 = arith.constant 0 : index
    %c0_17 = arith.constant 0 : index
    %26 = vector.load %arg10[%c0_16, %c0_17] : memref<1x64xf32, #tpu.memory_space<vmem>>, vector<1x64xf32>
    %27 = vector.broadcast %26 : vector<1x64xf32> to vector<36x64xf32>
    %28 = arith.addf %25, %27 : vector<36x64xf32>
    %29 = arith.truncf %23 : vector<36x64xf32> to vector<36x64xbf16>
    %30 = arith.truncf %28 : vector<36x64xf32> to vector<36x64xbf16>
    %cst_18 = arith.constant dense<0.000000e+00> : vector<36x36xf32>
    %31 = tpu.matmul %29, %30, %cst_18 {dimension_numbers = #tpu.dot_dimension_numbers<[1], [1], [0], [0], [0, 0, 1, 0], [], []>} : vector<36x64xbf16>, vector<36x64xbf16>, vector<36x36xf32> -> vector<36x36xf32>
    %cst_19 = arith.constant dense<0xFF800000> : vector<36xf32>
    %32 = vector.multi_reduction <maximumf>, %31, %cst_19 [1] : vector<36x36xf32> to vector<36xf32>
    %33 = vector.shape_cast %32 : vector<36xf32> to vector<36x1xf32>
    %34 = vector.broadcast %33 : vector<36x1xf32> to vector<36x36xf32>
    %35 = arith.subf %31, %34 : vector<36x36xf32>
    %36 = math.exp %35 : vector<36x36xf32>
    %cst_20 = arith.constant dense<0.000000e+00> : vector<36xf32>
    %37 = vector.multi_reduction <add>, %36, %cst_20 [1] : vector<36x36xf32> to vector<36xf32>
    %38 = vector.shape_cast %37 : vector<36xf32> to vector<36x1xf32>
    %39 = tpu.reciprocal %38 {approx = true} : vector<36x1xf32> -> vector<36x1xf32>
    %40 = vector.broadcast %39 : vector<36x1xf32> to vector<36x36xf32>
    %41 = arith.mulf %36, %40 : vector<36x36xf32>
    %c0_i32_21 = arith.constant 0 : i32
    %42 = tpu.memref_slice %arg28[%c0_i32_21] : memref<3x!tpu.dma_semaphore, #tpu.memory_space<semaphore_mem>> -> memref<1x!tpu.dma_semaphore, #tpu.memory_space<semaphore_mem>>
    %43 = tpu.memref_squeeze %42 : memref<1x!tpu.dma_semaphore, #tpu.memory_space<semaphore_mem>> -> memref<!tpu.dma_semaphore, #tpu.memory_space<semaphore_mem>>
    tpu.wait_dma2 semaphore(%43 : memref<!tpu.dma_semaphore, #tpu.memory_space<semaphore_mem>>) src(%arg21 : memref<512x512xbf16, #tpu.memory_space<any>>) dst(%arg25 : memref<512x512xbf16, #tpu.memory_space<vmem>>)
    %c0_22 = arith.constant 0 : index
    %c0_23 = arith.constant 0 : index
    %44 = vector.load %arg25[%c0_22, %c0_23] : memref<512x512xbf16, #tpu.memory_space<vmem>>, vector<512x512xbf16>
    %cst_24 = arith.constant dense<0.000000e+00> : vector<36x512xf32>
    %45 = tpu.matmul %18, %44, %cst_24 {dimension_numbers = #tpu.dot_dimension_numbers<[1], [0], [0], [1], [0, 0, 1, 1], [], []>} : vector<36x512xbf16>, vector<512x512xbf16>, vector<36x512xf32> -> vector<36x512xf32>
    %c0_25 = arith.constant 0 : index
    %c0_26 = arith.constant 0 : index
    %46 = vector.load %arg11[%c0_25, %c0_26] : memref<1x512xf32, #tpu.memory_space<vmem>>, vector<1x512xf32>
    %47 = vector.broadcast %46 : vector<1x512xf32> to vector<36x512xf32>
    %48 = arith.addf %45, %47 : vector<36x512xf32>
    %49 = arith.truncf %41 : vector<36x36xf32> to vector<36x36xbf16>
    %50 = arith.truncf %48 : vector<36x512xf32> to vector<36x512xbf16>
    %cst_27 = arith.constant dense<0.000000e+00> : vector<36x512xf32>
    %51 = tpu.matmul %49, %50, %cst_27 {dimension_numbers = #tpu.dot_dimension_numbers<[1], [0], [0], [1], [0, 0, 1, 1], [], []>} : vector<36x36xbf16>, vector<36x512xbf16>, vector<36x512xf32> -> vector<36x512xf32>
    %c0_28 = arith.constant 0 : index
    %52 = memref.load %arg1[%c0_28] : memref<1xf32, #tpu.memory_space<smem>>
    %53 = vector.broadcast %52 : f32 to vector<36x512xf32>
    %54 = arith.mulf %53, %51 : vector<36x512xf32>
    %55 = arith.addf %54, %17 : vector<36x512xf32>
    %c0_29 = arith.constant 0 : index
    %c0_30 = arith.constant 0 : index
    %56 = vector.load %arg12[%c0_29, %c0_30] : memref<9x36xbf16, #tpu.memory_space<vmem>>, vector<9x36xbf16>
    %57 = arith.truncf %55 : vector<36x512xf32> to vector<36x512xbf16>
    %cst_31 = arith.constant dense<0.000000e+00> : vector<9x512xf32>
    %58 = tpu.matmul %56, %57, %cst_31 {dimension_numbers = #tpu.dot_dimension_numbers<[1], [0], [0], [1], [0, 0, 1, 1], [], []>} : vector<9x36xbf16>, vector<36x512xbf16>, vector<9x512xf32> -> vector<9x512xf32>
    %c1_i32_32 = arith.constant 1 : i32
    %59 = tpu.memref_slice %arg28[%c1_i32_32] : memref<3x!tpu.dma_semaphore, #tpu.memory_space<semaphore_mem>> -> memref<1x!tpu.dma_semaphore, #tpu.memory_space<semaphore_mem>>
    %60 = tpu.memref_squeeze %59 : memref<1x!tpu.dma_semaphore, #tpu.memory_space<semaphore_mem>> -> memref<!tpu.dma_semaphore, #tpu.memory_space<semaphore_mem>>
    tpu.wait_dma2 semaphore(%60 : memref<!tpu.dma_semaphore, #tpu.memory_space<semaphore_mem>>) src(%arg22 : memref<512x256xbf16, #tpu.memory_space<any>>) dst(%arg26 : memref<512x256xbf16, #tpu.memory_space<vmem>>)
    %61 = arith.truncf %58 : vector<9x512xf32> to vector<9x512xbf16>
    %c0_33 = arith.constant 0 : index
    %c0_34 = arith.constant 0 : index
    %62 = vector.load %arg26[%c0_33, %c0_34] : memref<512x256xbf16, #tpu.memory_space<vmem>>, vector<512x256xbf16>
    %cst_35 = arith.constant dense<0.000000e+00> : vector<9x256xf32>
    %63 = tpu.matmul %61, %62, %cst_35 {dimension_numbers = #tpu.dot_dimension_numbers<[1], [0], [0], [1], [0, 0, 1, 1], [], []>} : vector<9x512xbf16>, vector<512x256xbf16>, vector<9x256xf32> -> vector<9x256xf32>
    %c0_36 = arith.constant 0 : index
    %c0_37 = arith.constant 0 : index
    %64 = vector.load %arg13[%c0_36, %c0_37] : memref<1x256xf32, #tpu.memory_space<vmem>>, vector<1x256xf32>
    %65 = vector.broadcast %64 : vector<1x256xf32> to vector<9x256xf32>
    %66 = arith.addf %63, %65 : vector<9x256xf32>
    %cst_38 = arith.constant 0.000000e+00 : f32
    %67 = vector.broadcast %cst_38 : f32 to vector<9x256xf32>
    %68 = arith.cmpf oge, %66, %67 : vector<9x256xf32>
    %cst_39 = arith.constant 0.00999999977 : f32
    %69 = vector.broadcast %cst_39 : f32 to vector<9x256xf32>
    %70 = arith.mulf %69, %66 : vector<9x256xf32>
    %71 = arith.select %68, %66, %70 : vector<9x256xi1>, vector<9x256xf32>
    %72 = arith.truncf %71 : vector<9x256xf32> to vector<9x256xbf16>
    %c0_40 = arith.constant 0 : index
    %c0_41 = arith.constant 0 : index
    %73 = vector.load %arg14[%c0_40, %c0_41] : memref<256x128xbf16, #tpu.memory_space<vmem>>, vector<256x128xbf16>
    %cst_42 = arith.constant dense<0.000000e+00> : vector<9x128xf32>
    %74 = tpu.matmul %72, %73, %cst_42 {dimension_numbers = #tpu.dot_dimension_numbers<[1], [0], [0], [1], [0, 0, 1, 1], [], []>} : vector<9x256xbf16>, vector<256x128xbf16>, vector<9x128xf32> -> vector<9x128xf32>
    %c0_43 = arith.constant 0 : index
    %c0_44 = arith.constant 0 : index
    %75 = vector.load %arg15[%c0_43, %c0_44] : memref<1x128xf32, #tpu.memory_space<vmem>>, vector<1x128xf32>
    %76 = vector.broadcast %75 : vector<1x128xf32> to vector<9x128xf32>
    %77 = arith.addf %74, %76 : vector<9x128xf32>
    %cst_45 = arith.constant 0.000000e+00 : f32
    %78 = vector.broadcast %cst_45 : f32 to vector<9x128xf32>
    %79 = arith.cmpf oge, %77, %78 : vector<9x128xf32>
    %cst_46 = arith.constant 0.00999999977 : f32
    %80 = vector.broadcast %cst_46 : f32 to vector<9x128xf32>
    %81 = arith.mulf %80, %77 : vector<9x128xf32>
    %82 = arith.select %79, %77, %81 : vector<9x128xi1>, vector<9x128xf32>
    %83 = arith.truncf %82 : vector<9x128xf32> to vector<9x128xbf16>
    %84 = arith.index_cast %arg0 : i32 to index
    %85 = memref.load %arg2[%84] : memref<2xf32, #tpu.memory_space<smem>>
    %c0_47 = arith.constant 0 : index
    %c0_48 = arith.constant 0 : index
    %86 = vector.load %arg16[%c0_47, %c0_48] : memref<1x64xf32, #tpu.memory_space<vmem>>, vector<1x64xf32>
    %87 = vector.broadcast %85 : f32 to vector<1x64xf32>
    %88 = arith.mulf %87, %86 : vector<1x64xf32>
    %c0_49 = arith.constant 0 : index
    %c0_50 = arith.constant 0 : index
    %89 = vector.load %arg17[%c0_49, %c0_50] : memref<1x64xf32, #tpu.memory_space<vmem>>, vector<1x64xf32>
    %90 = arith.addf %88, %89 : vector<1x64xf32>
    %c0_51 = arith.constant 0 : index
    %c0_52 = arith.constant 0 : index
    %91 = vector.load %arg19[%c0_51, %c0_52] : memref<1x512xf32, #tpu.memory_space<vmem>>, vector<1x512xf32>
    %92 = arith.truncf %90 : vector<1x64xf32> to vector<1x64xbf16>
    %c0_53 = arith.constant 0 : index
    %c0_54 = arith.constant 0 : index
    %93 = vector.load %arg18[%c0_53, %c0_54] : memref<64x512xbf16, #tpu.memory_space<vmem>>, vector<64x512xbf16>
    %cst_55 = arith.constant dense<0.000000e+00> : vector<1x512xf32>
    %94 = tpu.matmul %92, %93, %cst_55 {dimension_numbers = #tpu.dot_dimension_numbers<[1], [0], [0], [1], [0, 0, 1, 1], [], []>} : vector<1x64xbf16>, vector<64x512xbf16>, vector<1x512xf32> -> vector<1x512xf32>
    %95 = arith.addf %91, %94 : vector<1x512xf32>
    %c2_i32_56 = arith.constant 2 : i32
    %96 = tpu.memref_slice %arg28[%c2_i32_56] : memref<3x!tpu.dma_semaphore, #tpu.memory_space<semaphore_mem>> -> memref<1x!tpu.dma_semaphore, #tpu.memory_space<semaphore_mem>>
    %97 = tpu.memref_squeeze %96 : memref<1x!tpu.dma_semaphore, #tpu.memory_space<semaphore_mem>> -> memref<!tpu.dma_semaphore, #tpu.memory_space<semaphore_mem>>
    tpu.wait_dma2 semaphore(%97 : memref<!tpu.dma_semaphore, #tpu.memory_space<semaphore_mem>>) src(%arg23 : memref<1152x512xbf16, #tpu.memory_space<any>>) dst(%arg27 : memref<1152x512xbf16, #tpu.memory_space<vmem>>)
    %98 = vector.extract_strided_slice %83 {offsets = [0, 0], sizes = [1, 128], strides = [1, 1]} : vector<9x128xbf16> to vector<1x128xbf16>
    %c0_57 = arith.constant 0 : index
    %c0_58 = arith.constant 0 : index
    %99 = vector.load %arg27[%c0_57, %c0_58] : memref<1152x512xbf16, #tpu.memory_space<vmem>>, vector<128x512xbf16>
    %cst_59 = arith.constant dense<0.000000e+00> : vector<1x512xf32>
    %100 = tpu.matmul %98, %99, %cst_59 {dimension_numbers = #tpu.dot_dimension_numbers<[1], [0], [0], [1], [0, 0, 1, 1], [], []>} : vector<1x128xbf16>, vector<128x512xbf16>, vector<1x512xf32> -> vector<1x512xf32>
    %101 = arith.addf %95, %100 : vector<1x512xf32>
    %102 = vector.extract_strided_slice %83 {offsets = [1, 0], sizes = [1, 128], strides = [1, 1]} : vector<9x128xbf16> to vector<1x128xbf16>
    %c128 = arith.constant 128 : index
    %c0_60 = arith.constant 0 : index
    %103 = vector.load %arg27[%c128, %c0_60] : memref<1152x512xbf16, #tpu.memory_space<vmem>>, vector<128x512xbf16>
    %cst_61 = arith.constant dense<0.000000e+00> : vector<1x512xf32>
    %104 = tpu.matmul %102, %103, %cst_61 {dimension_numbers = #tpu.dot_dimension_numbers<[1], [0], [0], [1], [0, 0, 1, 1], [], []>} : vector<1x128xbf16>, vector<128x512xbf16>, vector<1x512xf32> -> vector<1x512xf32>
    %105 = arith.addf %101, %104 : vector<1x512xf32>
    %106 = vector.extract_strided_slice %83 {offsets = [2, 0], sizes = [1, 128], strides = [1, 1]} : vector<9x128xbf16> to vector<1x128xbf16>
    %c256 = arith.constant 256 : index
    %c0_62 = arith.constant 0 : index
    %107 = vector.load %arg27[%c256, %c0_62] : memref<1152x512xbf16, #tpu.memory_space<vmem>>, vector<128x512xbf16>
    %cst_63 = arith.constant dense<0.000000e+00> : vector<1x512xf32>
    %108 = tpu.matmul %106, %107, %cst_63 {dimension_numbers = #tpu.dot_dimension_numbers<[1], [0], [0], [1], [0, 0, 1, 1], [], []>} : vector<1x128xbf16>, vector<128x512xbf16>, vector<1x512xf32> -> vector<1x512xf32>
    %109 = arith.addf %105, %108 : vector<1x512xf32>
    %110 = vector.extract_strided_slice %83 {offsets = [3, 0], sizes = [1, 128], strides = [1, 1]} : vector<9x128xbf16> to vector<1x128xbf16>
    %c384 = arith.constant 384 : index
    %c0_64 = arith.constant 0 : index
    %111 = vector.load %arg27[%c384, %c0_64] : memref<1152x512xbf16, #tpu.memory_space<vmem>>, vector<128x512xbf16>
    %cst_65 = arith.constant dense<0.000000e+00> : vector<1x512xf32>
    %112 = tpu.matmul %110, %111, %cst_65 {dimension_numbers = #tpu.dot_dimension_numbers<[1], [0], [0], [1], [0, 0, 1, 1], [], []>} : vector<1x128xbf16>, vector<128x512xbf16>, vector<1x512xf32> -> vector<1x512xf32>
    %113 = arith.addf %109, %112 : vector<1x512xf32>
    %114 = vector.extract_strided_slice %83 {offsets = [4, 0], sizes = [1, 128], strides = [1, 1]} : vector<9x128xbf16> to vector<1x128xbf16>
    %c512 = arith.constant 512 : index
    %c0_66 = arith.constant 0 : index
    %115 = vector.load %arg27[%c512, %c0_66] : memref<1152x512xbf16, #tpu.memory_space<vmem>>, vector<128x512xbf16>
    %cst_67 = arith.constant dense<0.000000e+00> : vector<1x512xf32>
    %116 = tpu.matmul %114, %115, %cst_67 {dimension_numbers = #tpu.dot_dimension_numbers<[1], [0], [0], [1], [0, 0, 1, 1], [], []>} : vector<1x128xbf16>, vector<128x512xbf16>, vector<1x512xf32> -> vector<1x512xf32>
    %117 = arith.addf %113, %116 : vector<1x512xf32>
    %118 = vector.extract_strided_slice %83 {offsets = [5, 0], sizes = [1, 128], strides = [1, 1]} : vector<9x128xbf16> to vector<1x128xbf16>
    %c640 = arith.constant 640 : index
    %c0_68 = arith.constant 0 : index
    %119 = vector.load %arg27[%c640, %c0_68] : memref<1152x512xbf16, #tpu.memory_space<vmem>>, vector<128x512xbf16>
    %cst_69 = arith.constant dense<0.000000e+00> : vector<1x512xf32>
    %120 = tpu.matmul %118, %119, %cst_69 {dimension_numbers = #tpu.dot_dimension_numbers<[1], [0], [0], [1], [0, 0, 1, 1], [], []>} : vector<1x128xbf16>, vector<128x512xbf16>, vector<1x512xf32> -> vector<1x512xf32>
    %121 = arith.addf %117, %120 : vector<1x512xf32>
    %122 = vector.extract_strided_slice %83 {offsets = [6, 0], sizes = [1, 128], strides = [1, 1]} : vector<9x128xbf16> to vector<1x128xbf16>
    %c768 = arith.constant 768 : index
    %c0_70 = arith.constant 0 : index
    %123 = vector.load %arg27[%c768, %c0_70] : memref<1152x512xbf16, #tpu.memory_space<vmem>>, vector<128x512xbf16>
    %cst_71 = arith.constant dense<0.000000e+00> : vector<1x512xf32>
    %124 = tpu.matmul %122, %123, %cst_71 {dimension_numbers = #tpu.dot_dimension_numbers<[1], [0], [0], [1], [0, 0, 1, 1], [], []>} : vector<1x128xbf16>, vector<128x512xbf16>, vector<1x512xf32> -> vector<1x512xf32>
    %125 = arith.addf %121, %124 : vector<1x512xf32>
    %126 = vector.extract_strided_slice %83 {offsets = [7, 0], sizes = [1, 128], strides = [1, 1]} : vector<9x128xbf16> to vector<1x128xbf16>
    %c896 = arith.constant 896 : index
    %c0_72 = arith.constant 0 : index
    %127 = vector.load %arg27[%c896, %c0_72] : memref<1152x512xbf16, #tpu.memory_space<vmem>>, vector<128x512xbf16>
    %cst_73 = arith.constant dense<0.000000e+00> : vector<1x512xf32>
    %128 = tpu.matmul %126, %127, %cst_73 {dimension_numbers = #tpu.dot_dimension_numbers<[1], [0], [0], [1], [0, 0, 1, 1], [], []>} : vector<1x128xbf16>, vector<128x512xbf16>, vector<1x512xf32> -> vector<1x512xf32>
    %129 = arith.addf %125, %128 : vector<1x512xf32>
    %130 = vector.extract_strided_slice %83 {offsets = [8, 0], sizes = [1, 128], strides = [1, 1]} : vector<9x128xbf16> to vector<1x128xbf16>
    %c1024 = arith.constant 1024 : index
    %c0_74 = arith.constant 0 : index
    %131 = vector.load %arg27[%c1024, %c0_74] : memref<1152x512xbf16, #tpu.memory_space<vmem>>, vector<128x512xbf16>
    %cst_75 = arith.constant dense<0.000000e+00> : vector<1x512xf32>
    %132 = tpu.matmul %130, %131, %cst_75 {dimension_numbers = #tpu.dot_dimension_numbers<[1], [0], [0], [1], [0, 0, 1, 1], [], []>} : vector<1x128xbf16>, vector<128x512xbf16>, vector<1x512xf32> -> vector<1x512xf32>
    %133 = arith.addf %129, %132 : vector<1x512xf32>
    %cst_76 = arith.constant 0.000000e+00 : f32
    %134 = vector.broadcast %cst_76 : f32 to vector<1x512xf32>
    %135 = arith.cmpf oge, %133, %134 : vector<1x512xf32>
    %cst_77 = arith.constant 0.00999999977 : f32
    %136 = vector.broadcast %cst_77 : f32 to vector<1x512xf32>
    %137 = arith.mulf %136, %133 : vector<1x512xf32>
    %138 = arith.select %135, %133, %137 : vector<1x512xi1>, vector<1x512xf32>
    %c0_78 = arith.constant 0 : index
    %c0_79 = arith.constant 0 : index
    %139 = vector.load %arg20[%c0_78, %c0_79] : memref<1x512xf32, #tpu.memory_space<vmem>>, vector<1x512xf32>
    %140 = arith.mulf %138, %139 : vector<1x512xf32>
    %cst_80 = arith.constant dense<0.000000e+00> : vector<1xf32>
    %141 = vector.multi_reduction <add>, %140, %cst_80 [1] : vector<1x512xf32> to vector<1xf32>
    %142 = vector.shape_cast %141 : vector<1xf32> to vector<1x1xf32>
    %c0_81 = arith.constant 0 : index
    %143 = memref.load %arg3[%c0_81] : memref<1xf32, #tpu.memory_space<smem>>
    %144 = vector.broadcast %143 : f32 to vector<1x1xf32>
    %145 = arith.addf %142, %144 : vector<1x1xf32>
    %146 = vector.shape_cast %145 : vector<1x1xf32> to vector<1x1x1xf32>
    %147 = vector.shape_cast %146 : vector<1x1x1xf32> to vector<1x1x1xf32>
    %148 = vector.broadcast %147 : vector<1x1x1xf32> to vector<1x1x128xf32>
    %c0_82 = arith.constant 0 : index
    %c0_83 = arith.constant 0 : index
    %c0_84 = arith.constant 0 : index
    %149 = vector.load %arg24[%c0_82, %c0_83, %c0_84] : memref<1x1x128xf32, #tpu.memory_space<vmem>>, vector<1x1x128xf32>
    tpu.vector_store %arg24[%c0_82, %c0_83, %c0_84], %148 {strides = array<i32>} : memref<1x1x128xf32, #tpu.memory_space<vmem>>, vector<1x1x128xf32>,
    return
  }
  func.func @transform_0(%arg0: i32) -> i32 {
    %c0_i32 = arith.constant 0 : i32
    %c0_i32_0 = arith.constant 0 : i32
    return %c0_i32 : i32
  }
  func.func @transform_1(%arg0: i32) -> i32 {
    %c0_i32 = arith.constant 0 : i32
    %c0_i32_0 = arith.constant 0 : i32
    return %c0_i32 : i32
  }
  func.func @transform_2(%arg0: i32) -> i32 {
    %c0_i32 = arith.constant 0 : i32
    %c0_i32_0 = arith.constant 0 : i32
    return %c0_i32 : i32
  }
  func.func @transform_3(%arg0: i32) -> (i32, i32, i32) {
    %c0_i32 = arith.constant 0 : i32
    %c0_i32_0 = arith.constant 0 : i32
    %c0_i32_1 = arith.constant 0 : i32
    return %arg0, %c0_i32, %c0_i32_0 : i32, i32, i32
  }
  func.func @transform_4(%arg0: i32) -> (i32, i32) {
    %c0_i32 = arith.constant 0 : i32
    %c0_i32_0 = arith.constant 0 : i32
    %c0_i32_1 = arith.constant 0 : i32
    return %c0_i32, %c0_i32_0 : i32, i32
  }
  func.func @transform_5(%arg0: i32) -> (i32, i32) {
    %c0_i32 = arith.constant 0 : i32
    %c0_i32_0 = arith.constant 0 : i32
    %c0_i32_1 = arith.constant 0 : i32
    return %c0_i32, %c0_i32_0 : i32, i32
  }
  func.func @transform_6(%arg0: i32) -> (i32, i32) {
    %c0_i32 = arith.constant 0 : i32
    %c0_i32_0 = arith.constant 0 : i32
    %c0_i32_1 = arith.constant 0 : i32
    return %c0_i32, %c0_i32_0 : i32, i32
  }
  func.func @transform_7(%arg0: i32) -> (i32, i32) {
    %c0_i32 = arith.constant 0 : i32
    %c0_i32_0 = arith.constant 0 : i32
    %c0_i32_1 = arith.constant 0 : i32
    return %c0_i32, %c0_i32_0 : i32, i32
  }
  func.func @transform_8(%arg0: i32) -> (i32, i32) {
    %c0_i32 = arith.constant 0 : i32
    %c0_i32_0 = arith.constant 0 : i32
    %c0_i32_1 = arith.constant 0 : i32
    return %c0_i32, %c0_i32_0 : i32, i32
  }
  func.func @transform_9(%arg0: i32) -> (i32, i32) {
    %c0_i32 = arith.constant 0 : i32
    %c0_i32_0 = arith.constant 0 : i32
    %c0_i32_1 = arith.constant 0 : i32
    return %c0_i32, %c0_i32_0 : i32, i32
  }
  func.func @transform_10(%arg0: i32) -> (i32, i32) {
    %c0_i32 = arith.constant 0 : i32
    %c0_i32_0 = arith.constant 0 : i32
    %c0_i32_1 = arith.constant 0 : i32
    return %c0_i32, %c0_i32_0 : i32, i32
  }
  func.func @transform_11(%arg0: i32) -> (i32, i32) {
    %c0_i32 = arith.constant 0 : i32
    %c0_i32_0 = arith.constant 0 : i32
    %c0_i32_1 = arith.constant 0 : i32
    return %c0_i32, %c0_i32_0 : i32, i32
  }
  func.func @transform_12(%arg0: i32) -> (i32, i32) {
    %c0_i32 = arith.constant 0 : i32
    %c0_i32_0 = arith.constant 0 : i32
    %c0_i32_1 = arith.constant 0 : i32
    return %c0_i32, %c0_i32_0 : i32, i32
  }
  func.func @transform_13(%arg0: i32) -> (i32, i32) {
    %c0_i32 = arith.constant 0 : i32
    %c0_i32_0 = arith.constant 0 : i32
    %c0_i32_1 = arith.constant 0 : i32
    return %c0_i32, %c0_i32_0 : i32, i32
  }
  func.func @transform_14(%arg0: i32) -> (i32, i32) {
    %c0_i32 = arith.constant 0 : i32
    %c0_i32_0 = arith.constant 0 : i32
    %c0_i32_1 = arith.constant 0 : i32
    return %c0_i32, %c0_i32_0 : i32, i32
  }
  func.func @transform_15(%arg0: i32) -> (i32, i32) {
    %c0_i32 = arith.constant 0 : i32
    %c0_i32_0 = arith.constant 0 : i32
    %c0_i32_1 = arith.constant 0 : i32
    return %c0_i32, %c0_i32_0 : i32, i32
  }
  func.func @transform_16(%arg0: i32) -> (i32, i32) {
    %c0_i32 = arith.constant 0 : i32
    %c0_i32_0 = arith.constant 0 : i32
    %c0_i32_1 = arith.constant 0 : i32
    return %c0_i32, %c0_i32_0 : i32, i32
  }
  func.func @transform_17(%arg0: i32) -> (i32, i32) {
    %c0_i32 = arith.constant 0 : i32
    %c0_i32_0 = arith.constant 0 : i32
    %c0_i32_1 = arith.constant 0 : i32
    return %c0_i32, %c0_i32_0 : i32, i32
  }
  func.func @transform_18(%arg0: i32) -> (i32, i32) {
    %c0_i32 = arith.constant 0 : i32
    %c0_i32_0 = arith.constant 0 : i32
    %c0_i32_1 = arith.constant 0 : i32
    return %c0_i32, %c0_i32_0 : i32, i32
  }
  func.func @transform_19(%arg0: i32) -> (i32, i32) {
    %c0_i32 = arith.constant 0 : i32
    %c0_i32_0 = arith.constant 0 : i32
    %c0_i32_1 = arith.constant 0 : i32
    return %c0_i32, %c0_i32_0 : i32, i32
  }
  func.func @transform_23(%arg0: i32) -> (i32, i32, i32) {
    %c0_i32 = arith.constant 0 : i32
    %c0_i32_0 = arith.constant 0 : i32
    %c0_i32_1 = arith.constant 0 : i32
    return %arg0, %c0_i32, %c0_i32_0 : i32, i32, i32
  }
}

</mosaic_0001>

<bundles_post_ra>
// kernel: regressor_forward.1
= control target key start
LH: loop header
LB: loop body
LE: loop exit
PB: predicated region body
PF: predicated region fallthrough
CT: control target
= control target key end

     0   :  { %s10715_s0 = inlined_call_operand.<no memory space> [shape: f32[1], index: 0, kind: input, shape index: {}]   ;;  %s10716_s1 = inlined_call_operand.hbm [shape: f32[2], index: 1, kind: input, shape index: {}]   ;;  %s10717_s2 = inlined_call_operand.<no memory space> [shape: f32[1], index: 2, kind: input, shape index: {}]   ;;  %s10718_s3 = inlined_call_operand.vmem [shape: f32[2,36,8], index: 3, kind: input, shape index: {}]   ;;  %s10719_s4 = inlined_call_operand.hbm [shape: f32[8,512], index: 4, kind: input, shape index: {}]   ;;  %s10720_s5 = inlined_call_operand.hbm [shape: f32[1,512], index: 5, kind: input, shape index: {}]   ;;  %s10721_s6 = inlined_call_operand.vmem [shape: bf16[512,64], index: 6, kind: input, shape index: {}]   ;;  %s10722_s7 = inlined_call_operand.hbm [shape: f32[1,64], index: 7, kind: input, shape index: {}]   ;;  %s10723_s8 = inlined_call_operand.vmem [shape: bf16[512,64], index: 8, kind: input, shape index: {}]   ;;  %s10724_s9 = inlined_call_operand.hbm [shape: f32[1,64], index: 9, kind: input, shape index: {}]   ;;  %s10725_s10 = inlined_call_operand.hbm [shape: f32[1,512], index: 10, kind: input, shape index: {}]   ;;  %s10726_s11 = inlined_call_operand.hbm [shape: bf16[9,36], index: 11, kind: input, shape index: {}]   ;;  %s10727_s12 = inlined_call_operand.hbm [shape: f32[1,256], index: 12, kind: input, shape index: {}]   ;;  %s10728_s13 = inlined_call_operand.hbm [shape: bf16[256,128], index: 13, kind: input, shape index: {}]   ;;  %s10729_s14 = inlined_call_operand.hbm [shape: f32[1,128], index: 14, kind: input, shape index: {}]   ;;  %s10730_s15 = inlined_call_operand.hbm [shape: f32[1,64], index: 15, kind: input, shape index: {}]   ;;  %s10731_s16 = inlined_call_operand.hbm [shape: f32[1,64], index: 16, kind: input, shape index: {}]   ;;  %s10732_s17 = inlined_call_operand.hbm [shape: bf16[64,512], index: 17, kind: input, shape index: {}]   ;;  %s10733_s18 = inlined_call_operand.hbm [shape: f32[1,512], index: 18, kind: input, shape index: {}]   ;;  %s10734_s19 = inlined_call_operand.hbm [shape: f32[1,512], index: 19, kind: input, shape index: {}]   ;;  %s10735_s20 = inlined_call_operand.hbm [shape: bf16[512,512], index: 20, kind: input, shape index: {}]   ;;  %s10736_s21 = inlined_call_operand.hbm [shape: bf16[512,256], index: 21, kind: input, shape index: {}]   ;;  %s10737_s22 = inlined_call_operand.hbm [shape: bf16[1152,512], index: 22, kind: input, shape index: {}]   ;;  %s10738_s23 = inlined_call_operand.vmem [shape: f32[2,1,128], index: 23, kind: output, shape index: {}]  }
   0x1   :  { %10761 = sst [smem:[#allocation68_spill]] %s10715_s0 }
   0x2   :  { %10762 = sst [smem:[#allocation69_spill]] %s10716_s1 }
   0x3   :  { %10763 = sst [smem:[#allocation70_spill]] %s10717_s2 }
   0x4   :  { %10764 = sst [smem:[#allocation71_spill]] %s10718_s3 }
   0x5   :  { %10765 = sst [smem:[#allocation72_spill]] %s10719_s4 }
   0x6   :  { %10766 = sst [smem:[#allocation73_spill]] %s10720_s5 }
   0x7   :  { %10767 = sst [smem:[#allocation74_spill]] %s10721_s6 }
   0x8   :  { %10768 = sst [smem:[#allocation75_spill]] %s10722_s7 }
   0x9   :  { %10769 = sst [smem:[#allocation76_spill]] %s10723_s8 }
   0xa   :  { %10770 = sst [smem:[#allocation77_spill]] %s10724_s9 }
   0xb   :  { %10771 = sst [smem:[#allocation78_spill]] %s10726_s11 }
   0xc   :  { %10772 = sst [smem:[#allocation79_spill]] %s10728_s13 }
   0xd   :  { %s10773_s24 = sld [smem:[#allocation68_spill]] }
   0xe   :  { %s10774_s8 = sld [smem:[#allocation70_spill]] }
  0x13   :  { %28 = sst [smem:[#allocation6]] %s10773_s24 }
  0x14   :  { %29 = sst [smem:[#allocation7]] %s10774_s8 }
  0x15   :  { %30 = vsyncpa [#allocation10], 0 }
  0x16   :  { %31 = vsyncpa [#allocation9], 0 }
  0x17   :  { %32 = vsyncpa [#allocation13], 0 }
  0x18   :  { %33 = vsyncpa [#allocation16], 0 }
  0x19   :  { %34 = vsyncpa [#allocation19], 0 }
  0x1a   :  { %35 = vsyncpa [#allocation22], 0 }
  0x1b   :  { %36 = vsyncpa [#allocation25], 0 }
  0x1c   :  { %37 = vsyncpa [#allocation28], 0 }
  0x1d   :  { %38 = vsyncpa [#allocation31], 0  ;;  %s9819_s1 = smov 0  }
  0x1e LB: > { %s9667_s8 = smov [#allocation12]   ;;  %s9825_s2 = sadd.s32 4294967295, %s9665_s1   ;;  %s9665_s1 = sphi %s9819_s1, %s44_s1  }
  0x1f   : > { %s539_s26 = sshll.u32 %s9667_s8, 4  ;;  %p7338_p0 = scmp.ge.s32.totalorder %s9665_s1, 1  ;;  %s540_s26 = int_to_ptr.vmem [resolvable:$true] %s539_s26 }
  0x20   : > { %p500_p1 = scmp.lt.s32.totalorder %s9665_s1, 3  ;;  %p10741_p2 = scmp.eq.s32.totalorder %s9825_s2, 0 }
  0x21   : > { %s9668_s27 = smov [#allocation15]   ;;  %s9669_s28 = smov [#allocation18]  }
  0x22   : > { %p9830_p3 = pnand %p7338_p0, %p500_p1  ;;  %s567_s7 = sshll.u32 %s9668_s27, 4  ;;  %s568_s7 = int_to_ptr.vmem [resolvable:$true] %s567_s7 }
  0x23   : > { %s588_s29 = sshll.u32 %s9669_s28, 4  ;;  %s9670_s0 = smov [#allocation21]   ;;  %s9842_s29 = int_to_ptr.vmem [resolvable:$true] %s588_s29 }
  0x24   : > { %s10775_s6 = scalar_select %p9830_p3, 1, 0 }
  0x25   : > { %p8227_p4 = pneg %p9830_p3  ;;  %s9844_s4 = sshll.u32 %s9670_s0, 4  ;;  %s613_s4 = int_to_ptr.vmem [resolvable:$true] %s9844_s4 }
  0x26   : > { %s9193_s24 = scalar_lea.vmem %s540_s26, 64  ;;  %p9201_p10 = scmp.lt.s32.totalorder %s540_s26, %s540_s26 }
  0x27   : > { %p9838_p5 = pnand %p10741_p2, %p8227_p4  ;;  %p9194_p7 = scmp.ne.s32.totalorder %s540_s26, %s9193_s24 }
  0x28   : > { %p9202_p11 = scmp.lt.s32.totalorder %s9193_s24, %s9193_s24 }
  0x29   : > { %p9848_p6 = pneg %p9838_p5 }
  0x2a   : > { %p9203_p12 = por %p9202_p11, %p9201_p10 }
  0x2b   : > { %p9196_p8 = pnand %p9194_p7, %p9848_p6 }
  0x2d   : > { %p9197_p9 = pneg %p9196_p8 }
  0x2f   : > { %p9204_p13 = pnand %p9203_p12, %p9197_p9 }
  0x31   : > { %9207 = shalt.err (!%p9204_p13)
}
  0x32   : > { %s10778_s8 = sld [smem:[#allocation73_spill]]  ;;  %s9219_s27 = scalar_lea.vmem %s568_s7, 16 }
  0x33   : > { %p9220_p0 = scmp.ne.s32.totalorder %s568_s7, %s9219_s27  ;;  %s9226_s28 = scalar_lea.vmem %s568_s7, 32 }
  0x34   : > { %p9227_p7 = scmp.lt.s32.totalorder %s568_s7, %s568_s7  ;;  %p9228_p8 = scmp.lt.s32.totalorder %s9226_s28, %s9219_s27 }
  0x35   : > { %p9222_p1 = pnand %p9220_p0, %p9848_p6 }
  0x36   : > { %p9229_p2 = por %p9228_p8, %p9227_p7 }
  0x37   : > { %p9223_p4 = pneg %p9222_p1 }
  0x38   : > { %8236 = dma.hbm_to_vmem [thread:$0]  (!%p9838_p5), %s10778_s8, 64, %s540_s26, [#allocation13]  }
  0x39   : > { %p9230_p3 = pnand %p9229_p2, %p9223_p4 }
  0x3b   : > { %9233 = shalt.err (!%p9230_p3)
}
  0x3c   : > { %s10779_s9 = sld [smem:[#allocation77_spill]]  ;;  %s9245_s26 = scalar_lea.vmem %s9842_s29, 128 }
  0x3d   : > { %p9246_p9 = scmp.ne.s32.totalorder %s9842_s29, %s9245_s26  ;;  %p9253_p12 = scmp.lt.s32.totalorder %s9842_s29, %s9842_s29 }
  0x3e   : > { %p9254_p13 = scmp.lt.s32.totalorder %s9245_s26, %s9245_s26 }
  0x3f   : > { %p9248_p10 = pnand %p9246_p9, %p9848_p6 }
  0x40   : > { %p9255_p2 = por %p9254_p13, %p9253_p12 }
  0x41   : > { %p9249_p11 = pneg %p9248_p10 }
  0x42   : > { %8242 = dma.hbm_to_vmem [thread:$0]  (!%p9838_p5), %s10779_s9, 16, %s568_s7, [#allocation16]  }
  0x43   : > { %p9256_p3 = pnand %p9255_p2, %p9249_p11 }
  0x45   : > { %9259 = shalt.err (!%p9256_p3)
}
  0x46   : > { %s9671_s25 = smov 64   ;;  %s9672_s5 = smov 4  }
  0x47   : > { %s10780_s11 = sld [smem:[#allocation78_spill]]  ;;  %s9271_s27 = scalar_lea.vmem %s613_s4, 2048 }
  0x48   : > { %p9272_p0 = scmp.ne.s32.totalorder %s613_s4, %s9271_s27  ;;  %p9279_p7 = scmp.lt.s32.totalorder %s613_s4, %s613_s4 }
  0x49   : > { %p9280_p8 = scmp.lt.s32.totalorder %s9271_s27, %s9271_s27 }
  0x4a   : > { %p9274_p1 = pnand %p9272_p0, %p9848_p6 }
  0x4b   : > { %p9281_p9 = por %p9280_p8, %p9279_p7 }
  0x4c   : > { %p9275_p4 = pneg %p9274_p1 }
  0x4d   : > { %8248 = dma.hbm_to_vmem [thread:$0]  (!%p9838_p5), %s10780_s11, 128, %s9842_s29, [#allocation19], %s9671_s25, %s9671_s25, %s9672_s5  }
  0x4e   : > { %p9282_p10 = pnand %p9281_p9, %p9275_p4 }
  0x50   : > { %9285 = shalt.err (!%p9282_p10)
}
  0x51   : > { %s10781_s13 = sld [smem:[#allocation79_spill]]  ;;  %s9673_s24 = smov [#allocation24]  }
  0x52   : > { %s637_s29 = sshll.u32 %s9673_s24, 4  ;;  %s9674_s26 = smov [#allocation27]   ;;  %s638_s29 = int_to_ptr.vmem [resolvable:$true] %s637_s29 }
  0x53   : > { %s658_s8 = sshll.u32 %s9674_s26, 4  ;;  %s9297_s7 = scalar_lea.vmem %s638_s29, 16  ;;  %s659_s8 = int_to_ptr.vmem [resolvable:$true] %s658_s8 }
  0x54   : > { %p9298_p11 = scmp.ne.s32.totalorder %s638_s29, %s9297_s7  ;;  %s9304_s27 = scalar_lea.vmem %s638_s29, 32 }
  0x55   : > { %p9305_p2 = scmp.lt.s32.totalorder %s638_s29, %s638_s29  ;;  %p9306_p3 = scmp.lt.s32.totalorder %s9304_s27, %s9297_s7 }
  0x56   : > { %p9300_p12 = pnand %p9298_p11, %p9848_p6 }
  0x57   : > { %8254 = dma.hbm_to_vmem [thread:$0]  (!%p9838_p5), %s10781_s13, 2048, %s613_s4, [#allocation22], %s9671_s25, %s9671_s25, %s9672_s5  }
  0x58   : > { %p9301_p13 = pneg %p9300_p12  ;;  %p9307_p0 = por %p9306_p3, %p9305_p2 }
  0x5a   : > { %p9308_p1 = pnand %p9307_p0, %p9301_p13 }
  0x5c   : > { %9311 = shalt.err (!%p9308_p1)
}
  0x5d   : > { %8260 = dma.hbm_to_vmem [thread:$0]  (!%p9838_p5), %s10730_s15, 16, %s638_s29, [#allocation25]  }
  0x5e   : > { %s9323_s25 = scalar_lea.vmem %s659_s8, 2048  ;;  %p9331_p9 = scmp.lt.s32.totalorder %s659_s8, %s659_s8 }
  0x5f   : > { %p9324_p4 = scmp.ne.s32.totalorder %s659_s8, %s9323_s25  ;;  %p9332_p10 = scmp.lt.s32.totalorder %s9323_s25, %s9323_s25 }
  0x61   : > { %p9326_p7 = pnand %p9324_p4, %p9848_p6  ;;  %p9333_p11 = por %p9332_p10, %p9331_p9 }
  0x63   : > { %p9327_p8 = pneg %p9326_p7 }
  0x65   : > { %p9334_p12 = pnand %p9333_p11, %p9327_p8 }
  0x67   : > { %9337 = shalt.err (!%p9334_p12)
}
  0x68   : > { %s9675_s5 = smov 256   ;;  %s9676_s0 = smov 16  }
  0x69   : > { %8266 = dma.hbm_to_vmem [thread:$0]  (!%p9838_p5), %s10732_s17, 2048, %s659_s8, [#allocation28], %s9675_s5, %s9675_s5, %s9676_s0  }
  0x6a   : > { %s9677_s29 = smov [#allocation8]   ;;  %s10782_s28 = sld [smem:[#allocation69_spill]] }
  0x6b   : > { %s9678_s4 = smov [#allocation11]   ;;  %s9679_s9 = smov [#allocation14]  }
  0x6c   : > { %s528_s25 = sshll.u32 %s9678_s4, 4  ;;  %s553_s11 = sshll.u32 %s9679_s9, 4  ;;  %s529_s25 = int_to_ptr.vmem [resolvable:$true] %s528_s25  ;;  %s554_s11 = int_to_ptr.vmem [resolvable:$true] %s553_s11 }
  0x6d   : > { %s9360_s13 = scalar_lea.vmem %s529_s25, 512  ;;  %p9368_p0 = scmp.lt.s32.totalorder %s529_s25, %s529_s25 }
  0x6e   : > { %p9361_p13 = scmp.ne.s32.totalorder %s529_s25, %s9360_s13  ;;  %p9369_p1 = scmp.lt.s32.totalorder %s9360_s13, %s9360_s13 }
  0x70   : > { %8230 = dma.hbm_to_smem (!%p9838_p5), %s10782_s28, 16, %s9677_s29, [#allocation10]  }
  0x71   : > { %p9363_p2 = pnand %p9361_p13, %p9848_p6  ;;  %p9370_p4 = por %p9369_p1, %p9368_p0 }
  0x73   : > { %p9364_p3 = pneg %p9363_p2 }
  0x75   : > { %p9371_p7 = pnand %p9370_p4, %p9364_p3 }
  0x77   : > { %9374 = shalt.err (!%p9371_p7)
}
  0x78   : > { %s10783_s0 = sld [smem:[#allocation72_spill]]  ;;  %s9386_s9 = scalar_lea.vmem %s554_s11, 16 }
  0x79   : > { %p9387_p8 = scmp.ne.s32.totalorder %s554_s11, %s9386_s9  ;;  %s9393_s24 = scalar_lea.vmem %s554_s11, 32 }
  0x7a   : > { %p9394_p11 = scmp.lt.s32.totalorder %s554_s11, %s554_s11  ;;  %p9395_p12 = scmp.lt.s32.totalorder %s9393_s24, %s9386_s9 }
  0x7b   : > { %p9389_p9 = pnand %p9387_p8, %p9848_p6 }
  0x7c   : > { %p9396_p13 = por %p9395_p12, %p9394_p11 }
  0x7d   : > { %p9390_p10 = pneg %p9389_p9 }
  0x7e   : > { %8233 = dma.hbm_to_vmem [thread:$0]  (!%p9838_p5), %s10783_s0, 512, %s529_s25, [#allocation9]  }
  0x7f   : > { %p9397_p2 = pnand %p9396_p13, %p9390_p10 }
  0x81   : > { %9400 = shalt.err (!%p9397_p2)
}
  0x82   : > { %s10784_s29 = sld [smem:[#allocation75_spill]]  ;;  %s9680_s7 = smov [#allocation17]  }
  0x83   : > { %s578_s27 = sshll.u32 %s9680_s7, 4  ;;  %s9681_s28 = smov [#allocation20]   ;;  %s579_s27 = int_to_ptr.vmem [resolvable:$true] %s578_s27 }
  0x84   : > { %s602_s4 = sshll.u32 %s9681_s28, 4  ;;  %s9412_s25 = scalar_lea.vmem %s579_s27, 64  ;;  %s603_s4 = int_to_ptr.vmem [resolvable:$true] %s602_s4 }
  0x85   : > { %p9413_p3 = scmp.ne.s32.totalorder %s579_s27, %s9412_s25  ;;  %p9420_p4 = scmp.lt.s32.totalorder %s579_s27, %s579_s27 }
  0x86   : > { %p9421_p7 = scmp.lt.s32.totalorder %s9412_s25, %s9412_s25 }
  0x87   : > { %p9415_p0 = pnand %p9413_p3, %p9848_p6 }
  0x88   : > { %8239 = dma.hbm_to_vmem [thread:$0]  (!%p9838_p5), %s10784_s29, 16, %s554_s11, [#allocation13]  }
  0x89   : > { %p9416_p1 = pneg %p9415_p0  ;;  %p9422_p8 = por %p9421_p7, %p9420_p4 }
  0x8b   : > { %p9423_p9 = pnand %p9422_p8, %p9416_p1 }
  0x8d   : > { %9426 = shalt.err (!%p9423_p9)
}
  0x8e   : > { %8245 = dma.hbm_to_vmem [thread:$0]  (!%p9838_p5), %s10725_s10, 64, %s579_s27, [#allocation16]  }
  0x8f   : > { %s9438_s5 = scalar_lea.vmem %s603_s4, 32  ;;  %p9446_p13 = scmp.lt.s32.totalorder %s603_s4, %s603_s4 }
  0x90   : > { %p9439_p10 = scmp.ne.s32.totalorder %s603_s4, %s9438_s5  ;;  %p9447_p2 = scmp.lt.s32.totalorder %s9438_s5, %s9438_s5 }
  0x92   : > { %p9441_p11 = pnand %p9439_p10, %p9848_p6  ;;  %p9448_p3 = por %p9447_p2, %p9446_p13 }
  0x94   : > { %p9442_p12 = pneg %p9441_p11 }
  0x96   : > { %p9449_p0 = pnand %p9448_p3, %p9442_p12 }
  0x98   : > { %9452 = shalt.err (!%p9449_p0)
}
  0x99   : > { %8251 = dma.hbm_to_vmem [thread:$0]  (!%p9838_p5), %s10727_s12, 32, %s603_s4, [#allocation19]  }
  0x9a   : > { %s9682_s24 = smov [#allocation23]   ;;  %s9683_s26 = smov [#allocation26]  }
  0x9b   : > { %s626_s13 = sshll.u32 %s9682_s24, 4  ;;  %s648_s29 = sshll.u32 %s9683_s26, 4  ;;  %s627_s13 = int_to_ptr.vmem [resolvable:$true] %s626_s13  ;;  %s649_s29 = int_to_ptr.vmem [resolvable:$true] %s648_s29 }
  0x9c   : > { %s9464_s7 = scalar_lea.vmem %s627_s13, 16  ;;  %s9471_s27 = scalar_lea.vmem %s627_s13, 32 }
  0x9d   : > { %p9465_p1 = scmp.ne.s32.totalorder %s627_s13, %s9464_s7  ;;  %p9472_p8 = scmp.lt.s32.totalorder %s627_s13, %s627_s13 }
  0x9e   : > { %p9473_p9 = scmp.lt.s32.totalorder %s9471_s27, %s9464_s7 }
  0x9f   : > { %p9467_p4 = pnand %p9465_p1, %p9848_p6 }
  0xa0   : > { %p9474_p10 = por %p9473_p9, %p9472_p8 }
  0xa1   : > { %p9468_p7 = pneg %p9467_p4 }
  0xa3   : > { %p9475_p11 = pnand %p9474_p10, %p9468_p7 }
  0xa5   : > { %9478 = shalt.err (!%p9475_p11)
}
  0xa6   : > { %8257 = dma.hbm_to_vmem [thread:$0]  (!%p9838_p5), %s10729_s14, 16, %s627_s13, [#allocation22]  }
  0xa7   : > { %s9490_s25 = scalar_lea.vmem %s649_s29, 16  ;;  %s9497_s8 = scalar_lea.vmem %s649_s29, 32 }
  0xa8   : > { %p9491_p12 = scmp.ne.s32.totalorder %s649_s29, %s9490_s25  ;;  %p9498_p3 = scmp.lt.s32.totalorder %s649_s29, %s649_s29 }
  0xa9   : > { %p9499_p0 = scmp.lt.s32.totalorder %s9497_s8, %s9490_s25 }
  0xaa   : > { %p9493_p13 = pnand %p9491_p12, %p9848_p6 }
  0xab   : > { %p9500_p1 = por %p9499_p0, %p9498_p3 }
  0xac   : > { %p9494_p2 = pneg %p9493_p13 }
  0xae   : > { %p9501_p4 = pnand %p9500_p1, %p9494_p2 }
  0xb0   : > { %9504 = shalt.err (!%p9501_p4)
}
  0xb1   : > { %8263 = dma.hbm_to_vmem [thread:$0]  (!%p9838_p5), %s10731_s16, 16, %s649_s29, [#allocation25]  }
  0xb2   : > { %s9684_s0 = smov [#allocation29]   ;;  %s9685_s24 = smov [#allocation30]  }
  0xb3   : > { %s672_s9 = sshll.u32 %s9684_s0, 4  ;;  %s683_s13 = sshll.u32 %s9685_s24, 4  ;;  %s673_s9 = int_to_ptr.vmem [resolvable:$true] %s672_s9  ;;  %s684_s13 = int_to_ptr.vmem [resolvable:$true] %s683_s13 }
  0xb4   : > { %s9516_s26 = scalar_lea.vmem %s673_s9, 64  ;;  %p9524_p10 = scmp.lt.s32.totalorder %s673_s9, %s673_s9 }
  0xb5   : > { %p9517_p7 = scmp.ne.s32.totalorder %s673_s9, %s9516_s26  ;;  %p9525_p11 = scmp.lt.s32.totalorder %s9516_s26, %s9516_s26 }
  0xb7   : > { %p9519_p8 = pnand %p9517_p7, %p9848_p6  ;;  %p9526_p12 = por %p9525_p11, %p9524_p10 }
  0xb9   : > { %p9520_p9 = pneg %p9519_p8 }
  0xbb   : > { %p9527_p13 = pnand %p9526_p12, %p9520_p9 }
  0xbd   : > { %9530 = shalt.err (!%p9527_p13)
}
  0xbe   : > { %8269 = dma.hbm_to_vmem [thread:$0]  (!%p9838_p5), %s10733_s18, 64, %s673_s9, [#allocation28]  }
  0xbf   : > { %s9542_s27 = scalar_lea.vmem %s684_s13, 64  ;;  %p9550_p1 = scmp.lt.s32.totalorder %s684_s13, %s684_s13 }
  0xc0   : > { %p9543_p2 = scmp.ne.s32.totalorder %s684_s13, %s9542_s27  ;;  %p9551_p4 = scmp.lt.s32.totalorder %s9542_s27, %s9542_s27 }
  0xc2   : > { %p9545_p3 = pnand %p9543_p2, %p9848_p6  ;;  %p9552_p7 = por %p9551_p4, %p9550_p1 }
  0xc4   : > { %p9546_p0 = pneg %p9545_p3 }
  0xc6   : > { %p9553_p8 = pnand %p9552_p7, %p9546_p0 }
  0xc8   : > { %9556 = shalt.err (!%p9553_p8)
}
  0xc9   : > { %8272 = dma.hbm_to_vmem [thread:$0]  (!%p9838_p5), %s10734_s19, 64, %s684_s13, [#allocation31]  }
  0xca   : > { %p10785_p9 = scmp.ne.s32.totalorder %s10775_s6, 0 }
  0xcc   : > { %704 = sbr.rel (%p10785_p9) target bundleno = 3174 (0xc66), region = 100 }
  0xd1   : > { %p10786_p10 = scmp.eq.s32.totalorder %s9825_s2, 0 }
  0xd3   : > { %9622 = dma.done.wait (%p10786_p10), [#allocation10], 16   ;;  %p10787_p6 = pmov %p10786_p10 }
  0xd5   : > { %9624 = vsyncadd (%p10787_p6), [#allocation10], 4294967280  ;;  %p10788_p11 = pmov %p10787_p6 }
  0xd6   : > { %p10789_p12 = pmov %p10787_p6 }
  0xd7   : > { %9626 = dma.done.wait (%p10788_p11), [#allocation9], 512  }
  0xd8   : > { %9628 = vsyncadd (%p10789_p12), [#allocation9], 4294966784  ;;  %p10790_p13 = pmov %p10787_p6 }
  0xd9   : > { %p10791_p5 = pmov %p10787_p6 }
  0xda   : > { %9630 = dma.done.wait (%p10790_p13), [#allocation13], 80  }
  0xdb   : > { %9632 = vsyncadd (%p10791_p5), [#allocation13], 4294967216  ;;  %p10792_p2 = pmov %p10791_p5 }
  0xdd   : > { %9634 = dma.done.wait (%p10792_p2), [#allocation16], 80   ;;  %p10793_p3 = pmov %p10792_p2 }
  0xde   : > { %p10794_p0 = pmov %p10792_p2 }
  0xdf   : > { %9636 = vsyncadd (%p10793_p3), [#allocation16], 4294967216 }
  0xe0   : > { %9638 = dma.done.wait (%p10794_p0), [#allocation19], 160   ;;  %p10795_p1 = pmov %p10794_p0 }
  0xe1   : > { %p10796_p4 = pmov %p10794_p0 }
  0xe2   : > { %9640 = vsyncadd (%p10795_p1), [#allocation19], 4294967136 }
  0xe3   : > { %9642 = dma.done.wait (%p10796_p4), [#allocation22], 2064   ;;  %p10797_p7 = pmov %p10794_p0 }
  0xe4   : > { %p10798_p8 = pmov %p10794_p0 }
  0xe5   : > { %9644 = vsyncadd (%p10797_p7), [#allocation22], 4294965232 }
  0xe6   : > { %9646 = dma.done.wait (%p10798_p8), [#allocation25], 32   ;;  %p10799_p9 = pmov %p10794_p0 }
  0xe7   : > { %p10800_p10 = pmov %p10794_p0 }
  0xe8   : > { %9648 = vsyncadd (%p10799_p9), [#allocation25], 4294967264 }
  0xe9   : > { %9650 = dma.done.wait (%p10800_p10), [#allocation28], 2112   ;;  %p10801_p6 = pmov %p10794_p0 }
  0xea   : > { %p10802_p11 = pmov %p10794_p0 }
  0xeb   : > { %9652 = vsyncadd (%p10801_p6), [#allocation28], 4294965184 }
  0xec   : > { %9654 = dma.done.wait (%p10802_p11), [#allocation31], 64   ;;  %p10803_p12 = pmov %p10794_p0 }
  0xee   : > { %9656 = vsyncadd (%p10803_p12), [#allocation31], 4294967232 }
  0xef   : > { %766 = sfence }
  0xf0   : > { %v867_v0 = vld [vmem:[#allocation11 + $0x8] sm:$0xff]  ;;  %v869_v1 = vld [vmem:[#allocation11 + $0x18] sm:$0xff]  ;;  %v866_v2 = vld [vmem:[#allocation11] sm:$0xff]  ;;  %p817_p13 = scmp.lt.s32.totalorder %s9825_s2, 1  ;;  %v10743_v4 = vmov 0.0   ;;  %s10804_s25 = sld [smem:[#allocation74_spill]]  ;;  %v872_v44 = vlaneseq }
  0xf1   : > { %938 = vmatprep.subr.mxu0 %v867_v0  ;;  %1033 = vmatprep.subr.mxu1 %v869_v1  ;;  %v868_v3 = vld [vmem:[#allocation11 + $0x10] sm:$0xff]  ;;  %vm892_vm0 = vcmask 64512   ;;  %s10805_s27 = sld [smem:[#allocation71_spill]]  ;;  %v870_v48 = vld [vmem:[#allocation12] sm:$0xf]  ;;  %s9688_s8 = smov [#allocation2]  }
  0xf2   : > { %939 = vmatpush1.msra.mxu0 %v866_v2  ;;  %972 = vmatprep.mubr.f32.mxu0 %v10743_v4  ;;  %s10002_s6 = scalar_select %p817_p13, %s9825_s2, 1  ;;  %v10140_v45 = vshrl.u32 %v872_v44, 7 }
  0xf3   : > { %1034 = vmatpush1.msra.mxu1 %v868_v3  ;;  %1067 = vmatprep.mubr.f32.mxu1 %v10743_v4  ;;  %s833_s11 = sshll.u32 %s9688_s8, 4  ;;  %s834_s11 = int_to_ptr.vmem [resolvable:$true] %s833_s11 }
  0xf4   : > { %s8166_s5 = smul.u32 40, %s10002_s6  ;;  %s824_s24 = scalar_lea.vmem %s10738_s23, %s10002_s6  ;;  %10807 = vst [vmem:[#allocation52_spill] sm:$0xff] %v10140_v45  ;;  %v10143_v46 = vsub.s32 0, %v10140_v45  ;;  %v10146_v47 = vsub.s32 2, %v10140_v45  ;;  %v10149_v49 = vsub.s32 1, %v10140_v45  ;;  %v10152_v50 = vsub.s32 3, %v10140_v45 }
  0xf5   : > { %v7415_v45 = vld [vmem:[#allocation15] ss:$0 sm:$0xff]  ;;  %s9565_s9 = scalar_lea.vmem %s834_s11, 16384  ;;  %p9570_p2 = scmp.lt.s32.totalorder %s834_s11, %s834_s11 }
  0xf6   : > { %v8337_v5 = vld [vmem:[%s10804_s25 + $0x78] sm:$0xff]   ;;  %v8341_v10 = vld [vmem:[%s10804_s25 + $0x70] sm:$0xff]   ;;  %v8345_v16 = vld [vmem:[%s10804_s25 + $0x68] sm:$0xff]   ;;  %v10155_v51 = vrot.slane %v870_v48, %v10143_v46  ;;  %v10158_v52 = vrot.slane %v870_v48, %v10146_v47  ;;  %v10161_v55 = vrot.slane %v870_v48, %v10149_v49  ;;  %v10164_v56 = vrot.slane %v870_v48, %v10152_v50  ;;  %p9566_p5 = scmp.ne.s32.totalorder %s834_s11, %s9565_s9  ;;  %p9571_p3 = scmp.lt.s32.totalorder %s9565_s9, %s9565_s9 }
  0xf7   : > { %v8338_v6 = vld [vmem:[%s10804_s25 + $0xf8] sm:$0xff]   ;;  %7984 = vmatprep.subr.bf16.mxu0 %v8337_v5  ;;  %s10022_s28 = scalar_lea.vmem %s10805_s27, %s8166_s5  ;;  %v8342_v12 = vld [vmem:[%s10804_s25 + $0xf0] sm:$0xff]   ;;  %v8346_v17 = vld [vmem:[%s10804_s25 + $0xe8] sm:$0xff]   ;;  %s10806_s5 = sld [smem:[#allocation76_spill]] }
  0xf8   : > { %8018 = vmatprep.subr.bf16.mxu1 %v8338_v6  ;;  %v8339_v7 = vld [vmem:[%s10804_s25 + $0x38] sm:$0xff]   ;;  %v861_v9 = vld [vmem:[%s10022_s28] sm:$0xff]  ;;  %v862_v11 = vld [vmem:[%s10022_s28 + $0x8] sm:$0xff]  ;;  %p9572_p0 = por %p9571_p3, %p9570_p2 }
  0xf9   : > { %v8340_v8 = vld [vmem:[%s10804_s25 + $0xb8] sm:$0xff]   ;;  %7372 = vmatmul.mubr.msk.f32.vlgmr.msra.gmra.mxu0 %vm892_vm0, %v861_v9  ;;  %7377 = vmatmul.mubr.msk.f32.vlgmr.msra.gmra.mxu1 %vm892_vm0, %v861_v9  ;;  %v8343_v13 = vld [vmem:[%s10804_s25 + $0x30] sm:$0xff]   ;;  %v8347_v18 = vld [vmem:[%s10804_s25 + $0x28] sm:$0xff]  }
  0xfa   : > { %978 = vmatprep.mubr.f32.mxu0 %v10743_v4  ;;  %1073 = vmatprep.mubr.f32.mxu1 %v10743_v4  ;;  %v8344_v14 = vld [vmem:[%s10804_s25 + $0xb0] sm:$0xff]   ;;  %v8348_v19 = vld [vmem:[%s10804_s25 + $0xa8] sm:$0xff]   ;;  %v864_v20 = vld [vmem:[%s10022_s28 + $0x18] sm:$0xff]  ;;  %p9573_p1 = pnand %p9572_p0, %p9566_p5 }
  0xfb   : > { %7985 = vmatpush3.bf16.msra.mxu0 %v8339_v7  ;;  %8019 = vmatpush3.bf16.msra.mxu1 %v8340_v8  ;;  %v863_v15 = vld [vmem:[%s10022_s28 + $0x10] sm:$0xff]  ;;  %v8349_v21 = vld [vmem:[%s10804_s25 + $0x60] sm:$0xff]   ;;  %v8353_v26 = vld [vmem:[%s10804_s25 + $0x58] sm:$0xff]  }
  0xfc   : > { %7986 = vmatprep.subr.bf16.mxu0 %v8341_v10  ;;  %8020 = vmatprep.subr.bf16.mxu1 %v8342_v12  ;;  %v8350_v22 = vld [vmem:[%s10804_s25 + $0xe0] sm:$0xff]   ;;  %v8354_v27 = vld [vmem:[%s10804_s25 + $0xd8] sm:$0xff]   ;;  %v8357_v30 = vld [vmem:[%s10804_s25 + $0x50] sm:$0xff]  }
  0xfd   : > { %7373 = vmatmul.mubr.msk.f32.gmra.mxu0 %vm892_vm0, %v862_v11  ;;  %7378 = vmatmul.mubr.msk.f32.gmra.mxu1 %vm892_vm0, %v862_v11  ;;  %v8351_v23 = vld [vmem:[%s10804_s25 + $0x20] sm:$0xff]   ;;  %v8355_v28 = vld [vmem:[%s10804_s25 + $0x18] sm:$0xff]   ;;  %v8358_v31 = vld [vmem:[%s10804_s25 + $0xd0] sm:$0xff]  }
  0xfe   : > { %984 = vmatprep.mubr.f32.mxu0 %v10743_v4  ;;  %1079 = vmatprep.mubr.f32.mxu1 %v10743_v4  ;;  %v8352_v24 = vld [vmem:[%s10804_s25 + $0xa0] sm:$0xff]   ;;  %v8356_v29 = vld [vmem:[%s10804_s25 + $0x98] sm:$0xff]   ;;  %v8359_v32 = vld [vmem:[%s10804_s25 + $0x10] sm:$0xff]  }
  0xff   : > { %7987 = vmatpush3.bf16.msra.mxu0 %v8343_v13  ;;  %8021 = vmatpush3.bf16.msra.mxu1 %v8344_v14  ;;  %v865_v25 = vld [vmem:[%s10022_s28 + $0x20] sm:$0xf]  ;;  %v8360_v33 = vld [vmem:[%s10804_s25 + $0x90] sm:$0xff]   ;;  %v8361_v34 = vld [vmem:[%s10804_s25 + $0x48] sm:$0xff]   ;;  %s9689_s28 = smov [#allocation3]  }
 0x100   : > { %7988 = vmatprep.subr.bf16.mxu0 %v8345_v16  ;;  %8022 = vmatprep.subr.bf16.mxu1 %v8346_v17  ;;  %v8362_v35 = vld [vmem:[%s10804_s25 + $0xc8] sm:$0xff]   ;;  %v8365_v38 = vld [vmem:[%s10804_s25 + $0x40] sm:$0xff]   ;;  %v8369_v42 = vld [vmem:[%s10806_s5 + $0x78] sm:$0xff]   ;;  %s845_s0 = sshll.u32 %s9689_s28, 4  ;;  %s846_s0 = int_to_ptr.vmem [resolvable:$true] %s845_s0 }
 0x101   : > { %7374 = vmatmul.mubr.msk.f32.gmra.mxu0 %vm892_vm0, %v863_v15  ;;  %7379 = vmatmul.mubr.msk.f32.gmra.mxu1 %vm892_vm0, %v863_v15  ;;  %v8363_v36 = vld [vmem:[%s10804_s25 + $0x8] sm:$0xff]   ;;  %v8366_v39 = vld [vmem:[%s10804_s25 + $0xc0] sm:$0xff]   ;;  %v8370_v43 = vld [vmem:[%s10806_s5 + $0xf8] sm:$0xff]  }
 0x102   : > { %990 = vmatprep.mubr.f32.mxu0 %v10743_v4  ;;  %1085 = vmatprep.mubr.f32.mxu1 %v10743_v4  ;;  %v8364_v37 = vld [vmem:[%s10804_s25 + $0x88] sm:$0xff]   ;;  %v8367_v40 = vld [vmem:[%s10804_s25] sm:$0xff]  }
 0x103   : > { %7989 = vmatpush3.bf16.msra.mxu0 %v8347_v18  ;;  %8023 = vmatpush3.bf16.msra.mxu1 %v8348_v19  ;;  %v8368_v41 = vld [vmem:[%s10804_s25 + $0x80] sm:$0xff]  }
 0x104   : > { %7990 = vmatprep.subr.bf16.mxu0 %v8349_v21  ;;  %8024 = vmatprep.subr.bf16.mxu1 %v8350_v22 }
 0x105   : > { %7375 = vmatmul.mubr.msk.f32.gmra.mxu0 %vm892_vm0, %v864_v20  ;;  %7380 = vmatmul.mubr.msk.f32.gmra.mxu1 %vm892_vm0, %v864_v20 }
 0x106   : > { %996 = vmatprep.mubr.f32.mxu0 %v10743_v4  ;;  %1091 = vmatprep.mubr.f32.mxu1 %v10743_v4 }
 0x107   : > { %7991 = vmatpush3.bf16.msra.mxu0 %v8351_v23  ;;  %8025 = vmatpush3.bf16.msra.mxu1 %v8352_v24 }
 0x108   : > { %7992 = vmatprep.subr.bf16.mxu0 %v8353_v26  ;;  %8026 = vmatprep.subr.bf16.mxu1 %v8354_v27 }
 0x109   : > { %7376 = vmatmul.mubr.msk.f32.gmra.mxu0 %vm892_vm0, %v865_v25  ;;  %7381 = vmatmul.mubr.msk.f32.gmra.mxu1 %vm892_vm0, %v865_v25 }
 0x10b   : > { %7993 = vmatpush3.bf16.msra.mxu0 %v8355_v28  ;;  %8027 = vmatpush3.bf16.msra.mxu1 %v8356_v29 }
 0x10c   : > { %7994 = vmatprep.subr.bf16.mxu0 %v8357_v30  ;;  %8028 = vmatprep.subr.bf16.mxu1 %v8358_v31 }
 0x10f   : > { %7995 = vmatpush3.bf16.msra.mxu0 %v8359_v32  ;;  %8029 = vmatpush3.bf16.msra.mxu1 %v8360_v33 }
 0x110   : > { %7996 = vmatprep.subr.bf16.mxu0 %v8361_v34  ;;  %8030 = vmatprep.subr.bf16.mxu1 %v8362_v35 }
 0x113   : > { %7997 = vmatpush3.bf16.msra.mxu0 %v8363_v36  ;;  %8031 = vmatpush3.bf16.msra.mxu1 %v8364_v37 }
 0x114   : > { %7998 = vmatprep.subr.bf16.mxu0 %v8365_v38  ;;  %8032 = vmatprep.subr.bf16.mxu1 %v8366_v39 }
 0x117   : > { %7999 = vmatpush3.bf16.msra.mxu0 %v8367_v40  ;;  %8033 = vmatpush3.bf16.msra.mxu1 %v8368_v41 }
 0x118   : > { %8052 = vmatprep.subr.bf16.mxu0 %v8369_v42  ;;  %8086 = vmatprep.subr.bf16.mxu1 %v8370_v43 }
 0x1b9   : > { %v974_v53 = vpop.f32.mrf.mxu0  ;;  %v1069_v54 = vpop.f32.mrf.mxu1 }
 0x1ba   : > { %v975_v57 = vadd.f32 %v974_v53, %v10155_v51  ;;  %v1070_v58 = vadd.f32 %v1069_v54, %v10158_v52  ;;  %v8371_v54 = vld [vmem:[%s10806_s5 + $0x38] sm:$0xff]  }
 0x1bb   : > { %v976_v59 = vpop.f32.mrf.mxu0  ;;  %v1071_v60 = vpop.f32.mrf.mxu1 }
 0x1bc   : > { %v977_v61 = vadd.f32 %v976_v59, %v10161_v55  ;;  %v1072_v62 = vadd.f32 %v1071_v60, %v10164_v56  ;;  %v1118_v1 = vmul.f32 0.01, %v975_v57  ;;  %v1120_v2 = vmul.f32 0.01, %v1070_v58 }
 0x1bd   : > { %v980_v63 = vpop.f32.mrf.mxu0  ;;  %v1075_v0 = vpop.f32.mrf.mxu1  ;;  %vm1098_vm1 = vcmp.ge.f32.partialorder %v975_v57, 0.0  ;;  %vm1100_vm2 = vcmp.ge.f32.partialorder %v1070_v58, 0.0 }
 0x1be   : > { %v981_v3 = vadd.f32 %v980_v63, %v10155_v51  ;;  %v1076_v5 = vadd.f32 %v1075_v0, %v10158_v52  ;;  %v1119_v6 = vmul.f32 0.01, %v977_v61  ;;  %vm1099_vm5 = vcmp.ge.f32.partialorder %v977_v61, 0.0  ;;  %v8374_v63 = vld [vmem:[%s10806_s5 + $0xf0] sm:$0xff]  }
 0x1bf   : > { %v982_v7 = vpop.f32.mrf.mxu0  ;;  %v1077_v8 = vpop.f32.mrf.mxu1  ;;  %v1121_v11 = vmul.f32 0.01, %v1072_v62  ;;  %v10174_v16 = vsel %vm1098_vm1, %v975_v57, %v1118_v1  ;;  %v10176_v17 = vsel %vm1100_vm2, %v1070_v58, %v1120_v2  ;;  %vm1101_vm6 = vcmp.ge.f32.partialorder %v1072_v62, 0.0  ;;  %v8372_v57 = vld [vmem:[%s10806_s5 + $0xb8] sm:$0xff]   ;;  %v8373_v58 = vld [vmem:[%s10806_s5 + $0x70] sm:$0xff]  }
 0x1c0   : > { %vm1102_vm3 = vcmp.ge.f32.partialorder %v981_v3, 0.0  ;;  %v1122_v9 = vmul.f32 0.01, %v981_v3  ;;  %vm1104_vm4 = vcmp.ge.f32.partialorder %v1076_v5, 0.0  ;;  %v1124_v10 = vmul.f32 0.01, %v1076_v5 }
 0x1c1   : > { %v983_v12 = vadd.f32 %v982_v7, %v10161_v55  ;;  %v1078_v13 = vadd.f32 %v1077_v8, %v10164_v56  ;;  %v986_v14 = vpop.f32.mrf.mxu0  ;;  %v1081_v15 = vpop.f32.mrf.mxu1  ;;  %10808 = vst [vmem:[#allocation53_spill] sm:$0xff] %v10174_v16  ;;  %10809 = vst [vmem:[#allocation54_spill] sm:$0xff] %v10176_v17  ;;  %v10189_v26 = vsel %vm1099_vm5, %v977_v61, %v1119_v6  ;;  %vm9687_vm5 = vmmov 0  }
 0x1c2   : > { %v10178_v18 = vsel %vm1102_vm3, %v981_v3, %v1122_v9  ;;  %v10180_v19 = vsel %vm1104_vm4, %v1076_v5, %v1124_v10  ;;  %v10183_v21 = vadd.f32 %v986_v14, %v10155_v51  ;;  %v10186_v25 = vadd.f32 %v1081_v15, %v10158_v52  ;;  %v8375_v10 = vld [vmem:[%s10806_s5 + $0x30] sm:$0xff]   ;;  %v8377_v15 = vld [vmem:[%s10806_s5 + $0x68] sm:$0xff]  }
 0x1c3   : > { %10810 = vst [vmem:[#allocation55_spill] sm:$0xff] %v10178_v18  ;;  %10811 = vst [vmem:[#allocation56_spill] sm:$0xff] %v10180_v19  ;;  %vm1103_vm7 = vcmp.ge.f32.partialorder %v983_v12, 0.0  ;;  %v1123_v20 = vmul.f32 0.01, %v983_v12  ;;  %v988_v22 = vpop.f32.mrf.mxu0  ;;  %v1083_v23 = vpop.f32.mrf.mxu1  ;;  %vm1105_vm8 = vcmp.ge.f32.partialorder %v1078_v13, 0.0  ;;  %v10193_v27 = vpack.c.bf16 %v10178_v18, %v10174_v16 }
 0x1c4   : > { %v1125_v24 = vmul.f32 0.01, %v1078_v13  ;;  %v989_v28 = vadd.f32 %v988_v22, %v10161_v55  ;;  %v1084_v29 = vadd.f32 %v1083_v23, %v10164_v56  ;;  %v10198_v32 = vsel %vm1101_vm6, %v1072_v62, %v1121_v11  ;;  %v8376_v11 = vld [vmem:[%s10806_s5 + $0xb0] sm:$0xff]  }
 0x1c5   : > { %v992_v30 = vpop.f32.mrf.mxu0  ;;  %v1087_v31 = vpop.f32.mrf.mxu1  ;;  %10812 = vst [vmem:[#allocation57_spill] sm:$0xff] %v10198_v32  ;;  %v10202_v33 = vpack.c.bf16 %v10180_v19, %v10176_v17  ;;  %v10208_v35 = vsel %vm1103_vm7, %v983_v12, %v1123_v20  ;;  %vm1106_vm9 = vcmp.ge.f32.partialorder %v10183_v21, 0.0  ;;  %v1126_v37 = vmul.f32 0.01, %v10183_v21 }
 0x1c6   : > { %v10205_v34 = vadd.f32 %v992_v30, %v10155_v51  ;;  %10813 = vst [vmem:[#allocation58_spill] sm:$0xff] %v10208_v35  ;;  %v10210_v36 = vsel %vm1105_vm8, %v1078_v13, %v1125_v24  ;;  %vm1107_vm10 = vcmp.ge.f32.partialorder %v989_v28, 0.0  ;;  %v1127_v38 = vmul.f32 0.01, %v989_v28 }
 0x1c7   : > { %10814 = vst [vmem:[#allocation59_spill] sm:$0xff] %v10210_v36  ;;  %v994_v39 = vpop.f32.mrf.mxu0  ;;  %v1089_v40 = vpop.f32.mrf.mxu1  ;;  %vm1108_vm11 = vcmp.ge.f32.partialorder %v10186_v25, 0.0  ;;  %vm1109_vm12 = vcmp.ge.f32.partialorder %v1084_v29, 0.0  ;;  %v1129_v41 = vmul.f32 0.01, %v1084_v29  ;;  %v1088_v42 = vadd.f32 %v1087_v31, %v10158_v52 }
 0x1c8   : > { %v995_v43 = vadd.f32 %v994_v39, %v10161_v55  ;;  %v1090_v44 = vadd.f32 %v1089_v40, %v10164_v56  ;;  %v10220_v48 = vpack.c.bf16 %v10208_v35, %v10189_v26  ;;  %v10224_v53 = vpack.c.bf16 %v10210_v36, %v10198_v32  ;;  %v8381_v39 = vld [vmem:[%s10806_s5 + $0x60] sm:$0xff]  }
 0x1c9   : > { %v998_v59 = vpop.f32.mrf.mxu0  ;;  %v1093_v60 = vpop.f32.mrf.mxu1  ;;  %v1128_v61 = vmul.f32 0.01, %v10186_v25  ;;  %vm1110_vm13 = vcmp.ge.f32.partialorder %v10205_v34, 0.0  ;;  %v1130_v62 = vmul.f32 0.01, %v10205_v34  ;;  %v10242_v0 = vsel %vm1107_vm10, %v989_v28, %v1127_v38  ;;  %v8382_v40 = vld [vmem:[%s10806_s5 + $0xe0] sm:$0xff]  }
 0x1ca   : > { %vm1111_vm14 = vcmp.ge.f32.partialorder %v995_v43, 0.0  ;;  %v1131_v1 = vmul.f32 0.01, %v995_v43  ;;  %vm1113_vm15 = vcmp.ge.f32.partialorder %v1090_v44, 0.0  ;;  %v1133_v2 = vmul.f32 0.01, %v1090_v44  ;;  %1465 = vmatprep.mubr.bf16.mxu0 %v10220_v48  ;;  %1521 = vmatprep.mubr.bf16.mxu1 %v10224_v53 }
 0x1cb   : > { %v1000_v3 = vpop.f32.mrf.mxu0  ;;  %v1095_v5 = vpop.f32.mrf.mxu1  ;;  %v1132_v6 = vmul.f32 0.01, %v1088_v42  ;;  %1466 = vmatmul.mubr.bf16.vlgmr.msra.gmra.mxu0 %v10193_v27  ;;  %1522 = vmatmul.mubr.bf16.vlgmr.msra.gmra.mxu1 %v10202_v33  ;;  %v999_v7 = vadd.f32 %v998_v59, %v10155_v51  ;;  %v1094_v8 = vadd.f32 %v1093_v60, %v10158_v52  ;;  %v10251_v9 = vsel %vm1109_vm12, %v1084_v29, %v1129_v41  ;;  %v8385_v59 = vld [vmem:[%s10806_s5 + $0x58] sm:$0xff]  }
 0x1cc   : > { %10815 = vst [vmem:[#allocation60_spill] sm:$0xff] %v10251_v9  ;;  %vm1112_vm0 = vcmp.ge.f32.partialorder %v1088_v42, 0.0  ;;  %8053 = vmatpush3.bf16.msra.mxu0 %v8371_v54  ;;  %8087 = vmatpush3.bf16.msra.mxu1 %v8372_v57  ;;  %v1001_v12 = vadd.f32 %v1000_v3, %v10161_v55  ;;  %v1096_v51 = vadd.f32 %v1095_v5, %v10164_v56  ;;  %v8378_v55 = vld [vmem:[%s10806_s5 + $0xe8] sm:$0xff]   ;;  %v8384_v54 = vld [vmem:[%s10806_s5 + $0xa0] sm:$0xff]   ;;  %v8386_v60 = vld [vmem:[%s10806_s5 + $0xd8] sm:$0xff]   ;;  %vm1926_vm6 = vcmask 523264  }
 0x1cd   : > { %v10262_v52 = vsel %vm1111_vm14, %v995_v43, %v1131_v1  ;;  %8054 = vmatprep.subr.bf16.mxu0 %v8373_v58  ;;  %8088 = vmatprep.subr.bf16.mxu1 %v8374_v63  ;;  %v10269_v14 = vsel %vm1113_vm15, %v1090_v44, %v1133_v2  ;;  %v10280_v56 = vsel %vm1106_vm9, %v10183_v21, %v1126_v37  ;;  %v1134_v29 = vmul.f32 0.01, %v999_v7  ;;  %v8383_v44 = vld [vmem:[%s10806_s5 + $0x20] sm:$0xff]   ;;  %v8387_v63 = vld [vmem:[%s10806_s5 + $0x18] sm:$0xff]   ;;  %v8389_v2 = vld [vmem:[%s10806_s5 + $0x50] sm:$0xff]  }
 0x1ce   : > { %v10266_v13 = vpack.c.bf16 %v10262_v52, %v10242_v0  ;;  %10816 = vst [vmem:[#allocation61_spill] sm:$0xff] %v10269_v14  ;;  %10817 = vst [vmem:[#allocation62_spill] sm:$0xff] %v10280_v56  ;;  %vm1115_vm1 = vcmp.ge.f32.partialorder %v1001_v12, 0.0  ;;  %v1135_v20 = vmul.f32 0.01, %v1001_v12  ;;  %vm1117_vm2 = vcmp.ge.f32.partialorder %v1096_v51, 0.0 }
 0x1cf   : > { %v1137_v22 = vmul.f32 0.01, %v1096_v51  ;;  %v10285_v23 = vpack.c.bf16 %v10269_v14, %v10251_v9  ;;  %v10290_v24 = vsel %vm1110_vm13, %v10205_v34, %v1130_v62  ;;  %v10295_v21 = vsel %vm1108_vm11, %v10186_v25, %v1128_v61  ;;  %v8379_v34 = vld [vmem:[%s10806_s5 + $0x28] sm:$0xff]   ;;  %v8388_v1 = vld [vmem:[%s10806_s5 + $0x98] sm:$0xff]   ;;  %v8390_v3 = vld [vmem:[%s10806_s5 + $0xd0] sm:$0xff]  }
 0x1d0   : > { %1473 = vmatprep.mubr.bf16.mxu0 %v10266_v13  ;;  %10818 = vst [vmem:[#allocation63_spill] sm:$0xff] %v10290_v24  ;;  %10819 = vst [vmem:[#allocation64_spill] sm:$0xff] %v10295_v21  ;;  %v10298_v28 = vsel %vm1112_vm0, %v1088_v42, %v1132_v6  ;;  %8055 = vmatpush3.bf16.msra.mxu0 %v8375_v10  ;;  %v1136_v30 = vmul.f32 0.01, %v1094_v8  ;;  %v8380_v25 = vld [vmem:[%s10806_s5 + $0xa8] sm:$0xff]   ;;  %v10311_v37 = vsel %vm1115_vm1, %v1001_v12, %v1135_v20  ;;  %v8391_v5 = vld [vmem:[%s10806_s5 + $0x10] sm:$0xff]  }
 0x1d1   : > { %10820 = vst [vmem:[#allocation65_spill] sm:$0xff] %v10298_v28  ;;  %8089 = vmatpush3.bf16.msra.mxu1 %v8376_v11  ;;  %v10302_v31 = vpack.c.bf16 %v10298_v28, %v10295_v21  ;;  %vm1114_vm3 = vcmp.ge.f32.partialorder %v999_v7, 0.0  ;;  %vm1116_vm4 = vcmp.ge.f32.partialorder %v1094_v8, 0.0  ;;  %1529 = vmatprep.mubr.bf16.mxu1 %v10285_v23  ;;  %v10316_v38 = vpack.c.bf16 %v10290_v24, %v10280_v56  ;;  %v8392_v6 = vld [vmem:[%s10806_s5 + $0x90] sm:$0xff]   ;;  %v8395_v10 = vld [vmem:[%s10806_s5 + $0x8] sm:$0xff]   ;;  %v8397_v12 = vld [vmem:[%s10806_s5 + $0x40] sm:$0xff]  }
 0x1d2   : > { %8056 = vmatprep.subr.bf16.mxu0 %v8377_v15  ;;  %v10325_v41 = vsel %vm1117_vm2, %v1096_v51, %v1137_v22  ;;  %8090 = vmatprep.subr.bf16.mxu1 %v8378_v55  ;;  %v10329_v42 = vpack.c.bf16 %v10311_v37, %v10311_v37  ;;  %v10344_v57 = vsel %vm1114_vm3, %v999_v7, %v1134_v29  ;;  %v8393_v7 = vld [vmem:[%s10806_s5 + $0x48] sm:$0xff]   ;;  %v8398_v51 = vld [vmem:[%s10806_s5 + $0xc0] sm:$0xff]   ;;  %vm2001_vm7 = vcmask 293888  }
 0x1d3   : > { %10821 = vst [vmem:[#allocation66_spill] sm:$0xff] %v10325_v41  ;;  %v10333_v43 = vpack.c.bf16 %v10325_v41, %v10325_v41  ;;  %1474 = vmatmul.mubr.bf16.gmra.mxu0 %v10316_v38  ;;  %1530 = vmatmul.mubr.bf16.gmra.mxu1 %v10302_v31  ;;  %v10347_v58 = vsel %vm1116_vm4, %v1094_v8, %v1136_v30  ;;  %v8394_v8 = vld [vmem:[%s10806_s5 + $0xc8] sm:$0xff]   ;;  %v8399_v15 = vld [vmem:[%s10806_s5] sm:$0xff]   ;;  %vm2014_vm8 = vcmask 289792  }
 0x1d4   : > { %8057 = vmatpush3.bf16.msra.mxu0 %v8379_v34  ;;  %10822 = vst [vmem:[#allocation67_spill] sm:$0xff] %v10347_v58  ;;  %1481 = vmatprep.mubr.bf16.mxu0 %v10329_v42  ;;  %v10359_v61 = vpack.c.bf16 %v10344_v57, %v10344_v57  ;;  %v10363_v62 = vpack.c.bf16 %v10347_v58, %v10347_v58  ;;  %v8396_v11 = vld [vmem:[%s10806_s5 + $0x88] sm:$0xff]   ;;  %v8400_v55 = vld [vmem:[%s10806_s5 + $0x80] sm:$0xff]  }
 0x1d5   : > { %8091 = vmatpush3.bf16.msra.mxu1 %v8380_v25  ;;  %8058 = vmatprep.subr.bf16.mxu0 %v8381_v39  ;;  %v7382_v29 = vld [vmem:[#allocation14] ss:$0 sm:$0xff] }
 0x1d6   : > { %8092 = vmatprep.subr.bf16.mxu1 %v8382_v40  ;;  %1537 = vmatprep.mubr.bf16.mxu1 %v10333_v43 }
 0x1d8   : > { %8059 = vmatpush3.bf16.msra.mxu0 %v8383_v44 }
 0x1d9   : > { %8093 = vmatpush3.bf16.msra.mxu1 %v8384_v54  ;;  %8060 = vmatprep.subr.bf16.mxu0 %v8385_v59 }
 0x1da   : > { %8094 = vmatprep.subr.bf16.mxu1 %v8386_v60 }
 0x1db   : > { %1482 = vmatmul.mubr.bf16.gmra.mxu0 %v10359_v61  ;;  %1538 = vmatmul.mubr.bf16.gmra.mxu1 %v10363_v62 }
 0x1dc   : > { %8061 = vmatpush3.bf16.msra.mxu0 %v8387_v63  ;;  %1840 = vmatprep.mubr.bf16.mxu0 %v10220_v48 }
 0x1dd   : > { %8095 = vmatpush3.bf16.msra.mxu1 %v8388_v1  ;;  %1896 = vmatprep.mubr.bf16.mxu1 %v10224_v53 }
 0x1de   : > { %8062 = vmatprep.subr.bf16.mxu0 %v8389_v2  ;;  %8096 = vmatprep.subr.bf16.mxu1 %v8390_v3 }
 0x1e0   : > { %8063 = vmatpush3.bf16.msra.mxu0 %v8391_v5 }
 0x1e1   : > { %8097 = vmatpush3.bf16.msra.mxu1 %v8392_v6  ;;  %8064 = vmatprep.subr.bf16.mxu0 %v8393_v7 }
 0x1e2   : > { %8098 = vmatprep.subr.bf16.mxu1 %v8394_v8 }
 0x1e4   : > { %8065 = vmatpush3.bf16.msra.mxu0 %v8395_v10 }
 0x1e5   : > { %8099 = vmatpush3.bf16.msra.mxu1 %v8396_v11  ;;  %8066 = vmatprep.subr.bf16.mxu0 %v8397_v12 }
 0x1e6   : > { %8100 = vmatprep.subr.bf16.mxu1 %v8398_v51 }
 0x1e8   : > { %8067 = vmatpush3.bf16.msra.mxu0 %v8399_v15 }
 0x1e9   : > { %8101 = vmatpush3.bf16.msra.mxu1 %v8400_v55  ;;  %8148 = vmatprep.subr.bf16.mxu0 %v10743_v4 }
 0x1eb   : > { %1841 = vmatmul.mubr.bf16.vlgmr.msra.gmra.mxu0 %v10193_v27 }
 0x1ec   : > { %1897 = vmatmul.mubr.bf16.vlgmr.msra.gmra.mxu1 %v10202_v33  ;;  %1848 = vmatprep.mubr.bf16.mxu0 %v10266_v13 }
 0x1ed   : > { %1904 = vmatprep.mubr.bf16.mxu1 %v10285_v23 }
 0x1f3   : > { %1849 = vmatmul.mubr.bf16.gmra.mxu0 %v10316_v38 }
 0x1f4   : > { %1905 = vmatmul.mubr.bf16.gmra.mxu1 %v10302_v31  ;;  %1856 = vmatprep.mubr.bf16.mxu0 %v10329_v42 }
 0x1f5   : > { %1912 = vmatprep.mubr.bf16.mxu1 %v10333_v43 }
 0x1fb   : > { %1857 = vmatmul.mubr.bf16.gmra.mxu0 %v10359_v61 }
 0x1fc   : > { %1913 = vmatmul.mubr.bf16.gmra.mxu1 %v10363_v62  ;;  %8154 = vmatprep.mubr.msk.bf16.mxu0 %vm9687_vm5, %v10743_v4 }
 0x28b   : > { %v8000_v20 = vpop.f32.mrf.mxu0  ;;  %v8034_v22 = vpop.f32.mrf.mxu1 }
 0x28d   : > { %v8001_v30 = vpop.f32.mrf.mxu0  ;;  %v8035_v34 = vpop.f32.mrf.mxu1 }
 0x28e   : > { %v8002_v25 = vadd.f32 %v8001_v30, %v8000_v20  ;;  %v8036_v39 = vadd.f32 %v8035_v34, %v8034_v22 }
 0x28f   : > { %v8003_v40 = vpop.f32.mrf.mxu0  ;;  %v8037_v44 = vpop.f32.mrf.mxu1 }
 0x290   : > { %v1468_v54 = vadd.f32 %v8002_v25, %v7382_v29 }
 0x291   : > { %v8004_v59 = vpop.f32.mrf.mxu0  ;;  %v8038_v60 = vpop.f32.mrf.mxu1 }
 0x292   : > { %v10424_v63 = vadd.f32 %v8036_v39, %v1468_v54  ;;  %v8005_v1 = vadd.f32 %v8004_v59, %v8003_v40  ;;  %v8039_v2 = vadd.f32 %v8038_v60, %v8037_v44 }
 0x293   : > { %v8006_v3 = vpop.f32.mrf.mxu0  ;;  %v8040_v5 = vpop.f32.mrf.mxu1 }
 0x294   : > { %v1471_v6 = vadd.f32 %v8005_v1, %v7382_v29 }
 0x295   : > { %v8007_v7 = vpop.f32.mrf.mxu0  ;;  %v8041_v8 = vpop.f32.mrf.mxu1 }
 0x296   : > { %v10426_v10 = vadd.f32 %v8039_v2, %v1471_v6  ;;  %v8008_v11 = vadd.f32 %v8007_v7, %v8006_v3  ;;  %v8042_v12 = vadd.f32 %v8041_v8, %v8040_v5 }
 0x297   : > { %v8009_v51 = vpop.f32.mrf.mxu0  ;;  %v8043_v15 = vpop.f32.mrf.mxu1 }
 0x298   : > { %v1476_v20 = vadd.f32 %v8008_v11, %v7382_v29 }
 0x299   : > { %v8010_v22 = vpop.f32.mrf.mxu0  ;;  %v8044_v30 = vpop.f32.mrf.mxu1 }
 0x29a   : > { %v10430_v34 = vadd.f32 %v8042_v12, %v1476_v20  ;;  %v8011_v25 = vadd.f32 %v8010_v22, %v8009_v51  ;;  %v8045_v39 = vadd.f32 %v8044_v30, %v8043_v15 }
 0x29b   : > { %v8012_v40 = vpop.f32.mrf.mxu0  ;;  %v8046_v44 = vpop.f32.mrf.mxu1 }
 0x29c   : > { %v1479_v54 = vadd.f32 %v8011_v25, %v7382_v29 }
 0x29d   : > { %v8013_v59 = vpop.f32.mrf.mxu0  ;;  %v8047_v60 = vpop.f32.mrf.mxu1 }
 0x29e   : > { %v10432_v1 = vadd.f32 %v8045_v39, %v1479_v54  ;;  %v8014_v2 = vadd.f32 %v8013_v59, %v8012_v40  ;;  %v8048_v3 = vadd.f32 %v8047_v60, %v8046_v44 }
 0x29f   : > { %v8015_v5 = vpop.f32.mrf.mxu0  ;;  %v8049_v6 = vpop.f32.mrf.mxu1 }
 0x2a0   : > { %v1484_v8 = vadd.f32 %v8014_v2, %v7382_v29 }
 0x2a1   : > { %v8016_v11 = vpop.f32.mrf.mxu0  ;;  %v8050_v12 = vpop.f32.mrf.mxu1 }
 0x2a2   : > { %v10436_v20 = vadd.f32 %v8048_v3, %v1484_v8 }
 0x2ab   : > { %v8068_v51 = vpop.f32.mrf.mxu0 }
 0x2ac   : > { %v8102_v15 = vpop.f32.mrf.mxu1 }
 0x2ad   : > { %v8069_v22 = vpop.f32.mrf.mxu0 }
 0x2ae   : > { %v8103_v30 = vpop.f32.mrf.mxu1 }
 0x2af   : > { %v8071_v25 = vpop.f32.mrf.mxu0 }
 0x2b0   : > { %v8105_v55 = vpop.f32.mrf.mxu1 }
 0x2b1   : > { %v8072_v39 = vpop.f32.mrf.mxu0 }
 0x2b2   : > { %v8106_v54 = vpop.f32.mrf.mxu1  ;;  %v8073_v35 = vadd.f32 %v8072_v39, %v8071_v25 }
 0x2b3   : > { %v8074_v40 = vpop.f32.mrf.mxu0 }
 0x2b4   : > { %v8108_v44 = vpop.f32.mrf.mxu1 }
 0x2b5   : > { %v8075_v59 = vpop.f32.mrf.mxu0 }
 0x2b6   : > { %v8109_v60 = vpop.f32.mrf.mxu1  ;;  %v8076_v32 = vadd.f32 %v8075_v59, %v8074_v40  ;;  %v8104_v59 = vadd.f32 %v8103_v30, %v8102_v15 }
 0x2b7   : > { %v8077_v5 = vpop.f32.mrf.mxu0  ;;  %v8110_v24 = vadd.f32 %v8109_v60, %v8108_v44 }
 0x2b8   : > { %v8111_v6 = vpop.f32.mrf.mxu1  ;;  %v1851_v58 = vadd.f32 %v8076_v32, %v7415_v45 }
 0x2b9   : > { %v8078_v7 = vpop.f32.mrf.mxu0 }
 0x2ba   : > { %v8112_v29 = vpop.f32.mrf.mxu1  ;;  %v8079_v12 = vadd.f32 %v8078_v7, %v8077_v5  ;;  %v8070_v5 = vadd.f32 %v8069_v22, %v8068_v51 }
 0x2bb   : > { %v8080_v2 = vpop.f32.mrf.mxu0  ;;  %v8113_v18 = vadd.f32 %v8112_v29, %v8111_v6 }
 0x2bc   : > { %v8114_v11 = vpop.f32.mrf.mxu1  ;;  %v1854_v41 = vadd.f32 %v8079_v12, %v7415_v45 }
 0x2bd   : > { %v8081_v3 = vpop.f32.mrf.mxu0 }
 0x2be   : > { %v8115_v8 = vpop.f32.mrf.mxu1  ;;  %v8082_v4 = vadd.f32 %v8081_v3, %v8080_v2  ;;  %v1910_v56 = vadd.f32 %v8113_v18, %v1854_v41 }
 0x2bf   : > { %v8083_v17 = vpop.f32.mrf.mxu0  ;;  %v8116_v36 = vadd.f32 %v8115_v8, %v8114_v11 }
 0x2c0   : > { %v8117_v19 = vpop.f32.mrf.mxu1  ;;  %v1859_v21 = vadd.f32 %v8082_v4, %v7415_v45  ;;  %v1907_v17 = vadd.f32 %v8110_v24, %v1851_v58  ;;  %v1846_v4 = vadd.f32 %v8073_v35, %v7415_v45  ;;  %v10824_v24 = vpack.c.bf16 %v10426_v10, %v10424_v63 }
 0x2c1   : > { %v8084_v28 = vpop.f32.mrf.mxu0  ;;  %v10823_v19 = vmov 0.0   ;;  %v1922_v35 = vpack.c.bf16 %v10436_v20, %v10436_v20 }
 0x2c2   : > { %v8118_v9 = vpop.f32.mrf.mxu1  ;;  %v1915_v14 = vadd.f32 %v8116_v36, %v1859_v21  ;;  %v1924_v40 = vpack.c.bf16 %v1910_v56, %v1907_v17  ;;  %v1843_v28 = vadd.f32 %v8070_v5, %v7415_v45  ;;  %v10825_v45 = vpack.c.bf16 %v10432_v1, %v10430_v34 }
 0x2c3   : > { %v8107_v9 = vadd.f32 %v8106_v54, %v8105_v55 }
 0x2c4   : > { %v1925_v16 = vpack.c.bf16 %v1915_v14, %v1915_v14  ;;  %v1940_v32 = vsel %vm1926_vm6, %v1924_v40, 0  ;;  %v1899_v14 = vadd.f32 %v8104_v59, %v1843_v28 }
 0x2c5   : > { %v1902_v36 = vadd.f32 %v8107_v9, %v1846_v4 }
 0x2c6   : > { %v1943_v7 = vsel %vm1926_vm6, %v1925_v16, 0 }
 0x2c7   : > { %8149 = vmatpush3.bf16.xpose.msra.mxu0 %v1943_v7  ;;  %v1923_v18 = vpack.c.bf16 %v1902_v36, %v1899_v14 }
 0x2c8   : > { %8150 = vmatprep.subr.bf16.mxu0 %v10823_v19 }
 0x2c9   : > { %v1937_v16 = vsel %vm1926_vm6, %v1923_v18, 0 }
 0x2cf   : > { %8151 = vmatpush3.bf16.xpose.msra.mxu0 %v1940_v32 }
 0x2d0   : > { %8152 = vmatprep.subr.bf16.mxu0 %v10823_v19 }
 0x2d7   : > { %8153 = vmatpush3.bf16.xpose.msra.mxu0 %v1937_v16 }
 0x2de   : > { %8155 = vmatmul.mubr.msk.bf16.vlgmr.msra.gmra.mxu0 %vm1926_vm6, %v10824_v24 }
 0x2df   : > { %8158 = vmatprep.mubr.msk.bf16.mxu0 %vm9687_vm5, %v10823_v19 }
 0x2e6   : > { %8159 = vmatmul.mubr.msk.bf16.gmra.mxu0 %vm1926_vm6, %v10825_v45 }
 0x2e7   : > { %8162 = vmatprep.mubr.msk.bf16.mxu0 %vm9687_vm5, %v10823_v19 }
 0x2ee   : > { %8163 = vmatmul.mubr.msk.bf16.gmra.mxu0 %vm1926_vm6, %v1922_v35 }
 0x39e   : > { %v1979_v56 = vpop.f32.mrf.mxu0 }
 0x39f   : > { %v2002_v21 = vsel %vm2001_vm7, %v1979_v56, -inf }
 0x3a0   : > { %2003 = vmax.xlane.f32.xlu0 %v2002_v21  ;;  %v8156_v41 = vpop.f32.mrf.mxu0 }
 0x3a2   : > { %v1982_v58 = vpop.f32.mrf.mxu0 }
 0x3a3   : > { %v2005_v63 = vsel %vm2001_vm7, %v1982_v58, -inf }
 0x3a4   : > { %2006 = vmax.xlane.f32.xlu0 %v2005_v63  ;;  %v8157_v10 = vpop.f32.mrf.mxu0 }
 0x3a6   : > { %v1987_v55 = vpop.f32.mrf.mxu0 }
 0x3a7   : > { %v2008_v34 = vsel %vm2001_vm7, %v1987_v55, -inf }
 0x3a8   : > { %2009 = vmax.xlane.f32.xlu1 %v2008_v34  ;;  %v8160_v1 = vpop.f32.mrf.mxu0 }
 0x3aa   : > { %v1990_v51 = vpop.f32.mrf.mxu0 }
 0x3ab   : > { %v2011_v20 = vsel %vm2001_vm7, %v1990_v51, -inf }
 0x3ac   : > { %2012 = vmax.xlane.f32.xlu1 %v2011_v20  ;;  %v8161_v15 = vpop.f32.mrf.mxu0 }
 0x3ae   : > { %v1995_v22 = vpop.f32.mrf.mxu0 }
 0x3af   : > { %v2015_v30 = vsel %vm2014_vm8, %v1995_v22, -inf }
 0x3b0   : > { %2016 = vmax.xlane.f32.xlu0 %v2015_v30  ;;  %v8164_v25 = vpop.f32.mrf.mxu0 }
 0x3b2   : > { %v1998_v39 = vpop.f32.mrf.mxu0 }
 0x3b4   : > { %v8165_v54 = vpop.f32.mrf.mxu0 }
 0x429   : > { %v2004_v44 = vpop.xlane.xlu0 %2003 }
 0x42a   : > { %v2018_v60 = vsub.f32 %v1979_v56, %v2004_v44 }
 0x42c   : > { %v2023_v6 = vmul.f32 1.442695, %v2018_v60 }
 0x42d   : > { %v2007_v29 = vpop.xlane.xlu0 %2006 }
 0x42e   : > { %8401 = vpow2.f32 %v2023_v6  ;;  %v2019_v2 = vsub.f32 %v1982_v58, %v2007_v29 }
 0x430   : > { %v2025_v11 = vmul.f32 1.442695, %v2019_v2 }
 0x431   : > { %v2010_v3 = vpop.xlane.xlu1 %2009 }
 0x432   : > { %8403 = vpow2.f32 %v2025_v11  ;;  %v2020_v8 = vsub.f32 %v1987_v55, %v2010_v3 }
 0x434   : > { %v2027_v12 = vmul.f32 1.442695, %v2020_v8 }
 0x435   : > { %v2013_v7 = vpop.xlane.xlu1 %2012 }
 0x436   : > { %8405 = vpow2.f32 %v2027_v12  ;;  %v2021_v5 = vsub.f32 %v1990_v51, %v2013_v7 }
 0x438   : > { %v2029_v17 = vmul.f32 1.442695, %v2021_v5 }
 0x439   : > { %v2017_v19 = vpop.xlane.xlu0 %2016 }
 0x43a   : > { %8407 = vpow2.f32 %v2029_v17  ;;  %v2022_v4 = vsub.f32 %v1995_v22, %v2017_v19 }
 0x43b   : > { %v8402_v40 = vpop.eup %8401 }
 0x43c   : > { %v2031_v28 = vmul.f32 1.442695, %v2022_v4  ;;  %v2033_v9 = vsel %vm2001_vm7, %v8402_v40, 0.0 }
 0x43d   : > { %2034 = vadd.xlane.f32.xlu1 %v2033_v9 }
 0x43e   : > { %8409 = vpow2.f32 %v2031_v28 }
 0x43f   : > { %v8404_v59 = vpop.eup %8403 }
 0x440   : > { %v2036_v36 = vsel %vm2001_vm7, %v8404_v59, 0.0 }
 0x441   : > { %2037 = vadd.xlane.f32.xlu0 %v2036_v36 }
 0x443   : > { %v8406_v32 = vpop.eup %8405 }
 0x444   : > { %v2039_v14 = vsel %vm2001_vm7, %v8406_v32, 0.0 }
 0x445   : > { %2040 = vadd.xlane.f32.xlu1 %v2039_v14 }
 0x447   : > { %v8408_v18 = vpop.eup %8407 }
 0x448   : > { %v2042_v16 = vsel %vm2001_vm7, %v8408_v18, 0.0 }
 0x449   : > { %2043 = vadd.xlane.f32.xlu0 %v2042_v16 }
 0x44b   : > { %v8410_v24 = vpop.eup %8409 }
 0x44c   : > { %v2045_v45 = vsel %vm2014_vm8, %v8410_v24, 0.0 }
 0x44d   : > { %2046 = vadd.xlane.f32.xlu1 %v2045_v45 }
 0x44e   : > { %9576 = shalt.err (!%p9573_p1)  }
 0x44f   : > { %836 = dma.hbm_to_vmem [thread:$0]  %s10735_s20, 16384, %s834_s11, [#allocation5] }
 0x450   : > { %s9585_s7 = scalar_lea.vmem %s846_s0, 8192  ;;  %p9590_p7 = scmp.lt.s32.totalorder %s846_s0, %s846_s0 }
 0x451   : > { %p9586_p4 = scmp.ne.s32.totalorder %s846_s0, %s9585_s7  ;;  %p9591_p8 = scmp.lt.s32.totalorder %s9585_s7, %s9585_s7 }
 0x453   : > { %p9592_p9 = por %p9591_p8, %p9590_p7 }
 0x455   : > { %p9593_p10 = pnand %p9592_p9, %p9586_p4 }
 0x457   : > { %9596 = shalt.err (!%p9593_p10)  }
 0x458   : > { %848 = dma.hbm_to_vmem [thread:$0]  %s10736_s21, 8192, %s846_s0, [#allocation5 + $0x1] }
 0x459   : > { %s9690_s4 = smov [#allocation4]  }
 0x45a   : > { %s857_s3 = sshll.u32 %s9690_s4, 4  ;;  %s858_s3 = int_to_ptr.vmem [resolvable:$true] %s857_s3 }
 0x45b   : > { %s9605_s30 = scalar_lea.vmem %s858_s3, 36864  ;;  %p9610_p11 = scmp.lt.s32.totalorder %s858_s3, %s858_s3 }
 0x45c   : > { %p9606_p6 = scmp.ne.s32.totalorder %s858_s3, %s9605_s30  ;;  %p9611_p12 = scmp.lt.s32.totalorder %s9605_s30, %s9605_s30 }
 0x45e   : > { %p9612_p13 = por %p9611_p12, %p9610_p11 }
 0x460   : > { %p9613_p5 = pnand %p9612_p13, %p9606_p6 }
 0x462   : > { %9616 = shalt.err (!%p9613_p5)  }
 0x463   : > { %860 = dma.hbm_to_vmem [thread:$0]  %s10737_s22, 36864, %s858_s3, [#allocation5 + $0x2] }
 0x4c6   : > { %v2035_v35 = vpop.xlane.xlu1 %2034 }
 0x4c7   : > { %8411 = vrcp.f32 %v2035_v35 }
 0x4ca   : > { %v2038_v56 = vpop.xlane.xlu0 %2037 }
 0x4cb   : > { %8413 = vrcp.f32 %v2038_v56 }
 0x4ce   : > { %v2041_v21 = vpop.xlane.xlu1 %2040 }
 0x4cf   : > { %8415 = vrcp.f32 %v2041_v21 }
 0x4d2   : > { %v2044_v41 = vpop.xlane.xlu0 %2043 }
 0x4d3   : > { %8417 = vrcp.f32 %v2044_v41 }
 0x4d4   : > { %v8412_v58 = vpop.eup %8411 }
 0x4d5   : > { %v10477_v63 = vmul.f32 %v8412_v58, %v8402_v40 }
 0x4d6   : > { %v2047_v10 = vpop.xlane.xlu1 %2046 }
 0x4d7   : > { %8419 = vrcp.f32 %v2047_v10 }
 0x4d8   : > { %v8414_v55 = vpop.eup %8413 }
 0x4d9   : > { %v10479_v34 = vmul.f32 %v8414_v55, %v8404_v59 }
 0x4dc   : > { %v8416_v1 = vpop.eup %8415 }
 0x4dd   : > { %v10481_v51 = vmul.f32 %v8416_v1, %v8406_v32 }
 0x4e0   : > { %v8418_v20 = vpop.eup %8417 }
 0x4e1   : > { %v10483_v15 = vmul.f32 %v8418_v20, %v8408_v18 }
 0x4e4   : > { %v8420_v22 = vpop.eup %8419 }
 0x4e5   : > { %v10485_v30 = vmul.f32 %v8420_v22, %v8410_v24 }
 0x4e6   : > { %9657 = dma.done.wait [#allocation5], 16384 }
 0x4e7   : > { %9658 = vsyncadd [#allocation5], 4294950912  ;;  %2884 = vmatprep.mubr.bf16.mxu1 %v10220_v48  ;;  %2945 = vmatprep.mubr.bf16.mxu0 %v10224_v53  ;;  %v8421_v25 = vld [vmem:[#allocation2 + $0xe4] ss:$16 sps:$4 sm:$0xff]   ;;  %v8425_v54 = vld [vmem:[#allocation2 + $0xe0] ss:$16 sps:$4 sm:$0xff]  }
 0x4e8   : > { %v8423_v39 = vld [vmem:[#allocation2 + $0x2e4] ss:$16 sps:$4 sm:$0xff]   ;;  %2852 = vmatprep.subr.bf16.mxu1 %v8421_v25  ;;  %v8426_v44 = vld [vmem:[#allocation2 + $0x2e0] ss:$16 sps:$4 sm:$0xff]   ;;  %vm3120_vm9 = vcmask 1041408   ;;  %s3255_s28 = sld [smem:[#allocation6]] }
 0x4e9   : > { %2913 = vmatprep.subr.bf16.mxu0 %v8423_v39  ;;  %v8427_v60 = vld [vmem:[#allocation2 + $0xc4] ss:$16 sps:$4 sm:$0xff]   ;;  %2853 = vmatpush1.bf16.msra.mxu1 %v8425_v54  ;;  %v8431_v29 = vld [vmem:[#allocation2 + $0xc0] ss:$16 sps:$4 sm:$0xff]  }
 0x4ea   : > { %2914 = vmatpush1.bf16.msra.mxu0 %v8426_v44  ;;  %v8429_v6 = vld [vmem:[#allocation2 + $0x2c4] ss:$16 sps:$4 sm:$0xff]   ;;  %2854 = vmatprep.subr.bf16.mxu1 %v8427_v60  ;;  %v8432_v2 = vld [vmem:[#allocation2 + $0x2c0] ss:$16 sps:$4 sm:$0xff]  }
 0x4eb   : > { %2915 = vmatprep.subr.bf16.mxu0 %v8429_v6  ;;  %v8433_v11 = vld [vmem:[#allocation2 + $0xa4] ss:$16 sps:$4 sm:$0xff]   ;;  %v8437_v8 = vld [vmem:[#allocation2 + $0xa0] ss:$16 sps:$4 sm:$0xff]  }
 0x4ec   : > { %v8435_v3 = vld [vmem:[#allocation2 + $0x2a4] ss:$16 sps:$4 sm:$0xff]   ;;  %v8438_v12 = vld [vmem:[#allocation2 + $0x2a0] ss:$16 sps:$4 sm:$0xff]  }
 0x4ed   : > { %2855 = vmatpush1.bf16.msra.mxu1 %v8431_v29  ;;  %v8439_v7 = vld [vmem:[#allocation2 + $0x84] ss:$16 sps:$4 sm:$0xff]   ;;  %v8443_v17 = vld [vmem:[#allocation2 + $0x80] ss:$16 sps:$4 sm:$0xff]  }
 0x4ee   : > { %2916 = vmatpush1.bf16.msra.mxu0 %v8432_v2  ;;  %2856 = vmatprep.subr.bf16.mxu1 %v8433_v11  ;;  %v8441_v5 = vld [vmem:[#allocation2 + $0x284] ss:$16 sps:$4 sm:$0xff]   ;;  %v8444_v19 = vld [vmem:[#allocation2 + $0x280] ss:$16 sps:$4 sm:$0xff]  }
 0x4ef   : > { %2917 = vmatprep.subr.bf16.mxu0 %v8435_v3  ;;  %v8445_v4 = vld [vmem:[#allocation2 + $0x64] ss:$16 sps:$4 sm:$0xff]   ;;  %v8449_v28 = vld [vmem:[#allocation2 + $0x60] ss:$16 sps:$4 sm:$0xff]  }
 0x4f0   : > { %v8447_v40 = vld [vmem:[#allocation2 + $0x264] ss:$16 sps:$4 sm:$0xff]   ;;  %v8450_v9 = vld [vmem:[#allocation2 + $0x260] ss:$16 sps:$4 sm:$0xff]  }
 0x4f1   : > { %2857 = vmatpush1.bf16.msra.mxu1 %v8437_v8  ;;  %v8451_v59 = vld [vmem:[#allocation2 + $0x44] ss:$16 sps:$4 sm:$0xff]   ;;  %v8455_v32 = vld [vmem:[#allocation2 + $0x40] ss:$16 sps:$4 sm:$0xff]  }
 0x4f2   : > { %2918 = vmatpush1.bf16.msra.mxu0 %v8438_v12  ;;  %2858 = vmatprep.subr.bf16.mxu1 %v8439_v7  ;;  %v8453_v36 = vld [vmem:[#allocation2 + $0x244] ss:$16 sps:$4 sm:$0xff]   ;;  %v8456_v14 = vld [vmem:[#allocation2 + $0x240] ss:$16 sps:$4 sm:$0xff]  }
 0x4f3   : > { %2919 = vmatprep.subr.bf16.mxu0 %v8441_v5  ;;  %v8457_v18 = vld [vmem:[#allocation2 + $0x24] ss:$16 sps:$4 sm:$0xff]   ;;  %v8461_v24 = vld [vmem:[#allocation2 + $0x20] ss:$16 sps:$4 sm:$0xff]  }
 0x4f4   : > { %v8459_v16 = vld [vmem:[#allocation2 + $0x224] ss:$16 sps:$4 sm:$0xff]   ;;  %v8462_v45 = vld [vmem:[#allocation2 + $0x220] ss:$16 sps:$4 sm:$0xff]  }
 0x4f5   : > { %2859 = vmatpush1.bf16.msra.mxu1 %v8443_v17  ;;  %v8463_v35 = vld [vmem:[#allocation2 + $0x4] ss:$16 sps:$4 sm:$0xff]   ;;  %v8467_v21 = vld [vmem:[#allocation2] ss:$16 sps:$4 sm:$0xff]  }
 0x4f6   : > { %2920 = vmatpush1.bf16.msra.mxu0 %v8444_v19  ;;  %2860 = vmatprep.subr.bf16.mxu1 %v8445_v4  ;;  %v8465_v56 = vld [vmem:[#allocation2 + $0x204] ss:$16 sps:$4 sm:$0xff]   ;;  %v8468_v41 = vld [vmem:[#allocation2 + $0x200] ss:$16 sps:$4 sm:$0xff]  }
 0x4f7   : > { %2921 = vmatprep.subr.bf16.mxu0 %v8447_v40  ;;  %v8469_v58 = vld [vmem:[#allocation2 + $0x1e4] ss:$16 sps:$4 sm:$0xff]   ;;  %v8473_v55 = vld [vmem:[#allocation2 + $0x1e0] ss:$16 sps:$4 sm:$0xff]  }
 0x4f8   : > { %v8471_v10 = vld [vmem:[#allocation2 + $0x3e4] ss:$16 sps:$4 sm:$0xff]   ;;  %v8474_v1 = vld [vmem:[#allocation2 + $0x3e0] ss:$16 sps:$4 sm:$0xff]  }
 0x4f9   : > { %2861 = vmatpush1.bf16.msra.mxu1 %v8449_v28  ;;  %v8475_v20 = vld [vmem:[#allocation2 + $0x1c4] ss:$16 sps:$4 sm:$0xff]   ;;  %v8479_v25 = vld [vmem:[#allocation2 + $0x1c0] ss:$16 sps:$4 sm:$0xff]  }
 0x4fa   : > { %2922 = vmatpush1.bf16.msra.mxu0 %v8450_v9  ;;  %2862 = vmatprep.subr.bf16.mxu1 %v8451_v59  ;;  %v8477_v22 = vld [vmem:[#allocation2 + $0x3c4] ss:$16 sps:$4 sm:$0xff]   ;;  %v8480_v39 = vld [vmem:[#allocation2 + $0x3c0] ss:$16 sps:$4 sm:$0xff]  }
 0x4fb   : > { %2923 = vmatprep.subr.bf16.mxu0 %v8453_v36  ;;  %v8481_v54 = vld [vmem:[#allocation2 + $0x1a4] ss:$16 sps:$4 sm:$0xff]   ;;  %v8485_v60 = vld [vmem:[#allocation2 + $0x1a0] ss:$16 sps:$4 sm:$0xff]  }
 0x4fc   : > { %v8483_v44 = vld [vmem:[#allocation2 + $0x3a4] ss:$16 sps:$4 sm:$0xff]   ;;  %v8486_v6 = vld [vmem:[#allocation2 + $0x3a0] ss:$16 sps:$4 sm:$0xff]  }
 0x4fd   : > { %2863 = vmatpush1.bf16.msra.mxu1 %v8455_v32  ;;  %v8487_v29 = vld [vmem:[#allocation2 + $0x184] ss:$16 sps:$4 sm:$0xff]   ;;  %v8491_v11 = vld [vmem:[#allocation2 + $0x180] ss:$16 sps:$4 sm:$0xff]  }
 0x4fe   : > { %2924 = vmatpush1.bf16.msra.mxu0 %v8456_v14  ;;  %2864 = vmatprep.subr.bf16.mxu1 %v8457_v18  ;;  %v8489_v2 = vld [vmem:[#allocation2 + $0x384] ss:$16 sps:$4 sm:$0xff]   ;;  %v8492_v3 = vld [vmem:[#allocation2 + $0x380] ss:$16 sps:$4 sm:$0xff]  }
 0x4ff   : > { %2925 = vmatprep.subr.bf16.mxu0 %v8459_v16  ;;  %v8493_v8 = vld [vmem:[#allocation2 + $0x164] ss:$16 sps:$4 sm:$0xff]   ;;  %v8497_v7 = vld [vmem:[#allocation2 + $0x160] ss:$16 sps:$4 sm:$0xff]  }
 0x500   : > { %v8495_v12 = vld [vmem:[#allocation2 + $0x364] ss:$16 sps:$4 sm:$0xff]   ;;  %v8498_v5 = vld [vmem:[#allocation2 + $0x360] ss:$16 sps:$4 sm:$0xff]  }
 0x501   : > { %2865 = vmatpush1.bf16.msra.mxu1 %v8461_v24  ;;  %v8499_v17 = vld [vmem:[#allocation2 + $0x144] ss:$16 sps:$4 sm:$0xff]   ;;  %v8503_v4 = vld [vmem:[#allocation2 + $0x140] ss:$16 sps:$4 sm:$0xff]   ;;  %v8519_v24 = vld [vmem:[#allocation2 + $0xec] ss:$16 sps:$4 sm:$0xff]  }
 0x502   : > { %2926 = vmatpush1.bf16.msra.mxu0 %v8462_v45  ;;  %2866 = vmatprep.subr.bf16.mxu1 %v8463_v35  ;;  %v8501_v19 = vld [vmem:[#allocation2 + $0x344] ss:$16 sps:$4 sm:$0xff]   ;;  %v8504_v40 = vld [vmem:[#allocation2 + $0x340] ss:$16 sps:$4 sm:$0xff]   ;;  %v8522_v45 = vld [vmem:[#allocation2 + $0x2ec] ss:$16 sps:$4 sm:$0xff]  }
 0x503   : > { %2927 = vmatprep.subr.bf16.mxu0 %v8465_v56  ;;  %v8505_v28 = vld [vmem:[#allocation2 + $0x124] ss:$16 sps:$4 sm:$0xff]   ;;  %v8509_v59 = vld [vmem:[#allocation2 + $0x120] ss:$16 sps:$4 sm:$0xff]   ;;  %v8517_v35 = vld [vmem:[#allocation2 + $0xe8] ss:$16 sps:$4 sm:$0xff]  }
 0x504   : > { %v8507_v9 = vld [vmem:[#allocation2 + $0x324] ss:$16 sps:$4 sm:$0xff]   ;;  %v8510_v36 = vld [vmem:[#allocation2 + $0x320] ss:$16 sps:$4 sm:$0xff]   ;;  %v8520_v56 = vld [vmem:[#allocation2 + $0x2e8] ss:$16 sps:$4 sm:$0xff]  }
 0x505   : > { %2867 = vmatpush1.bf16.msra.mxu1 %v8467_v21  ;;  %v8511_v32 = vld [vmem:[#allocation2 + $0x104] ss:$16 sps:$4 sm:$0xff]   ;;  %v8515_v18 = vld [vmem:[#allocation2 + $0x100] ss:$16 sps:$4 sm:$0xff]   ;;  %v8525_v21 = vld [vmem:[#allocation2 + $0xcc] ss:$16 sps:$4 sm:$0xff]  }
 0x506   : > { %2928 = vmatpush1.bf16.msra.mxu0 %v8468_v41  ;;  %2868 = vmatprep.subr.bf16.mxu1 %v8469_v58  ;;  %v8513_v14 = vld [vmem:[#allocation2 + $0x304] ss:$16 sps:$4 sm:$0xff]   ;;  %v8516_v16 = vld [vmem:[#allocation2 + $0x300] ss:$16 sps:$4 sm:$0xff]   ;;  %v8528_v41 = vld [vmem:[#allocation2 + $0x2cc] ss:$16 sps:$4 sm:$0xff]  }
 0x507   : > { %2929 = vmatprep.subr.bf16.mxu0 %v8471_v10  ;;  %v8523_v58 = vld [vmem:[#allocation2 + $0xc8] ss:$16 sps:$4 sm:$0xff]  }
 0x508   : > { %v8526_v10 = vld [vmem:[#allocation2 + $0x2c8] ss:$16 sps:$4 sm:$0xff]  }
 0x509   : > { %2869 = vmatpush2.bf16.msra.mxu1 %v8473_v55  ;;  %v8531_v55 = vld [vmem:[#allocation2 + $0xac] ss:$16 sps:$4 sm:$0xff]  }
 0x50a   : > { %2930 = vmatpush2.bf16.msra.mxu0 %v8474_v1  ;;  %2870 = vmatprep.subr.bf16.mxu1 %v8475_v20  ;;  %v8534_v1 = vld [vmem:[#allocation2 + $0x2ac] ss:$16 sps:$4 sm:$0xff]   ;;  %v8529_v20 = vld [vmem:[#allocation2 + $0xa8] ss:$16 sps:$4 sm:$0xff]  }
 0x50b   : > { %2931 = vmatprep.subr.bf16.mxu0 %v8477_v22  ;;  %v8532_v22 = vld [vmem:[#allocation2 + $0x2a8] ss:$16 sps:$4 sm:$0xff]  }
 0x50d   : > { %2871 = vmatpush2.bf16.msra.mxu1 %v8479_v25  ;;  %v8537_v25 = vld [vmem:[#allocation2 + $0x8c] ss:$16 sps:$4 sm:$0xff]  }
 0x50e   : > { %2932 = vmatpush2.bf16.msra.mxu0 %v8480_v39  ;;  %2872 = vmatprep.subr.bf16.mxu1 %v8481_v54  ;;  %v8540_v39 = vld [vmem:[#allocation2 + $0x28c] ss:$16 sps:$4 sm:$0xff]   ;;  %v8535_v54 = vld [vmem:[#allocation2 + $0x88] ss:$16 sps:$4 sm:$0xff]  }
 0x50f   : > { %2933 = vmatprep.subr.bf16.mxu0 %v8483_v44  ;;  %v8538_v44 = vld [vmem:[#allocation2 + $0x288] ss:$16 sps:$4 sm:$0xff]  }
 0x511   : > { %2873 = vmatpush2.bf16.msra.mxu1 %v8485_v60  ;;  %v8543_v60 = vld [vmem:[#allocation2 + $0x6c] ss:$16 sps:$4 sm:$0xff]  }
 0x512   : > { %2934 = vmatpush2.bf16.msra.mxu0 %v8486_v6  ;;  %2874 = vmatprep.subr.bf16.mxu1 %v8487_v29  ;;  %v8546_v6 = vld [vmem:[#allocation2 + $0x26c] ss:$16 sps:$4 sm:$0xff]   ;;  %v8541_v29 = vld [vmem:[#allocation2 + $0x68] ss:$16 sps:$4 sm:$0xff]  }
 0x513   : > { %2935 = vmatprep.subr.bf16.mxu0 %v8489_v2  ;;  %v8544_v2 = vld [vmem:[#allocation2 + $0x268] ss:$16 sps:$4 sm:$0xff]  }
 0x515   : > { %2875 = vmatpush2.bf16.msra.mxu1 %v8491_v11  ;;  %v8549_v11 = vld [vmem:[#allocation2 + $0x4c] ss:$16 sps:$4 sm:$0xff]  }
 0x516   : > { %2936 = vmatpush2.bf16.msra.mxu0 %v8492_v3  ;;  %2876 = vmatprep.subr.bf16.mxu1 %v8493_v8  ;;  %v8552_v3 = vld [vmem:[#allocation2 + $0x24c] ss:$16 sps:$4 sm:$0xff]   ;;  %v8547_v8 = vld [vmem:[#allocation2 + $0x48] ss:$16 sps:$4 sm:$0xff]  }
 0x517   : > { %2937 = vmatprep.subr.bf16.mxu0 %v8495_v12  ;;  %v8550_v12 = vld [vmem:[#allocation2 + $0x248] ss:$16 sps:$4 sm:$0xff]  }
 0x519   : > { %2877 = vmatpush2.bf16.msra.mxu1 %v8497_v7  ;;  %v8555_v7 = vld [vmem:[#allocation2 + $0x2c] ss:$16 sps:$4 sm:$0xff]  }
 0x51a   : > { %2938 = vmatpush2.bf16.msra.mxu0 %v8498_v5  ;;  %2878 = vmatprep.subr.bf16.mxu1 %v8499_v17  ;;  %v8558_v5 = vld [vmem:[#allocation2 + $0x22c] ss:$16 sps:$4 sm:$0xff]   ;;  %v8553_v17 = vld [vmem:[#allocation2 + $0x28] ss:$16 sps:$4 sm:$0xff]  }
 0x51b   : > { %2939 = vmatprep.subr.bf16.mxu0 %v8501_v19  ;;  %v8556_v19 = vld [vmem:[#allocation2 + $0x228] ss:$16 sps:$4 sm:$0xff]  }
 0x51d   : > { %2879 = vmatpush2.bf16.msra.mxu1 %v8503_v4  ;;  %v8561_v4 = vld [vmem:[#allocation2 + $0xc] ss:$16 sps:$4 sm:$0xff]  }
 0x51e   : > { %2940 = vmatpush2.bf16.msra.mxu0 %v8504_v40  ;;  %2880 = vmatprep.subr.bf16.mxu1 %v8505_v28  ;;  %v8564_v40 = vld [vmem:[#allocation2 + $0x20c] ss:$16 sps:$4 sm:$0xff]   ;;  %v8559_v28 = vld [vmem:[#allocation2 + $0x8] ss:$16 sps:$4 sm:$0xff]  }
 0x51f   : > { %2941 = vmatprep.subr.bf16.mxu0 %v8507_v9  ;;  %v8562_v9 = vld [vmem:[#allocation2 + $0x208] ss:$16 sps:$4 sm:$0xff]  }
 0x521   : > { %2881 = vmatpush2.bf16.msra.mxu1 %v8509_v59  ;;  %v8567_v59 = vld [vmem:[#allocation2 + $0x1ec] ss:$16 sps:$4 sm:$0xff]  }
 0x522   : > { %2942 = vmatpush2.bf16.msra.mxu0 %v8510_v36  ;;  %2882 = vmatprep.subr.bf16.mxu1 %v8511_v32  ;;  %v8570_v36 = vld [vmem:[#allocation2 + $0x3ec] ss:$16 sps:$4 sm:$0xff]  }
 0x523   : > { %2943 = vmatprep.subr.bf16.mxu0 %v8513_v14  ;;  %v8573_v32 = vld [vmem:[#allocation2 + $0x1cc] ss:$16 sps:$4 sm:$0xff]  }
 0x524   : > { %v8576_v14 = vld [vmem:[#allocation2 + $0x3cc] ss:$16 sps:$4 sm:$0xff]  }
 0x525   : > { %2883 = vmatpush2.bf16.msra.mxu1 %v8515_v18  ;;  %v8571_v18 = vld [vmem:[#allocation2 + $0x1c8] ss:$16 sps:$4 sm:$0xff]  }
 0x526   : > { %2944 = vmatpush2.bf16.msra.mxu0 %v8516_v16  ;;  %2974 = vmatprep.subr.bf16.mxu1 %v8519_v24  ;;  %v8574_v16 = vld [vmem:[#allocation2 + $0x3c8] ss:$16 sps:$4 sm:$0xff]   ;;  %v8579_v24 = vld [vmem:[#allocation2 + $0x1ac] ss:$16 sps:$4 sm:$0xff]  }
 0x527   : > { %3035 = vmatprep.subr.bf16.mxu0 %v8522_v45  ;;  %v8582_v45 = vld [vmem:[#allocation2 + $0x3ac] ss:$16 sps:$4 sm:$0xff]  }
 0x528   : > { %2885 = vmatmul.mubr.bf16.vlgmr.msra.gmra.mxu1 %v10193_v27 }
 0x529   : > { %2946 = vmatmul.mubr.bf16.vlgmr.msra.gmra.mxu0 %v10202_v33  ;;  %2975 = vmatpush1.bf16.msra.mxu1 %v8517_v35  ;;  %v8577_v35 = vld [vmem:[#allocation2 + $0x1a8] ss:$16 sps:$4 sm:$0xff]  }
 0x52a   : > { %3036 = vmatpush1.bf16.msra.mxu0 %v8520_v56  ;;  %2976 = vmatprep.subr.bf16.mxu1 %v8525_v21  ;;  %v8580_v56 = vld [vmem:[#allocation2 + $0x3a8] ss:$16 sps:$4 sm:$0xff]   ;;  %v8585_v21 = vld [vmem:[#allocation2 + $0x18c] ss:$16 sps:$4 sm:$0xff]  }
 0x52b   : > { %3037 = vmatprep.subr.bf16.mxu0 %v8528_v41  ;;  %2894 = vmatprep.mubr.bf16.mxu1 %v10266_v13  ;;  %v8588_v41 = vld [vmem:[#allocation2 + $0x38c] ss:$16 sps:$4 sm:$0xff]  }
 0x52c   : > { %2955 = vmatprep.mubr.bf16.mxu0 %v10285_v23 }
 0x52d   : > { %2977 = vmatpush1.bf16.msra.mxu1 %v8523_v58  ;;  %v8583_v58 = vld [vmem:[#allocation2 + $0x188] ss:$16 sps:$4 sm:$0xff]  }
 0x52e   : > { %3038 = vmatpush1.bf16.msra.mxu0 %v8526_v10  ;;  %2978 = vmatprep.subr.bf16.mxu1 %v8531_v55  ;;  %v8586_v10 = vld [vmem:[#allocation2 + $0x388] ss:$16 sps:$4 sm:$0xff]   ;;  %v8591_v55 = vld [vmem:[#allocation2 + $0x16c] ss:$16 sps:$4 sm:$0xff]  }
 0x52f   : > { %3039 = vmatprep.subr.bf16.mxu0 %v8534_v1  ;;  %v8594_v1 = vld [vmem:[#allocation2 + $0x36c] ss:$16 sps:$4 sm:$0xff]  }
 0x530   : > { %2895 = vmatmul.mubr.bf16.gmra.mxu1 %v10316_v38 }
 0x531   : > { %2956 = vmatmul.mubr.bf16.gmra.mxu0 %v10302_v31  ;;  %2979 = vmatpush1.bf16.msra.mxu1 %v8529_v20  ;;  %v8589_v20 = vld [vmem:[#allocation2 + $0x168] ss:$16 sps:$4 sm:$0xff]  }
 0x532   : > { %3040 = vmatpush1.bf16.msra.mxu0 %v8532_v22  ;;  %2980 = vmatprep.subr.bf16.mxu1 %v8537_v25  ;;  %v8592_v22 = vld [vmem:[#allocation2 + $0x368] ss:$16 sps:$4 sm:$0xff]   ;;  %v8597_v25 = vld [vmem:[#allocation2 + $0x14c] ss:$16 sps:$4 sm:$0xff]  }
 0x533   : > { %3041 = vmatprep.subr.bf16.mxu0 %v8540_v39  ;;  %2904 = vmatprep.mubr.bf16.mxu1 %v10329_v42  ;;  %v8600_v39 = vld [vmem:[#allocation2 + $0x34c] ss:$16 sps:$4 sm:$0xff]  }
 0x534   : > { %2965 = vmatprep.mubr.bf16.mxu0 %v10333_v43 }
 0x535   : > { %2981 = vmatpush1.bf16.msra.mxu1 %v8535_v54  ;;  %v8595_v54 = vld [vmem:[#allocation2 + $0x148] ss:$16 sps:$4 sm:$0xff]  }
 0x536   : > { %3042 = vmatpush1.bf16.msra.mxu0 %v8538_v44  ;;  %2982 = vmatprep.subr.bf16.mxu1 %v8543_v60  ;;  %v8598_v44 = vld [vmem:[#allocation2 + $0x348] ss:$16 sps:$4 sm:$0xff]   ;;  %v8603_v60 = vld [vmem:[#allocation2 + $0x12c] ss:$16 sps:$4 sm:$0xff]  }
 0x537   : > { %3043 = vmatprep.subr.bf16.mxu0 %v8546_v6  ;;  %v8606_v6 = vld [vmem:[#allocation2 + $0x32c] ss:$16 sps:$4 sm:$0xff]  }
 0x538   : > { %2905 = vmatmul.mubr.bf16.gmra.mxu1 %v10359_v61 }
 0x539   : > { %2966 = vmatmul.mubr.bf16.gmra.mxu0 %v10363_v62  ;;  %2983 = vmatpush1.bf16.msra.mxu1 %v8541_v29  ;;  %v8601_v29 = vld [vmem:[#allocation2 + $0x128] ss:$16 sps:$4 sm:$0xff]  }
 0x53a   : > { %3044 = vmatpush1.bf16.msra.mxu0 %v8544_v2  ;;  %2984 = vmatprep.subr.bf16.mxu1 %v8549_v11  ;;  %v8604_v2 = vld [vmem:[#allocation2 + $0x328] ss:$16 sps:$4 sm:$0xff]   ;;  %v8609_v11 = vld [vmem:[#allocation2 + $0x10c] ss:$16 sps:$4 sm:$0xff]  }
 0x53b   : > { %3045 = vmatprep.subr.bf16.mxu0 %v8552_v3  ;;  %3006 = vmatprep.mubr.bf16.mxu1 %v10220_v48  ;;  %v8565_v48 = vld [vmem:[#allocation2 + $0x1e8] ss:$16 sps:$4 sm:$0xff]   ;;  %v8612_v3 = vld [vmem:[#allocation2 + $0x30c] ss:$16 sps:$4 sm:$0xff]  }
 0x53c   : > { %3067 = vmatprep.mubr.bf16.mxu0 %v10224_v53  ;;  %v8568_v53 = vld [vmem:[#allocation2 + $0x3e8] ss:$16 sps:$4 sm:$0xff]  }
 0x53d   : > { %2985 = vmatpush1.bf16.msra.mxu1 %v8547_v8  ;;  %v8607_v8 = vld [vmem:[#allocation2 + $0x108] ss:$16 sps:$4 sm:$0xff]  }
 0x53e   : > { %3046 = vmatpush1.bf16.msra.mxu0 %v8550_v12  ;;  %2986 = vmatprep.subr.bf16.mxu1 %v8555_v7  ;;  %v8610_v12 = vld [vmem:[#allocation2 + $0x308] ss:$16 sps:$4 sm:$0xff]   ;;  %v9691_v7 = vmov 0  }
 0x53f   : > { %3047 = vmatprep.subr.bf16.mxu0 %v8558_v5 }
 0x541   : > { %2987 = vmatpush1.bf16.msra.mxu1 %v8553_v17 }
 0x542   : > { %3048 = vmatpush1.bf16.msra.mxu0 %v8556_v19  ;;  %2988 = vmatprep.subr.bf16.mxu1 %v8561_v4 }
 0x543   : > { %3049 = vmatprep.subr.bf16.mxu0 %v8564_v40 }
 0x545   : > { %2989 = vmatpush1.bf16.msra.mxu1 %v8559_v28 }
 0x546   : > { %3050 = vmatpush1.bf16.msra.mxu0 %v8562_v9  ;;  %2990 = vmatprep.subr.bf16.mxu1 %v8567_v59 }
 0x547   : > { %3051 = vmatprep.subr.bf16.mxu0 %v8570_v36 }
 0x549   : > { %2991 = vmatpush2.bf16.msra.mxu1 %v8565_v48 }
 0x54a   : > { %3052 = vmatpush2.bf16.msra.mxu0 %v8568_v53  ;;  %2992 = vmatprep.subr.bf16.mxu1 %v8573_v32 }
 0x54b   : > { %3053 = vmatprep.subr.bf16.mxu0 %v8576_v14 }
 0x54d   : > { %2993 = vmatpush2.bf16.msra.mxu1 %v8571_v18 }
 0x54e   : > { %3054 = vmatpush2.bf16.msra.mxu0 %v8574_v16  ;;  %2994 = vmatprep.subr.bf16.mxu1 %v8579_v24 }
 0x54f   : > { %3055 = vmatprep.subr.bf16.mxu0 %v8582_v45 }
 0x551   : > { %2995 = vmatpush2.bf16.msra.mxu1 %v8577_v35 }
 0x552   : > { %3056 = vmatpush2.bf16.msra.mxu0 %v8580_v56  ;;  %2996 = vmatprep.subr.bf16.mxu1 %v8585_v21 }
 0x553   : > { %3057 = vmatprep.subr.bf16.mxu0 %v8588_v41 }
 0x555   : > { %2997 = vmatpush2.bf16.msra.mxu1 %v8583_v58 }
 0x556   : > { %3058 = vmatpush2.bf16.msra.mxu0 %v8586_v10  ;;  %2998 = vmatprep.subr.bf16.mxu1 %v8591_v55 }
 0x557   : > { %3059 = vmatprep.subr.bf16.mxu0 %v8594_v1 }
 0x559   : > { %2999 = vmatpush2.bf16.msra.mxu1 %v8589_v20 }
 0x55a   : > { %3060 = vmatpush2.bf16.msra.mxu0 %v8592_v22  ;;  %3000 = vmatprep.subr.bf16.mxu1 %v8597_v25 }
 0x55b   : > { %3061 = vmatprep.subr.bf16.mxu0 %v8600_v39 }
 0x55d   : > { %3001 = vmatpush2.bf16.msra.mxu1 %v8595_v54 }
 0x55e   : > { %3062 = vmatpush2.bf16.msra.mxu0 %v8598_v44  ;;  %3002 = vmatprep.subr.bf16.mxu1 %v8603_v60 }
 0x55f   : > { %3063 = vmatprep.subr.bf16.mxu0 %v8606_v6 }
 0x561   : > { %3003 = vmatpush2.bf16.msra.mxu1 %v8601_v29 }
 0x562   : > { %3064 = vmatpush2.bf16.msra.mxu0 %v8604_v2  ;;  %3004 = vmatprep.subr.bf16.mxu1 %v8609_v11 }
 0x563   : > { %3065 = vmatprep.subr.bf16.mxu0 %v8612_v3 }
 0x565   : > { %3005 = vmatpush2.bf16.msra.mxu1 %v8607_v8 }
 0x566   : > { %3066 = vmatpush2.bf16.msra.mxu0 %v8610_v12 }
 0x568   : > { %3007 = vmatmul.mubr.bf16.vlgmr.msra.gmra.mxu1 %v10193_v27 }
 0x569   : > { %3068 = vmatmul.mubr.bf16.vlgmr.msra.gmra.mxu0 %v10202_v33  ;;  %3016 = vmatprep.mubr.bf16.mxu1 %v10266_v13 }
 0x56a   : > { %3077 = vmatprep.mubr.bf16.mxu0 %v10285_v23 }
 0x570   : > { %3017 = vmatmul.mubr.bf16.gmra.mxu1 %v10316_v38 }
 0x571   : > { %3078 = vmatmul.mubr.bf16.gmra.mxu0 %v10302_v31  ;;  %3026 = vmatprep.mubr.bf16.mxu1 %v10329_v42 }
 0x572   : > { %3087 = vmatprep.mubr.bf16.mxu0 %v10333_v43  ;;  %v10513_v43 = vld [vmem:[#allocation17] sm:$0xf] }
 0x573   : > { %v2199_v28 = vrot.slane %v10513_v43, %v10149_v49  ;;  %v2195_v36 = vrot.slane %v10513_v43, %v10143_v46 }
 0x578   : > { %3027 = vmatmul.mubr.bf16.gmra.mxu1 %v10359_v61 }
 0x579   : > { %3088 = vmatmul.mubr.bf16.gmra.mxu0 %v10363_v62  ;;  %3165 = vmatprep.mubr.bf16.mxu1 %v9691_v7 }
 0x57a   : > { %3226 = vmatprep.mubr.bf16.mxu0 %v9691_v7 }
 0x5e8   : > { %v2886_v27 = vpop.f32.mrf.mxu1 }
 0x5e9   : > { %v2947_v33 = vpop.f32.mrf.mxu0  ;;  %v2887_v8 = vadd.f32 %v2886_v27, %v2195_v36  ;;  %v10530_v27 = vpack.c.bf16 %v10483_v15, %v10481_v51 }
 0x5ea   : > { %v2888_v13 = vpop.f32.mrf.mxu1 }
 0x5eb   : > { %v2949_v23 = vpop.f32.mrf.mxu0  ;;  %v2889_v60 = vadd.f32 %v2888_v13, %v2199_v28  ;;  %v10523_v13 = vpack.c.bf16 %v10479_v34, %v10477_v63 }
 0x5ec   : > { %v2890_v38 = vpop.f32.mrf.mxu1 }
 0x5ed   : > { %v2951_v5 = vpop.f32.mrf.mxu0  ;;  %v2891_v11 = vadd.f32 %v2890_v38, %v2195_v36 }
 0x5ee   : > { %v2892_v31 = vpop.f32.mrf.mxu1 }
 0x5ef   : > { %v2953_v17 = vpop.f32.mrf.mxu0  ;;  %v2893_v1 = vadd.f32 %v2892_v31, %v2199_v28  ;;  %v2952_v31 = vadd.f32 %v2951_v5, %v2891_v11 }
 0x5f0   : > { %v2896_v42 = vpop.f32.mrf.mxu1 }
 0x5f1   : > { %v2957_v19 = vpop.f32.mrf.mxu0  ;;  %v2897_v16 = vadd.f32 %v2896_v42, %v2195_v36  ;;  %v2954_v3 = vadd.f32 %v2953_v17, %v2893_v1  ;;  %v2950_v42 = vadd.f32 %v2949_v23, %v2889_v60 }
 0x5f2   : > { %v2898_v61 = vpop.f32.mrf.mxu1 }
 0x5f3   : > { %v2959_v4 = vpop.f32.mrf.mxu0  ;;  %v2899_v48 = vadd.f32 %v2898_v61, %v2199_v28  ;;  %v2958_v25 = vadd.f32 %v2957_v19, %v2897_v16  ;;  %v3100_v61 = vpack.c.bf16 %v2954_v3, %v2950_v42  ;;  %v2948_v19 = vadd.f32 %v2947_v33, %v2887_v8 }
 0x5f4   : > { %v2900_v62 = vpop.f32.mrf.mxu1  ;;  %v10537_v33 = vpack.c.bf16 %v10485_v30, %v10485_v30 }
 0x5f5   : > { %v2961_v40 = vpop.f32.mrf.mxu0  ;;  %v2901_v24 = vadd.f32 %v2900_v62, %v2195_v36  ;;  %v2960_v56 = vadd.f32 %v2959_v4, %v2899_v48  ;;  %v3099_v4 = vpack.c.bf16 %v2952_v31, %v2948_v19 }
 0x5f6   : > { %v2902_v9 = vpop.f32.mrf.mxu1 }
 0x5f7   : > { %v2963_v59 = vpop.f32.mrf.mxu0  ;;  %v2903_v53 = vadd.f32 %v2902_v9, %v2199_v28  ;;  %v2962_v39 = vadd.f32 %v2961_v40, %v2901_v24 }
 0x5f8   : > { %v2906_v32 = vpop.f32.mrf.mxu1 }
 0x5f9   : > { %v2967_v14 = vpop.f32.mrf.mxu0  ;;  %v2907_v18 = vadd.f32 %v2906_v32, %v2195_v36  ;;  %v2964_v21 = vadd.f32 %v2963_v59, %v2903_v53  ;;  %v3103_v12 = vpack.c.bf16 %v2962_v39, %v2958_v25  ;;  %v2203_v53 = vrot.slane %v10513_v43, %v10146_v47 }
 0x5fa   : > { %v2908_v45 = vpop.f32.mrf.mxu1  ;;  %v2207_v32 = vrot.slane %v10513_v43, %v10152_v50 }
 0x5fb   : > { %v2969_v35 = vpop.f32.mrf.mxu0  ;;  %v2909_v41 = vadd.f32 %v2908_v45, %v2199_v28  ;;  %v2968_v58 = vadd.f32 %v2967_v14, %v2907_v18  ;;  %v3104_v6 = vpack.c.bf16 %v2964_v21, %v2960_v56 }
 0x5fc   : > { %v2910_v10 = vpop.f32.mrf.mxu1 }
 0x5fd   : > { %v2971_v55 = vpop.f32.mrf.mxu0  ;;  %v3107_v20 = vpack.c.bf16 %v2968_v58, %v2968_v58  ;;  %v2970_v22 = vadd.f32 %v2969_v35, %v2909_v41 }
 0x5fe   : > { %v2911_v54 = vpop.f32.mrf.mxu1 }
 0x5ff   : > { %v2972_v44 = vpop.f32.mrf.mxu0  ;;  %v3122_v29 = vsel %vm3120_vm9, %v3107_v20, 0  ;;  %v3108_v2 = vpack.c.bf16 %v2970_v22, %v2970_v22 }
 0x601   : > { %7579 = vmatprep.subr.msk.bf16.mxu1 %vm3120_vm9, %v3108_v2 }
 0x602   : > { %3144 = vmatpush1.bf16.msra.mxu1 %v3122_v29 }
 0x603   : > { %3145 = vmatprep.subr.bf16.mxu1 %v3104_v6 }
 0x606   : > { %3146 = vmatpush1.bf16.msra.mxu1 %v3103_v12 }
 0x607   : > { %3147 = vmatprep.subr.bf16.mxu1 %v3100_v61 }
 0x60a   : > { %3148 = vmatpush1.bf16.msra.mxu1 %v3099_v4 }
 0x60d   : > { %7580 = vmatmul.mubr.msk.bf16.vlgmr.msra.gmra.mxu1 %vm2001_vm7, %v10523_v13 }
 0x60e   : > { %3175 = vmatprep.mubr.bf16.mxu1 %v9691_v7 }
 0x615   : > { %7581 = vmatmul.mubr.msk.bf16.gmra.mxu1 %vm2001_vm7, %v10530_v27 }
 0x616   : > { %3185 = vmatprep.mubr.bf16.mxu1 %v9691_v7 }
 0x61d   : > { %7582 = vmatmul.mubr.msk.bf16.gmra.mxu1 %vm2001_vm7, %v10537_v33 }
 0x61e   : > { %3363 = vmatprep.mubr.bf16.mxu1 %v9691_v7 }
 0x628   : > { %v3008_v63 = vpop.f32.mrf.mxu1 }
 0x629   : > { %v3069_v34 = vpop.f32.mrf.mxu0  ;;  %v3009_v12 = vadd.f32 %v3008_v63, %v2203_v53 }
 0x62a   : > { %v3010_v23 = vpop.f32.mrf.mxu1 }
 0x62b   : > { %v3071_v38 = vpop.f32.mrf.mxu0  ;;  %v3011_v43 = vadd.f32 %v3010_v23, %v2207_v32 }
 0x62c   : > { %v3012_v51 = vpop.f32.mrf.mxu1 }
 0x62d   : > { %v3073_v15 = vpop.f32.mrf.mxu0  ;;  %v3013_v29 = vadd.f32 %v3012_v51, %v2203_v53  ;;  %v3072_v31 = vadd.f32 %v3071_v38, %v3011_v43 }
 0x62e   : > { %v3014_v5 = vpop.f32.mrf.mxu1 }
 0x62f   : > { %v3075_v17 = vpop.f32.mrf.mxu0  ;;  %v3015_v1 = vadd.f32 %v3014_v5, %v2207_v32  ;;  %v3074_v61 = vadd.f32 %v3073_v15, %v3013_v29  ;;  %v3070_v5 = vadd.f32 %v3069_v34, %v3009_v12 }
 0x630   : > { %v3018_v62 = vpop.f32.mrf.mxu1 }
 0x631   : > { %v3079_v40 = vpop.f32.mrf.mxu0  ;;  %v3019_v39 = vadd.f32 %v3018_v62, %v2203_v53  ;;  %v3076_v11 = vadd.f32 %v3075_v17, %v3015_v1  ;;  %v3101_v23 = vpack.c.bf16 %v3074_v61, %v3070_v5 }
 0x632   : > { %v3020_v28 = vpop.f32.mrf.mxu1 }
 0x633   : > { %v3081_v9 = vpop.f32.mrf.mxu0  ;;  %v3021_v56 = vadd.f32 %v3020_v28, %v2207_v32  ;;  %v3080_v42 = vadd.f32 %v3079_v40, %v3019_v39  ;;  %v3102_v4 = vpack.c.bf16 %v3076_v11, %v3072_v31  ;;  %v10556_v40 = vstv %s3255_s28  ;;  %v10829_v39 = vld [vmem:[#allocation53_spill] sm:$0xff] }
 0x634   : > { %v3022_v59 = vpop.f32.mrf.mxu1 }
 0x635   : > { %v3083_v30 = vpop.f32.mrf.mxu0  ;;  %v3023_v58 = vadd.f32 %v3022_v59, %v2203_v53  ;;  %v3082_v60 = vadd.f32 %v3081_v9, %v3021_v56 }
 0x636   : > { %v3024_v36 = vpop.f32.mrf.mxu1 }
 0x637   : > { %v3085_v48 = vpop.f32.mrf.mxu0  ;;  %v3025_v16 = vadd.f32 %v3024_v36, %v2207_v32  ;;  %v3084_v2 = vadd.f32 %v3083_v30, %v3023_v58  ;;  %v10826_v58 = vld [vmem:[#allocation62_spill] sm:$0xff] }
 0x638   : > { %v3028_v14 = vpop.f32.mrf.mxu1 }
 0x639   : > { %v3089_v18 = vpop.f32.mrf.mxu0  ;;  %v3029_v24 = vadd.f32 %v3028_v14, %v2203_v53  ;;  %v3086_v20 = vadd.f32 %v3085_v48, %v3025_v16  ;;  %v3105_v19 = vpack.c.bf16 %v3084_v2, %v3080_v42 }
 0x63a   : > { %v3030_v45 = vpop.f32.mrf.mxu1 }
 0x63b   : > { %v3091_v35 = vpop.f32.mrf.mxu0  ;;  %v3090_v21 = vadd.f32 %v3089_v18, %v3029_v24  ;;  %v3031_v41 = vadd.f32 %v3030_v45, %v2207_v32  ;;  %v3106_v3 = vpack.c.bf16 %v3086_v20, %v3082_v60 }
 0x63c   : > { %v3032_v10 = vpop.f32.mrf.mxu1 }
 0x63d   : > { %v3093_v55 = vpop.f32.mrf.mxu0  ;;  %v3109_v22 = vpack.c.bf16 %v3090_v21, %v3090_v21  ;;  %v3092_v25 = vadd.f32 %v3091_v35, %v3031_v41 }
 0x63e   : > { %v3033_v54 = vpop.f32.mrf.mxu1  ;;  %v10827_v55 = vld [vmem:[#allocation63_spill] sm:$0xff] }
 0x63f   : > { %v3094_v44 = vpop.f32.mrf.mxu0  ;;  %v3110_v6 = vpack.c.bf16 %v3092_v25, %v3092_v25  ;;  %v3128_v8 = vsel %vm3120_vm9, %v3109_v22, 0 }
 0x641   : > { %7583 = vmatprep.subr.msk.bf16.mxu0 %vm3120_vm9, %v3110_v6  ;;  %v8613_v6 = vld [vmem:[#allocation18] sm:$0x1f]  }
 0x642   : > { %3205 = vmatpush1.bf16.msra.mxu0 %v3128_v8 }
 0x643   : > { %3206 = vmatprep.subr.bf16.mxu0 %v3106_v3 }
 0x646   : > { %3207 = vmatpush1.bf16.msra.mxu0 %v3105_v19 }
 0x647   : > { %3208 = vmatprep.subr.bf16.mxu0 %v3102_v4 }
 0x64a   : > { %3209 = vmatpush1.bf16.msra.mxu0 %v3101_v23 }
 0x64d   : > { %7584 = vmatmul.mubr.msk.bf16.vlgmr.msra.gmra.mxu0 %vm2001_vm7, %v10523_v13 }
 0x64e   : > { %3236 = vmatprep.mubr.bf16.mxu0 %v9691_v7 }
 0x655   : > { %7585 = vmatmul.mubr.msk.bf16.gmra.mxu0 %vm2001_vm7, %v10530_v27 }
 0x656   : > { %3246 = vmatprep.mubr.bf16.mxu0 %v9691_v7 }
 0x65d   : > { %7586 = vmatmul.mubr.msk.bf16.gmra.mxu0 %vm2001_vm7, %v10537_v33 }
 0x6cd   : > { %v3167_v63 = vpop.f32.mrf.mxu1 }
 0x6ce   : > { %v3257_v45 = vmul.f32 %v10556_v40, %v3167_v63  ;;  %v10831_v63 = vld [vmem:[#allocation67_spill] sm:$0xff] }
 0x6cf   : > { %v3169_v38 = vpop.f32.mrf.mxu1 }
 0x6d0   : > { %v3258_v33 = vmul.f32 %v10556_v40, %v3169_v38  ;;  %v3277_v54 = vadd.f32 %v3257_v45, %v10829_v39 }
 0x6d1   : > { %v3171_v34 = vpop.f32.mrf.mxu1 }
 0x6d2   : > { %v3278_v21 = vadd.f32 %v3258_v33, %v10189_v26  ;;  %v3261_v41 = vmul.f32 %v10556_v40, %v3171_v34 }
 0x6d3   : > { %v3173_v51 = vpop.f32.mrf.mxu1 }
 0x6d4   : > { %v3262_v30 = vmul.f32 %v10556_v40, %v3173_v51 }
 0x6d5   : > { %v3177_v15 = vpop.f32.mrf.mxu1 }
 0x6d6   : > { %v3265_v36 = vmul.f32 %v10556_v40, %v3177_v15 }
 0x6d7   : > { %v3179_v17 = vpop.f32.mrf.mxu1 }
 0x6d8   : > { %v3266_v28 = vmul.f32 %v10556_v40, %v3179_v17  ;;  %v3285_v10 = vadd.f32 %v3265_v36, %v10826_v58  ;;  %v10834_v36 = vld [vmem:[#allocation60_spill] sm:$0xff]  ;;  %v10838_v58 = vld [vmem:[#allocation57_spill] sm:$0xff] }
 0x6d9   : > { %v3181_v62 = vpop.f32.mrf.mxu1 }
 0x6da   : > { %v3269_v48 = vmul.f32 %v10556_v40, %v3181_v62  ;;  %v3286_v32 = vadd.f32 %v3266_v28, %v10242_v0  ;;  %v10832_v62 = vld [vmem:[#allocation61_spill] sm:$0xff] }
 0x6db   : > { %v3183_v13 = vpop.f32.mrf.mxu1 }
 0x6dc   : > { %v3270_v27 = vmul.f32 %v10556_v40, %v3183_v13  ;;  %v3289_v0 = vadd.f32 %v3269_v48, %v10827_v55  ;;  %v10839_v55 = vld [vmem:[#allocation56_spill] sm:$0xff] }
 0x6dd   : > { %v3187_v9 = vpop.f32.mrf.mxu1 }
 0x6de   : > { %v3273_v59 = vmul.f32 %v10556_v40, %v3187_v9  ;;  %v3290_v14 = vadd.f32 %v3270_v27, %v10262_v52  ;;  %v10828_v52 = vld [vmem:[#allocation58_spill] sm:$0xff]  ;;  %v3303_v26 = vpack.c.bf16 %v3289_v0, %v3285_v10 }
 0x6df   : > { %v3189_v53 = vpop.f32.mrf.mxu1  ;;  %v3282_v20 = vadd.f32 %v3262_v30, %v10828_v52  ;;  %v10833_v27 = vld [vmem:[#allocation66_spill] sm:$0xff] }
 0x6e0   : > { %v3293_v18 = vadd.f32 %v3273_v59, %v10344_v57  ;;  %v3274_v16 = vmul.f32 %v10556_v40, %v3189_v53  ;;  %v3304_v57 = vpack.c.bf16 %v3290_v14, %v3286_v32  ;;  %v10835_v14 = vld [vmem:[#allocation65_spill] sm:$0xff] }
 0x6e1   : > { %v3191_v24 = vpop.f32.mrf.mxu1  ;;  %v3300_v43 = vpack.c.bf16 %v3282_v20, %v3278_v21  ;;  %v10837_v21 = vld [vmem:[#allocation64_spill] sm:$0xff]  ;;  %v10840_v20 = vld [vmem:[#allocation54_spill] sm:$0xff] }
 0x6e2   : > { %v3307_v35 = vpack.c.bf16 %v3293_v18, %v3293_v18  ;;  %v3294_v56 = vadd.f32 %v3274_v16, %v10311_v37  ;;  %v10830_v37 = vld [vmem:[#allocation55_spill] sm:$0xff] }
 0x6e3   : > { %v3192_v1 = vpop.f32.mrf.mxu1  ;;  %v3281_v44 = vadd.f32 %v3261_v41, %v10830_v37  ;;  %v10836_v16 = vld [vmem:[#allocation59_spill] sm:$0xff] }
 0x6e4   : > { %v3308_v22 = vpack.c.bf16 %v3294_v56, %v3294_v56  ;;  %v3320_v25 = vsel %vm3120_vm9, %v3307_v35, 0 }
 0x6e5   : > { %v3299_v60 = vpack.c.bf16 %v3281_v44, %v3277_v54 }
 0x6e6   : > { %7588 = vmatprep.subr.msk.bf16.mxu1 %vm3120_vm9, %v3308_v22 }
 0x6e7   : > { %3342 = vmatpush1.bf16.msra.mxu1 %v3320_v25 }
 0x6e8   : > { %3343 = vmatprep.subr.bf16.mxu1 %v3304_v57 }
 0x6eb   : > { %3344 = vmatpush1.bf16.msra.mxu1 %v3303_v26 }
 0x6ec   : > { %3345 = vmatprep.subr.bf16.mxu1 %v3300_v43 }
 0x6ef   : > { %3346 = vmatpush1.bf16.msra.mxu1 %v3299_v60 }
 0x6f2   : > { %7589 = vmatmul.mubr.msk.bf16.vlgmr.msra.gmra.mxu1 %vm2001_vm7, %v8613_v6 }
 0x6f3   : > { %3406 = vmatprep.mubr.bf16.mxu1 %v9691_v7 }
 0x70d   : > { %v3228_v29 = vpop.f32.mrf.mxu0 }
 0x70e   : > { %v3259_v56 = vmul.f32 %v10556_v40, %v3228_v29 }
 0x70f   : > { %v3230_v2 = vpop.f32.mrf.mxu0 }
 0x710   : > { %v3260_v30 = vmul.f32 %v10556_v40, %v3230_v2  ;;  %v3279_v57 = vadd.f32 %v3259_v56, %v10840_v20 }
 0x711   : > { %v3232_v11 = vpop.f32.mrf.mxu0 }
 0x712   : > { %v3263_v32 = vmul.f32 %v10556_v40, %v3232_v11  ;;  %v3280_v10 = vadd.f32 %v3260_v30, %v10838_v58 }
 0x713   : > { %v3234_v3 = vpop.f32.mrf.mxu0 }
 0x714   : > { %v3264_v17 = vmul.f32 %v10556_v40, %v3234_v3  ;;  %v3283_v0 = vadd.f32 %v3263_v32, %v10839_v55 }
 0x715   : > { %v3238_v8 = vpop.f32.mrf.mxu0 }
 0x716   : > { %v3267_v59 = vmul.f32 %v10556_v40, %v3238_v8  ;;  %v3284_v24 = vadd.f32 %v3264_v17, %v10836_v16  ;;  %v3301_v22 = vpack.c.bf16 %v3283_v0, %v3279_v57 }
 0x717   : > { %v3240_v12 = vpop.f32.mrf.mxu0 }
 0x718   : > { %v3268_v23 = vmul.f32 %v10556_v40, %v3240_v12  ;;  %v3287_v41 = vadd.f32 %v3267_v59, %v10837_v21  ;;  %v3302_v52 = vpack.c.bf16 %v3284_v24, %v3280_v10 }
 0x719   : > { %v3242_v42 = vpop.f32.mrf.mxu0 }
 0x71a   : > { %v3271_v51 = vmul.f32 %v10556_v40, %v3242_v42  ;;  %v3288_v48 = vadd.f32 %v3268_v23, %v10834_v36 }
 0x71b   : > { %v3244_v31 = vpop.f32.mrf.mxu0 }
 0x71c   : > { %v3272_v19 = vmul.f32 %v10556_v40, %v3244_v31  ;;  %v3291_v18 = vadd.f32 %v3271_v51, %v10835_v14 }
 0x71d   : > { %v3248_v61 = vpop.f32.mrf.mxu0 }
 0x71e   : > { %v3275_v4 = vmul.f32 %v10556_v40, %v3248_v61  ;;  %v3292_v13 = vadd.f32 %v3272_v19, %v10832_v62  ;;  %v3305_v1 = vpack.c.bf16 %v3291_v18, %v3287_v41 }
 0x71f   : > { %v3250_v5 = vpop.f32.mrf.mxu0 }
 0x720   : > { %v3295_v38 = vadd.f32 %v3275_v4, %v10831_v63  ;;  %v3276_v34 = vmul.f32 %v10556_v40, %v3250_v5  ;;  %v3306_v45 = vpack.c.bf16 %v3292_v13, %v3288_v48 }
 0x721   : > { %v3252_v15 = vpop.f32.mrf.mxu0 }
 0x722   : > { %v3309_v28 = vpack.c.bf16 %v3295_v38, %v3295_v38  ;;  %v3296_v9 = vadd.f32 %v3276_v34, %v10833_v27 }
 0x723   : > { %v3253_v33 = vpop.f32.mrf.mxu0 }
 0x724   : > { %v3310_v53 = vpack.c.bf16 %v3296_v9, %v3296_v9  ;;  %v3326_v35 = vsel %vm3120_vm9, %v3309_v28, 0 }
 0x726   : > { %7590 = vmatprep.subr.msk.bf16.mxu1 %vm3120_vm9, %v3310_v53 }
 0x727   : > { %3385 = vmatpush1.bf16.msra.mxu1 %v3326_v35 }
 0x728   : > { %3386 = vmatprep.subr.bf16.mxu1 %v3306_v45 }
 0x72b   : > { %3387 = vmatpush1.bf16.msra.mxu1 %v3305_v1 }
 0x72c   : > { %3388 = vmatprep.subr.bf16.mxu1 %v3302_v52 }
 0x72f   : > { %3389 = vmatpush1.bf16.msra.mxu1 %v3301_v22 }
 0x732   : > { %7591 = vmatmul.mubr.msk.bf16.vlgmr.msra.gmra.mxu1 %vm2001_vm7, %v8613_v6 }
 0x7b2   : > { %v10605_v25 = vpop.f32.mrf.mxu1 }
 0x7b4   : > { %v3367_v40 = vpop.f32.mrf.mxu1 }
 0x7b6   : > { %v10607_v39 = vpop.f32.mrf.mxu1 }
 0x7b8   : > { %v3371_v54 = vpop.f32.mrf.mxu1 }
 0x7f2   : > { %v10609_v37 = vpop.f32.mrf.mxu1 }
 0x7f4   : > { %v3410_v44 = vpop.f32.mrf.mxu1 }
 0x7f6   : > { %v10611_v26 = vpop.f32.mrf.mxu1 }
 0x7f8   : > { %v3414_v43 = vpop.f32.mrf.mxu1 }
 0x7f9   : > { %9659 = dma.done.wait [#allocation5 + $0x1], 8192 }
 0x7fa   : > { %9660 = vsyncadd [#allocation5 + $0x1], 4294959104  ;;  %v3421_v60 = vpack.c.bf16 %v3371_v54, %v3367_v40  ;;  %v3423_v29 = vpack.c.bf16 %v3414_v43, %v3410_v44  ;;  %v8614_v2 = vld [vmem:[#allocation3 + $0x74] ss:$8 sps:$4 sm:$0xff]   ;;  %v8618_v11 = vld [vmem:[#allocation3 + $0x70] ss:$8 sps:$4 sm:$0xff]  }
 0x7fb   : > { %v8616_v6 = vld [vmem:[#allocation3 + $0x174] ss:$8 sps:$4 sm:$0xff]   ;;  %3820 = vmatprep.subr.bf16.mxu0 %v8614_v2  ;;  %v8619_v3 = vld [vmem:[#allocation3 + $0x170] ss:$8 sps:$4 sm:$0xff]   ;;  %v8620_v8 = vld [vmem:[#allocation3 + $0x64] ss:$8 sps:$4 sm:$0xff]  }
 0x7fc   : > { %3852 = vmatprep.mubr.bf16.mxu0 %v3421_v60  ;;  %3895 = vmatprep.mubr.bf16.mxu1 %v3423_v29  ;;  %v8622_v12 = vld [vmem:[#allocation3 + $0x164] ss:$8 sps:$4 sm:$0xff]   ;;  %v8624_v42 = vld [vmem:[#allocation3 + $0x60] ss:$8 sps:$4 sm:$0xff]   ;;  %v8626_v61 = vld [vmem:[#allocation3 + $0x54] ss:$8 sps:$4 sm:$0xff]  }
 0x7fd   : > { %3863 = vmatprep.subr.bf16.mxu1 %v8616_v6  ;;  %3821 = vmatpush1.bf16.msra.mxu0 %v8618_v11  ;;  %v8625_v31 = vld [vmem:[#allocation3 + $0x160] ss:$8 sps:$4 sm:$0xff]   ;;  %v8628_v19 = vld [vmem:[#allocation3 + $0x154] ss:$8 sps:$4 sm:$0xff]   ;;  %v8630_v4 = vld [vmem:[#allocation3 + $0x50] ss:$8 sps:$4 sm:$0xff]  }
 0x7fe   : > { %3864 = vmatpush1.bf16.msra.mxu1 %v8619_v3  ;;  %3822 = vmatprep.subr.bf16.mxu0 %v8620_v8  ;;  %v8631_v5 = vld [vmem:[#allocation3 + $0x150] ss:$8 sps:$4 sm:$0xff]   ;;  %v8632_v23 = vld [vmem:[#allocation3 + $0x44] ss:$8 sps:$4 sm:$0xff]   ;;  %v8636_v38 = vld [vmem:[#allocation3 + $0x40] ss:$8 sps:$4 sm:$0xff]  }
 0x7ff   : > { %3865 = vmatprep.subr.bf16.mxu1 %v8622_v12  ;;  %v8634_v63 = vld [vmem:[#allocation3 + $0x144] ss:$8 sps:$4 sm:$0xff]   ;;  %v8637_v34 = vld [vmem:[#allocation3 + $0x140] ss:$8 sps:$4 sm:$0xff]   ;;  %v8638_v51 = vld [vmem:[#allocation3 + $0x34] ss:$8 sps:$4 sm:$0xff]  }
 0x800   : > { %v8640_v15 = vld [vmem:[#allocation3 + $0x134] ss:$8 sps:$4 sm:$0xff]   ;;  %v8642_v17 = vld [vmem:[#allocation3 + $0x30] ss:$8 sps:$4 sm:$0xff]   ;;  %v8644_v13 = vld [vmem:[#allocation3 + $0x24] ss:$8 sps:$4 sm:$0xff]  }
 0x801   : > { %3823 = vmatpush1.bf16.msra.mxu0 %v8624_v42  ;;  %v8643_v62 = vld [vmem:[#allocation3 + $0x130] ss:$8 sps:$4 sm:$0xff]   ;;  %v8646_v28 = vld [vmem:[#allocation3 + $0x124] ss:$8 sps:$4 sm:$0xff]   ;;  %v8648_v27 = vld [vmem:[#allocation3 + $0x20] ss:$8 sps:$4 sm:$0xff]  }
 0x802   : > { %3866 = vmatpush1.bf16.msra.mxu1 %v8625_v31  ;;  %3824 = vmatprep.subr.bf16.mxu0 %v8626_v61  ;;  %v8649_v9 = vld [vmem:[#allocation3 + $0x120] ss:$8 sps:$4 sm:$0xff]   ;;  %v8650_v59 = vld [vmem:[#allocation3 + $0x14] ss:$8 sps:$4 sm:$0xff]   ;;  %v8654_v30 = vld [vmem:[#allocation3 + $0x10] ss:$8 sps:$4 sm:$0xff]  }
 0x803   : > { %3867 = vmatprep.subr.bf16.mxu1 %v8628_v19  ;;  %v8652_v33 = vld [vmem:[#allocation3 + $0x114] ss:$8 sps:$4 sm:$0xff]   ;;  %v8655_v36 = vld [vmem:[#allocation3 + $0x110] ss:$8 sps:$4 sm:$0xff]   ;;  %v8656_v48 = vld [vmem:[#allocation3 + $0x4] ss:$8 sps:$4 sm:$0xff]  }
 0x804   : > { %v8658_v53 = vld [vmem:[#allocation3 + $0x104] ss:$8 sps:$4 sm:$0xff]   ;;  %v8660_v32 = vld [vmem:[#allocation3] ss:$8 sps:$4 sm:$0xff]   ;;  %v8662_v18 = vld [vmem:[#allocation3 + $0xf4] ss:$8 sps:$4 sm:$0xff]  }
 0x805   : > { %3825 = vmatpush1.bf16.msra.mxu0 %v8630_v4  ;;  %v8661_v14 = vld [vmem:[#allocation3 + $0x100] ss:$8 sps:$4 sm:$0xff]   ;;  %v8664_v16 = vld [vmem:[#allocation3 + $0x1f4] ss:$8 sps:$4 sm:$0xff]   ;;  %v8666_v24 = vld [vmem:[#allocation3 + $0xf0] ss:$8 sps:$4 sm:$0xff]  }
 0x806   : > { %3868 = vmatpush1.bf16.msra.mxu1 %v8631_v5  ;;  %3826 = vmatprep.subr.bf16.mxu0 %v8632_v23  ;;  %v8667_v45 = vld [vmem:[#allocation3 + $0x1f0] ss:$8 sps:$4 sm:$0xff]   ;;  %v8668_v35 = vld [vmem:[#allocation3 + $0xe4] ss:$8 sps:$4 sm:$0xff]   ;;  %v8672_v21 = vld [vmem:[#allocation3 + $0xe0] ss:$8 sps:$4 sm:$0xff]  }
 0x807   : > { %3869 = vmatprep.subr.bf16.mxu1 %v8634_v63  ;;  %v8670_v56 = vld [vmem:[#allocation3 + $0x1e4] ss:$8 sps:$4 sm:$0xff]   ;;  %v8673_v41 = vld [vmem:[#allocation3 + $0x1e0] ss:$8 sps:$4 sm:$0xff]   ;;  %v8674_v58 = vld [vmem:[#allocation3 + $0xd4] ss:$8 sps:$4 sm:$0xff]   ;;  %v3420_v63 = vpack.c.bf16 %v10607_v39, %v10605_v25 }
 0x808   : > { %v8676_v10 = vld [vmem:[#allocation3 + $0x1d4] ss:$8 sps:$4 sm:$0xff]   ;;  %v8678_v55 = vld [vmem:[#allocation3 + $0xd0] ss:$8 sps:$4 sm:$0xff]   ;;  %v8680_v1 = vld [vmem:[#allocation3 + $0xc4] ss:$8 sps:$4 sm:$0xff]  }
 0x809   : > { %3827 = vmatpush1.bf16.msra.mxu0 %v8636_v38  ;;  %v8679_v0 = vld [vmem:[#allocation3 + $0x1d0] ss:$8 sps:$4 sm:$0xff]   ;;  %v8682_v52 = vld [vmem:[#allocation3 + $0x1c4] ss:$8 sps:$4 sm:$0xff]   ;;  %v8684_v20 = vld [vmem:[#allocation3 + $0xc0] ss:$8 sps:$4 sm:$0xff]   ;;  %v3422_v38 = vpack.c.bf16 %v10611_v26, %v10609_v37 }
 0x80a   : > { %3870 = vmatpush1.bf16.msra.mxu1 %v8637_v34  ;;  %3828 = vmatprep.subr.bf16.mxu0 %v8638_v51  ;;  %v8685_v57 = vld [vmem:[#allocation3 + $0x1c0] ss:$8 sps:$4 sm:$0xff]   ;;  %v8686_v22 = vld [vmem:[#allocation3 + $0xb4] ss:$8 sps:$4 sm:$0xff]   ;;  %v8690_v54 = vld [vmem:[#allocation3 + $0xb0] ss:$8 sps:$4 sm:$0xff]  }
 0x80b   : > { %3871 = vmatprep.subr.bf16.mxu1 %v8640_v15  ;;  %v8688_v40 = vld [vmem:[#allocation3 + $0x1b4] ss:$8 sps:$4 sm:$0xff]   ;;  %v8691_v44 = vld [vmem:[#allocation3 + $0x1b0] ss:$8 sps:$4 sm:$0xff]   ;;  %v8692_v43 = vld [vmem:[#allocation3 + $0xa4] ss:$8 sps:$4 sm:$0xff]  }
 0x80c   : > { %v8694_v60 = vld [vmem:[#allocation3 + $0x1a4] ss:$8 sps:$4 sm:$0xff]   ;;  %v8696_v29 = vld [vmem:[#allocation3 + $0xa0] ss:$8 sps:$4 sm:$0xff]   ;;  %v8698_v6 = vld [vmem:[#allocation3 + $0x94] ss:$8 sps:$4 sm:$0xff]  }
 0x80d   : > { %3829 = vmatpush1.bf16.msra.mxu0 %v8642_v17  ;;  %v8697_v2 = vld [vmem:[#allocation3 + $0x1a0] ss:$8 sps:$4 sm:$0xff]   ;;  %v8700_v11 = vld [vmem:[#allocation3 + $0x194] ss:$8 sps:$4 sm:$0xff]   ;;  %v8702_v3 = vld [vmem:[#allocation3 + $0x90] ss:$8 sps:$4 sm:$0xff]  }
 0x80e   : > { %3872 = vmatpush1.bf16.msra.mxu1 %v8643_v62  ;;  %3830 = vmatprep.subr.bf16.mxu0 %v8644_v13  ;;  %v8703_v8 = vld [vmem:[#allocation3 + $0x190] ss:$8 sps:$4 sm:$0xff]   ;;  %v8704_v12 = vld [vmem:[#allocation3 + $0x84] ss:$8 sps:$4 sm:$0xff]   ;;  %v8708_v31 = vld [vmem:[#allocation3 + $0x80] ss:$8 sps:$4 sm:$0xff]  }
 0x80f   : > { %3873 = vmatprep.subr.bf16.mxu1 %v8646_v28  ;;  %v8706_v42 = vld [vmem:[#allocation3 + $0x184] ss:$8 sps:$4 sm:$0xff]   ;;  %v8709_v61 = vld [vmem:[#allocation3 + $0x180] ss:$8 sps:$4 sm:$0xff]   ;;  %s4103_s0 = sld [smem:[#allocation8 + %s9825_s2]] }
 0x810   : > { %v8712_v19 = vld [vmem:[#allocation27 + $0x64] ss:$16 sps:$4 sm:$0xff]   ;;  %v8710_v5 = vld [vmem:[#allocation27 + $0x60] ss:$16 sps:$4 sm:$0xff]   ;;  %v4104_v17 = vld [vmem:[#allocation24] sm:$0x1] }
 0x811   : > { %3831 = vmatpush1.bf16.msra.mxu0 %v8648_v27  ;;  %v8722_v4 = vld [vmem:[#allocation21 + $0x78] sm:$0xff]   ;;  %v8727_v51 = vld [vmem:[#allocation21 + $0x70] sm:$0xff]   ;;  %v8732_v25 = vld [vmem:[#allocation21 + $0x68] sm:$0xff]  }
 0x812   : > { %3874 = vmatpush1.bf16.msra.mxu1 %v8649_v9  ;;  %3832 = vmatprep.subr.bf16.mxu0 %v8650_v59  ;;  %v8723_v23 = vld [vmem:[#allocation21 + $0x38] sm:$0xff]   ;;  %v8728_v13 = vld [vmem:[#allocation21 + $0x30] sm:$0xff]   ;;  %v4107_v26 = vld [vmem:[#allocation26] sm:$0x1] }
 0x813   : > { %3875 = vmatprep.subr.bf16.mxu1 %v8652_v33  ;;  %v8715_v34 = vld [vmem:[#allocation27 + $0x44] ss:$16 sps:$4 sm:$0xff]   ;;  %v8713_v15 = vld [vmem:[#allocation27 + $0x40] ss:$16 sps:$4 sm:$0xff]  }
 0x814   : > { %v8718_v28 = vld [vmem:[#allocation27 + $0x24] ss:$16 sps:$4 sm:$0xff]   ;;  %v8716_v37 = vld [vmem:[#allocation27 + $0x20] ss:$16 sps:$4 sm:$0xff]  }
 0x815   : > { %3833 = vmatpush1.bf16.msra.mxu0 %v8654_v30  ;;  %v4105_v62 = vstv %s4103_s0  ;;  %v8733_v27 = vld [vmem:[#allocation21 + $0x28] sm:$0xff]   ;;  %v8737_v59 = vld [vmem:[#allocation21 + $0x60] sm:$0xff]  }
 0x816   : > { %3876 = vmatpush1.bf16.msra.mxu1 %v8655_v36  ;;  %3834 = vmatprep.subr.bf16.mxu0 %v8656_v48  ;;  %v4106_v39 = vmul.f32 %v4105_v62, %v4104_v17  ;;  %v8721_v9 = vld [vmem:[#allocation27 + $0x4] ss:$16 sps:$4 sm:$0xff]   ;;  %v8719_v30 = vld [vmem:[#allocation27] ss:$16 sps:$4 sm:$0xff]   ;;  %v8726_v48 = vld [vmem:[#allocation27 + $0x6c] ss:$16 sps:$4 sm:$0xff]  }
 0x817   : > { %3877 = vmatprep.subr.bf16.mxu1 %v8658_v53  ;;  %v8738_v36 = vld [vmem:[#allocation21 + $0x20] sm:$0xff]  }
 0x818   : > { %v4108_v33 = vadd.f32 %v4107_v26, %v4106_v39 }
 0x819   : > { %3835 = vmatpush1.bf16.msra.mxu0 %v8660_v32  ;;  %v8724_v32 = vld [vmem:[#allocation27 + $0x68] ss:$16 sps:$4 sm:$0xff]  }
 0x81a   : > { %3878 = vmatpush1.bf16.msra.mxu1 %v8661_v14  ;;  %3836 = vmatprep.subr.bf16.mxu0 %v8662_v18  ;;  %v4110_v53 = vpack.c.bf16 %v4108_v33, %v4108_v33  ;;  %v8731_v14 = vld [vmem:[#allocation27 + $0x4c] ss:$16 sps:$4 sm:$0xff]   ;;  %v8729_v18 = vld [vmem:[#allocation27 + $0x48] ss:$16 sps:$4 sm:$0xff]  }
 0x81b   : > { %3879 = vmatprep.subr.bf16.mxu1 %v8664_v16  ;;  %v8736_v16 = vld [vmem:[#allocation27 + $0x2c] ss:$16 sps:$4 sm:$0xff]  }
 0x81d   : > { %3837 = vmatpush2.bf16.msra.mxu0 %v8666_v24  ;;  %v8734_v24 = vld [vmem:[#allocation27 + $0x28] ss:$16 sps:$4 sm:$0xff]  }
 0x81e   : > { %3880 = vmatpush2.bf16.msra.mxu1 %v8667_v45  ;;  %3838 = vmatprep.subr.bf16.mxu0 %v8668_v35  ;;  %v8741_v45 = vld [vmem:[#allocation27 + $0xc] ss:$16 sps:$4 sm:$0xff]   ;;  %v8739_v35 = vld [vmem:[#allocation27 + $0x8] ss:$16 sps:$4 sm:$0xff]  }
 0x81f   : > { %3881 = vmatprep.subr.bf16.mxu1 %v8670_v56  ;;  %v8742_v56 = vld [vmem:[#allocation21 + $0x58] sm:$0xff]  }
 0x821   : > { %3839 = vmatpush2.bf16.msra.mxu0 %v8672_v21  ;;  %v8743_v21 = vld [vmem:[#allocation21 + $0x18] sm:$0xff]  }
 0x822   : > { %3882 = vmatpush2.bf16.msra.mxu1 %v8673_v41  ;;  %3840 = vmatprep.subr.bf16.mxu0 %v8674_v58  ;;  %v8744_v41 = vld [vmem:[#allocation21 + $0x50] sm:$0xff]  }
 0x823   : > { %3883 = vmatprep.subr.bf16.mxu1 %v8676_v10  ;;  %v8745_v58 = vld [vmem:[#allocation21 + $0x10] sm:$0xff]   ;;  %v8746_v10 = vld [vmem:[#allocation21 + $0x48] sm:$0xff]  }
 0x825   : > { %3841 = vmatpush2.bf16.msra.mxu0 %v8678_v55  ;;  %v8747_v55 = vld [vmem:[#allocation21 + $0x8] sm:$0xff]  }
 0x826   : > { %3884 = vmatpush2.bf16.msra.mxu1 %v8679_v0  ;;  %3842 = vmatprep.subr.bf16.mxu0 %v8680_v1  ;;  %v8748_v0 = vld [vmem:[#allocation21 + $0x40] sm:$0xff]  }
 0x827   : > { %3885 = vmatprep.subr.bf16.mxu1 %v8682_v52  ;;  %v8749_v1 = vld [vmem:[#allocation21] sm:$0xff]   ;;  %v3488_v52 = vld [vmem:[#allocation20] sm:$0x3] }
 0x829   : > { %3843 = vmatpush2.bf16.msra.mxu0 %v8684_v20  ;;  %v3493_v20 = vrot.slane %v3488_v52, %v10143_v46 }
 0x82a   : > { %3886 = vmatpush2.bf16.msra.mxu1 %v8685_v57  ;;  %3844 = vmatprep.subr.bf16.mxu0 %v8686_v22  ;;  %v3497_v57 = vrot.slane %v3488_v52, %v10149_v49 }
 0x82b   : > { %3887 = vmatprep.subr.bf16.mxu1 %v8688_v40 }
 0x82d   : > { %3845 = vmatpush2.bf16.msra.mxu0 %v8690_v54 }
 0x82e   : > { %3888 = vmatpush2.bf16.msra.mxu1 %v8691_v44  ;;  %3846 = vmatprep.subr.bf16.mxu0 %v8692_v43 }
 0x82f   : > { %3889 = vmatprep.subr.bf16.mxu1 %v8694_v60 }
 0x831   : > { %3847 = vmatpush2.bf16.msra.mxu0 %v8696_v29 }
 0x832   : > { %3890 = vmatpush2.bf16.msra.mxu1 %v8697_v2  ;;  %3848 = vmatprep.subr.bf16.mxu0 %v8698_v6 }
 0x833   : > { %3891 = vmatprep.subr.bf16.mxu1 %v8700_v11 }
 0x835   : > { %3849 = vmatpush2.bf16.msra.mxu0 %v8702_v3 }
 0x836   : > { %3892 = vmatpush2.bf16.msra.mxu1 %v8703_v8  ;;  %3850 = vmatprep.subr.bf16.mxu0 %v8704_v12 }
 0x837   : > { %3893 = vmatprep.subr.bf16.mxu1 %v8706_v42 }
 0x839   : > { %3851 = vmatpush2.bf16.msra.mxu0 %v8708_v31 }
 0x83a   : > { %3894 = vmatpush2.bf16.msra.mxu1 %v8709_v61  ;;  %8126 = vmatprep.subr.bf16.mxu0 %v8722_v4 }
 0x83b   : > { %4218 = vmatprep.subr.bf16.mxu1 %v8712_v19 }
 0x83c   : > { %3853 = vmatmul.mubr.bf16.vlgmr.msra.gmra.mxu0 %v3420_v63 }
 0x83d   : > { %3896 = vmatmul.mubr.bf16.vlgmr.msra.gmra.mxu1 %v3422_v38  ;;  %8127 = vmatpush3.bf16.msra.mxu0 %v8723_v23 }
 0x83e   : > { %4219 = vmatpush1.bf16.msra.mxu1 %v8710_v5  ;;  %4242 = vmatprep.mubr.bf16.mxu1 %v9691_v7 }
 0x83f   : > { %4220 = vmatprep.subr.bf16.mxu1 %v8715_v34  ;;  %8128 = vmatprep.subr.bf16.mxu0 %v8727_v51 }
 0x841   : > { %8129 = vmatpush3.bf16.msra.mxu0 %v8728_v13 }
 0x842   : > { %4221 = vmatpush1.bf16.msra.mxu1 %v8713_v15  ;;  %8130 = vmatprep.subr.bf16.mxu0 %v8732_v25 }
 0x843   : > { %4222 = vmatprep.subr.bf16.mxu1 %v8718_v28 }
 0x845   : > { %8131 = vmatpush3.bf16.msra.mxu0 %v8733_v27 }
 0x846   : > { %4223 = vmatpush1.bf16.msra.mxu1 %v8716_v37  ;;  %8132 = vmatprep.subr.bf16.mxu0 %v8737_v59  ;;  %v9692_v37 = vmov 1966171168  }
 0x847   : > { %4224 = vmatprep.subr.bf16.mxu1 %v8721_v9  ;;  %v4299_v26 = vunpack.c.l.s4 %v9692_v37  ;;  %v10841_v9 = vld [vmem:[#allocation52_spill] sm:$0xff] }
 0x849   : > { %8133 = vmatpush3.bf16.msra.mxu0 %v8738_v36  ;;  %v4300_v27 = vunpack.c.0.s8 %v4299_v26 }
 0x84a   : > { %4225 = vmatpush1.bf16.msra.mxu1 %v8719_v30  ;;  %8134 = vmatprep.subr.bf16.mxu0 %v8742_v56  ;;  %v7656_v56 = vld [vmem:[#allocation23] ss:$0 sm:$0xff] }
 0x84b   : > { %4259 = vmatprep.subr.bf16.mxu1 %v8726_v48  ;;  %v10625_v59 = vsub.s32 %v4300_v27, %v10841_v9 }
 0x84d   : > { %7689 = vmatmul.mubr.msk.bf16.vlgmr.msra.gmra.mxu1 %vm1926_vm6, %v4110_v53  ;;  %8135 = vmatpush3.bf16.msra.mxu0 %v8743_v21 }
 0x84e   : > { %4260 = vmatpush1.bf16.msra.mxu1 %v8724_v32  ;;  %4283 = vmatprep.mubr.bf16.mxu1 %v9691_v7 }
 0x84f   : > { %4261 = vmatprep.subr.bf16.mxu1 %v8731_v14  ;;  %8136 = vmatprep.subr.bf16.mxu0 %v8744_v41 }
 0x851   : > { %8137 = vmatpush3.bf16.msra.mxu0 %v8745_v58 }
 0x852   : > { %4262 = vmatpush1.bf16.msra.mxu1 %v8729_v18  ;;  %8138 = vmatprep.subr.bf16.mxu0 %v8746_v10 }
 0x853   : > { %4263 = vmatprep.subr.bf16.mxu1 %v8736_v16  ;;  %v4109_v16 = vld [vmem:[#allocation29] sm:$0xf] }
 0x855   : > { %8139 = vmatpush3.bf16.msra.mxu0 %v8747_v55 }
 0x856   : > { %4264 = vmatpush1.bf16.msra.mxu1 %v8734_v24  ;;  %8140 = vmatprep.subr.bf16.mxu0 %v8748_v0 }
 0x857   : > { %4265 = vmatprep.subr.bf16.mxu1 %v8741_v45 }
 0x859   : > { %8141 = vmatpush3.bf16.msra.mxu0 %v8749_v1 }
 0x85a   : > { %4266 = vmatpush1.bf16.msra.mxu1 %v8739_v35 }
 0x85d   : > { %7690 = vmatmul.mubr.msk.bf16.vlgmr.msra.gmra.mxu1 %vm1926_vm6, %v4110_v53 }
 0x8fc   : > { %v3854_v22 = vpop.f32.mrf.mxu0 }
 0x8fd   : > { %v3897_v40 = vpop.f32.mrf.mxu1  ;;  %v3855_v43 = vadd.f32 %v3854_v22, %v3493_v20 }
 0x8fe   : > { %v3856_v54 = vpop.f32.mrf.mxu0 }
 0x8ff   : > { %v3899_v44 = vpop.f32.mrf.mxu1  ;;  %v3857_v60 = vadd.f32 %v3856_v54, %v3497_v57  ;;  %v3898_v8 = vadd.f32 %v3897_v40, %v3855_v43 }
 0x900   : > { %v3858_v29 = vpop.f32.mrf.mxu0 }
 0x901   : > { %v3859_v2 = vadd.f32 %v3858_v29, %v3493_v20  ;;  %v3901_v6 = vpop.f32.mrf.mxu1  ;;  %v3900_v11 = vadd.f32 %v3899_v44, %v3857_v60  ;;  %v3910_v5 = vmul.f32 0.01, %v3898_v8  ;;  %vm3906_vm12 = vcmp.ge.f32.partialorder %v3898_v8, 0.0 }
 0x902   : > { %v3860_v3 = vpop.f32.mrf.mxu0 }
 0x903   : > { %v3902_v12 = vadd.f32 %v3901_v6, %v3859_v2  ;;  %v3861_v42 = vadd.f32 %v3860_v3, %v3497_v57  ;;  %v3903_v61 = vpop.f32.mrf.mxu1  ;;  %v3911_v19 = vmul.f32 0.01, %v3900_v11  ;;  %vm3907_vm11 = vcmp.ge.f32.partialorder %v3900_v11, 0.0 }
 0x904   : > { %v3914_v51 = vsel %vm3906_vm12, %v3898_v8, %v3910_v5 }
 0x905   : > { %v3912_v31 = vmul.f32 0.01, %v3902_v12  ;;  %vm3908_vm10 = vcmp.ge.f32.partialorder %v3902_v12, 0.0  ;;  %v3904_v4 = vadd.f32 %v3903_v61, %v3861_v42  ;;  %v3915_v38 = vsel %vm3907_vm11, %v3900_v11, %v3911_v19 }
 0x907   : > { %vm3909_vm13 = vcmp.ge.f32.partialorder %v3904_v4, 0.0  ;;  %v3913_v23 = vmul.f32 0.01, %v3904_v4  ;;  %v3916_v63 = vsel %vm3908_vm10, %v3902_v12, %v3912_v31 }
 0x908   : > { %v3918_v17 = vpack.c.bf16 %v3916_v63, %v3914_v51 }
 0x909   : > { %v3917_v34 = vsel %vm3909_vm13, %v3904_v4, %v3913_v23 }
 0x90a   : > { %v3919_v15 = vpack.c.bf16 %v3917_v34, %v3915_v38 }
 0x90c   : > { %4087 = vmatprep.mubr.bf16.mxu0 %v3919_v15 }
 0x90d   : > { %v4244_v62 = vpop.f32.mrf.mxu1  ;;  %4088 = vmatmul.mubr.bf16.vlgmr.msra.gmra.mxu0 %v3918_v17 }
 0x90f   : > { %v4246_v13 = vpop.f32.mrf.mxu1 }
 0x910   : > { %v4296_v28 = vcombine.low %v4244_v62, %v4246_v13 }
 0x911   : > { %v4248_v25 = vpop.f32.mrf.mxu1 }
 0x912   : > { %v4304_v36 = vrot.slane %v4296_v28, %v10625_v59 }
 0x913   : > { %v4249_v39 = vpop.f32.mrf.mxu1 }
 0x91d   : > { %v4285_v33 = vpop.f32.mrf.mxu1 }
 0x91f   : > { %v4287_v30 = vpop.f32.mrf.mxu1 }
 0x920   : > { %v4297_v48 = vcombine.low %v4285_v33, %v4287_v30 }
 0x921   : > { %v4289_v53 = vpop.f32.mrf.mxu1 }
 0x922   : > { %v4311_v32 = vrot.slane %v4297_v48, %v10625_v59 }
 0x923   : > { %v4290_v14 = vpop.f32.mrf.mxu1 }
 0x924   : > { %v4312_v18 = vcombine.low %v4304_v36, %v4311_v32 }
 0x926   : > { %v4319_v24 = vrot.slane %v4312_v18, %v10625_v59 }
 0x928   : > { %v10630_v45 = vadd.f32 %v4319_v24, %v4109_v16 }
 0x9cd   : > { %v8142_v35 = vpop.f32.mrf.mxu0 }
 0x9cf   : > { %v8143_v21 = vpop.f32.mrf.mxu0 }
 0x9d0   : > { %v8144_v41 = vadd.f32 %v8143_v21, %v8142_v35 }
 0x9d1   : > { %v8145_v58 = vpop.f32.mrf.mxu0 }
 0x9d2   : > { %v4090_v10 = vadd.f32 %v8144_v41, %v7656_v56 }
 0x9d3   : > { %v8146_v55 = vpop.f32.mrf.mxu0 }
 0x9d4   : > { %v8147_v0 = vadd.f32 %v8146_v55, %v8145_v58  ;;  %v4098_v1 = vmul.f32 0.01, %v4090_v10  ;;  %vm4096_vm14 = vcmp.ge.f32.partialorder %v4090_v10, 0.0 }
 0x9d6   : > { %v4093_v52 = vadd.f32 %v8147_v0, %v7656_v56  ;;  %v4100_v57 = vsel %vm4096_vm14, %v4090_v10, %v4098_v1 }
 0x9d8   : > { %vm4097_vm15 = vcmp.ge.f32.partialorder %v4093_v52, 0.0  ;;  %v4099_v20 = vmul.f32 0.01, %v4093_v52 }
 0x9da   : > { %v4101_v22 = vsel %vm4097_vm15, %v4093_v52, %v4099_v20 }
 0x9db   : > { %v10632_v40 = vpack.c.bf16 %v4101_v22, %v4100_v57 }
 0x9dc   : > { %9661 = dma.done.wait [#allocation5 + $0x2], 36864 }
 0x9dd   : > { %9662 = vsyncadd [#allocation5 + $0x2], 4294930432  ;;  %4550 = vmatprep.mubr.bf16.mxu0 %v9691_v7  ;;  %4591 = vmatprep.mubr.bf16.mxu1 %v9691_v7  ;;  %v8750_v54 = vld [vmem:[#allocation4 + $0xe4] ss:$16 sps:$4 sm:$0xff]   ;;  %v8752_v44 = vld [vmem:[#allocation4 + $0xec] ss:$16 sps:$4 sm:$0xff]  }
 0x9de   : > { %4518 = vmatprep.subr.bf16.mxu0 %v8750_v54  ;;  %v8754_v43 = vld [vmem:[#allocation4 + $0xe0] ss:$16 sps:$4 sm:$0xff]   ;;  %v8755_v60 = vld [vmem:[#allocation4 + $0xe8] ss:$16 sps:$4 sm:$0xff]   ;;  %4559 = vmatprep.subr.bf16.mxu1 %v8752_v44  ;;  %v8756_v29 = vld [vmem:[#allocation4 + $0xc4] ss:$16 sps:$4 sm:$0xff]  }
 0x9df   : > { %4519 = vmatpush1.bf16.msra.mxu0 %v8754_v43  ;;  %4560 = vmatpush1.bf16.msra.mxu1 %v8755_v60  ;;  %v8758_v2 = vld [vmem:[#allocation4 + $0xcc] ss:$16 sps:$4 sm:$0xff]   ;;  %v8760_v6 = vld [vmem:[#allocation4 + $0xc0] ss:$16 sps:$4 sm:$0xff]   ;;  %v8761_v11 = vld [vmem:[#allocation4 + $0xc8] ss:$16 sps:$4 sm:$0xff]  }
 0x9e0   : > { %4520 = vmatprep.subr.bf16.mxu0 %v8756_v29  ;;  %4561 = vmatprep.subr.bf16.mxu1 %v8758_v2  ;;  %v8762_v3 = vld [vmem:[#allocation4 + $0xa4] ss:$16 sps:$4 sm:$0xff]   ;;  %v8764_v8 = vld [vmem:[#allocation4 + $0xac] ss:$16 sps:$4 sm:$0xff]   ;;  %v8766_v12 = vld [vmem:[#allocation4 + $0xa0] ss:$16 sps:$4 sm:$0xff]  }
 0x9e1   : > { %v8767_v42 = vld [vmem:[#allocation4 + $0xa8] ss:$16 sps:$4 sm:$0xff]   ;;  %v8768_v31 = vld [vmem:[#allocation4 + $0x84] ss:$16 sps:$4 sm:$0xff]   ;;  %v8770_v61 = vld [vmem:[#allocation4 + $0x8c] ss:$16 sps:$4 sm:$0xff]  }
 0x9e2   : > { %v8772_v19 = vld [vmem:[#allocation4 + $0x80] ss:$16 sps:$4 sm:$0xff]   ;;  %v8773_v4 = vld [vmem:[#allocation4 + $0x88] ss:$16 sps:$4 sm:$0xff]   ;;  %v8774_v5 = vld [vmem:[#allocation4 + $0x64] ss:$16 sps:$4 sm:$0xff]  }
 0x9e3   : > { %4521 = vmatpush1.bf16.msra.mxu0 %v8760_v6  ;;  %4562 = vmatpush1.bf16.msra.mxu1 %v8761_v11  ;;  %v8776_v23 = vld [vmem:[#allocation4 + $0x6c] ss:$16 sps:$4 sm:$0xff]   ;;  %v8778_v63 = vld [vmem:[#allocation4 + $0x60] ss:$16 sps:$4 sm:$0xff]   ;;  %v8779_v38 = vld [vmem:[#allocation4 + $0x68] ss:$16 sps:$4 sm:$0xff]  }
 0x9e4   : > { %4522 = vmatprep.subr.bf16.mxu0 %v8762_v3  ;;  %4563 = vmatprep.subr.bf16.mxu1 %v8764_v8  ;;  %v8780_v34 = vld [vmem:[#allocation4 + $0x44] ss:$16 sps:$4 sm:$0xff]   ;;  %v8782_v51 = vld [vmem:[#allocation4 + $0x4c] ss:$16 sps:$4 sm:$0xff]   ;;  %v8784_v15 = vld [vmem:[#allocation4 + $0x40] ss:$16 sps:$4 sm:$0xff]  }
 0x9e5   : > { %v8785_v17 = vld [vmem:[#allocation4 + $0x48] ss:$16 sps:$4 sm:$0xff]   ;;  %v8786_v62 = vld [vmem:[#allocation4 + $0x24] ss:$16 sps:$4 sm:$0xff]   ;;  %v8788_v13 = vld [vmem:[#allocation4 + $0x2c] ss:$16 sps:$4 sm:$0xff]  }
 0x9e6   : > { %v8790_v28 = vld [vmem:[#allocation4 + $0x20] ss:$16 sps:$4 sm:$0xff]   ;;  %v8791_v25 = vld [vmem:[#allocation4 + $0x28] ss:$16 sps:$4 sm:$0xff]   ;;  %v8792_v39 = vld [vmem:[#allocation4 + $0x4] ss:$16 sps:$4 sm:$0xff]  }
 0x9e7   : > { %4523 = vmatpush1.bf16.msra.mxu0 %v8766_v12  ;;  %4564 = vmatpush1.bf16.msra.mxu1 %v8767_v42  ;;  %v8794_v37 = vld [vmem:[#allocation4 + $0xc] ss:$16 sps:$4 sm:$0xff]   ;;  %v8796_v26 = vld [vmem:[#allocation4] ss:$16 sps:$4 sm:$0xff]   ;;  %v8797_v27 = vld [vmem:[#allocation4 + $0x8] ss:$16 sps:$4 sm:$0xff]  }
 0x9e8   : > { %4524 = vmatprep.subr.bf16.mxu0 %v8768_v31  ;;  %4565 = vmatprep.subr.bf16.mxu1 %v8770_v61  ;;  %v8800_v9 = vld [vmem:[#allocation4 + $0x1e4] ss:$16 sps:$4 sm:$0xff]   ;;  %v8803_v33 = vld [vmem:[#allocation4 + $0x1ec] ss:$16 sps:$4 sm:$0xff]   ;;  %v8798_v30 = vld [vmem:[#allocation4 + $0x1e0] ss:$16 sps:$4 sm:$0xff]  }
 0x9e9   : > { %v8801_v36 = vld [vmem:[#allocation4 + $0x1e8] ss:$16 sps:$4 sm:$0xff]   ;;  %v8806_v48 = vld [vmem:[#allocation4 + $0x1c4] ss:$16 sps:$4 sm:$0xff]   ;;  %v8809_v53 = vld [vmem:[#allocation4 + $0x1cc] ss:$16 sps:$4 sm:$0xff]  }
 0x9ea   : > { %v8804_v32 = vld [vmem:[#allocation4 + $0x1c0] ss:$16 sps:$4 sm:$0xff]   ;;  %v8807_v14 = vld [vmem:[#allocation4 + $0x1c8] ss:$16 sps:$4 sm:$0xff]   ;;  %v8812_v18 = vld [vmem:[#allocation4 + $0x1a4] ss:$16 sps:$4 sm:$0xff]  }
 0x9eb   : > { %4525 = vmatpush1.bf16.msra.mxu0 %v8772_v19  ;;  %4566 = vmatpush1.bf16.msra.mxu1 %v8773_v4  ;;  %v8815_v16 = vld [vmem:[#allocation4 + $0x1ac] ss:$16 sps:$4 sm:$0xff]   ;;  %v8810_v24 = vld [vmem:[#allocation4 + $0x1a0] ss:$16 sps:$4 sm:$0xff]   ;;  %v8813_v35 = vld [vmem:[#allocation4 + $0x1a8] ss:$16 sps:$4 sm:$0xff]  }
 0x9ec   : > { %4526 = vmatprep.subr.bf16.mxu0 %v8774_v5  ;;  %4567 = vmatprep.subr.bf16.mxu1 %v8776_v23  ;;  %v8818_v56 = vld [vmem:[#allocation4 + $0x184] ss:$16 sps:$4 sm:$0xff]   ;;  %v8821_v21 = vld [vmem:[#allocation4 + $0x18c] ss:$16 sps:$4 sm:$0xff]   ;;  %v8816_v41 = vld [vmem:[#allocation4 + $0x180] ss:$16 sps:$4 sm:$0xff]  }
 0x9ed   : > { %v8819_v58 = vld [vmem:[#allocation4 + $0x188] ss:$16 sps:$4 sm:$0xff]   ;;  %v8824_v10 = vld [vmem:[#allocation4 + $0x164] ss:$16 sps:$4 sm:$0xff]   ;;  %v8827_v55 = vld [vmem:[#allocation4 + $0x16c] ss:$16 sps:$4 sm:$0xff]  }
 0x9ee   : > { %v8822_v0 = vld [vmem:[#allocation4 + $0x160] ss:$16 sps:$4 sm:$0xff]   ;;  %v8825_v1 = vld [vmem:[#allocation4 + $0x168] ss:$16 sps:$4 sm:$0xff]   ;;  %v8830_v52 = vld [vmem:[#allocation4 + $0x144] ss:$16 sps:$4 sm:$0xff]  }
 0x9ef   : > { %4527 = vmatpush1.bf16.msra.mxu0 %v8778_v63  ;;  %4568 = vmatpush1.bf16.msra.mxu1 %v8779_v38  ;;  %v8833_v20 = vld [vmem:[#allocation4 + $0x14c] ss:$16 sps:$4 sm:$0xff]   ;;  %v8828_v57 = vld [vmem:[#allocation4 + $0x140] ss:$16 sps:$4 sm:$0xff]   ;;  %v8831_v22 = vld [vmem:[#allocation4 + $0x148] ss:$16 sps:$4 sm:$0xff]  }
 0x9f0   : > { %4528 = vmatprep.subr.bf16.mxu0 %v8780_v34  ;;  %4569 = vmatprep.subr.bf16.mxu1 %v8782_v51  ;;  %v8836_v54 = vld [vmem:[#allocation4 + $0x124] ss:$16 sps:$4 sm:$0xff]   ;;  %v8839_v44 = vld [vmem:[#allocation4 + $0x12c] ss:$16 sps:$4 sm:$0xff]   ;;  %v8834_v43 = vld [vmem:[#allocation4 + $0x120] ss:$16 sps:$4 sm:$0xff]  }
 0x9f1   : > { %v8837_v60 = vld [vmem:[#allocation4 + $0x128] ss:$16 sps:$4 sm:$0xff]   ;;  %v8842_v29 = vld [vmem:[#allocation4 + $0x104] ss:$16 sps:$4 sm:$0xff]   ;;  %v8845_v2 = vld [vmem:[#allocation4 + $0x10c] ss:$16 sps:$4 sm:$0xff]  }
 0x9f2   : > { %v8840_v6 = vld [vmem:[#allocation4 + $0x100] ss:$16 sps:$4 sm:$0xff]   ;;  %v8843_v11 = vld [vmem:[#allocation4 + $0x108] ss:$16 sps:$4 sm:$0xff]   ;;  %v8848_v3 = vld [vmem:[#allocation4 + $0x2e4] ss:$16 sps:$4 sm:$0xff]  }
 0x9f3   : > { %4529 = vmatpush1.bf16.msra.mxu0 %v8784_v15  ;;  %4570 = vmatpush1.bf16.msra.mxu1 %v8785_v17  ;;  %v8851_v8 = vld [vmem:[#allocation4 + $0x2ec] ss:$16 sps:$4 sm:$0xff]   ;;  %v10641_v12 = vshrl.u32 %v10632_v40, 16  ;;  %v8846_v42 = vld [vmem:[#allocation4 + $0x2e0] ss:$16 sps:$4 sm:$0xff]   ;;  %vm7107_vm1 = vcmask 1040384  }
 0x9f4   : > { %4530 = vmatprep.subr.bf16.mxu0 %v8786_v62  ;;  %4571 = vmatprep.subr.bf16.mxu1 %v8788_v13  ;;  %v8849_v31 = vld [vmem:[#allocation4 + $0x2e8] ss:$16 sps:$4 sm:$0xff]   ;;  %v8854_v61 = vld [vmem:[#allocation4 + $0x2c4] ss:$16 sps:$4 sm:$0xff]   ;;  %v8857_v19 = vld [vmem:[#allocation4 + $0x2cc] ss:$16 sps:$4 sm:$0xff]  }
 0x9f5   : > { %v8852_v4 = vld [vmem:[#allocation4 + $0x2c0] ss:$16 sps:$4 sm:$0xff]   ;;  %v8855_v5 = vld [vmem:[#allocation4 + $0x2c8] ss:$16 sps:$4 sm:$0xff]   ;;  %v8860_v23 = vld [vmem:[#allocation4 + $0x2a4] ss:$16 sps:$4 sm:$0xff]  }
 0x9f6   : > { %v8863_v63 = vld [vmem:[#allocation4 + $0x2ac] ss:$16 sps:$4 sm:$0xff]   ;;  %v8858_v38 = vld [vmem:[#allocation4 + $0x2a0] ss:$16 sps:$4 sm:$0xff]   ;;  %v8861_v34 = vld [vmem:[#allocation4 + $0x2a8] ss:$16 sps:$4 sm:$0xff]  }
 0x9f7   : > { %4531 = vmatpush1.bf16.msra.mxu0 %v8790_v28  ;;  %4572 = vmatpush1.bf16.msra.mxu1 %v8791_v25  ;;  %v8866_v51 = vld [vmem:[#allocation4 + $0x284] ss:$16 sps:$4 sm:$0xff]   ;;  %v8869_v15 = vld [vmem:[#allocation4 + $0x28c] ss:$16 sps:$4 sm:$0xff]   ;;  %v8864_v17 = vld [vmem:[#allocation4 + $0x280] ss:$16 sps:$4 sm:$0xff]  }
 0x9f8   : > { %4532 = vmatprep.subr.bf16.mxu0 %v8792_v39  ;;  %4573 = vmatprep.subr.bf16.mxu1 %v8794_v37  ;;  %v8867_v62 = vld [vmem:[#allocation4 + $0x288] ss:$16 sps:$4 sm:$0xff]   ;;  %v8872_v13 = vld [vmem:[#allocation4 + $0x264] ss:$16 sps:$4 sm:$0xff]   ;;  %v8875_v28 = vld [vmem:[#allocation4 + $0x26c] ss:$16 sps:$4 sm:$0xff]  }
 0x9f9   : > { %v8870_v25 = vld [vmem:[#allocation4 + $0x260] ss:$16 sps:$4 sm:$0xff]   ;;  %v8873_v39 = vld [vmem:[#allocation4 + $0x268] ss:$16 sps:$4 sm:$0xff]   ;;  %v8878_v37 = vld [vmem:[#allocation4 + $0x244] ss:$16 sps:$4 sm:$0xff]  }
 0x9fa   : > { %s7117_s2 = sld [smem:[#allocation7]] }
 0x9fb   : > { %4533 = vmatpush1.bf16.msra.mxu0 %v8796_v26  ;;  %4574 = vmatpush1.bf16.msra.mxu1 %v8797_v27  ;;  %v8881_v26 = vld [vmem:[#allocation4 + $0x24c] ss:$16 sps:$4 sm:$0xff]   ;;  %v8876_v27 = vld [vmem:[#allocation4 + $0x240] ss:$16 sps:$4 sm:$0xff]  }
 0x9fc   : > { %4826 = vmatprep.subr.bf16.mxu0 %v8800_v9  ;;  %4867 = vmatprep.subr.bf16.mxu1 %v8803_v33  ;;  %v8879_v9 = vld [vmem:[#allocation4 + $0x248] ss:$16 sps:$4 sm:$0xff]   ;;  %v8884_v33 = vld [vmem:[#allocation4 + $0x224] ss:$16 sps:$4 sm:$0xff]  }
 0x9fe   : > { %4551 = vmatmul.mubr.bf16.vlgmr.msra.gmra.mxu0 %v10632_v40  ;;  %4592 = vmatmul.mubr.bf16.vlgmr.msra.gmra.mxu1 %v10632_v40 }
 0x9ff   : > { %4827 = vmatpush1.bf16.msra.mxu0 %v8798_v30  ;;  %4868 = vmatpush1.bf16.msra.mxu1 %v8801_v36  ;;  %v8887_v30 = vld [vmem:[#allocation4 + $0x22c] ss:$16 sps:$4 sm:$0xff]   ;;  %v8882_v36 = vld [vmem:[#allocation4 + $0x220] ss:$16 sps:$4 sm:$0xff]  }
 0xa00   : > { %4828 = vmatprep.subr.bf16.mxu0 %v8806_v48  ;;  %4869 = vmatprep.subr.bf16.mxu1 %v8809_v53  ;;  %v8885_v48 = vld [vmem:[#allocation4 + $0x228] ss:$16 sps:$4 sm:$0xff]   ;;  %v8890_v53 = vld [vmem:[#allocation4 + $0x204] ss:$16 sps:$4 sm:$0xff]  }
 0xa01   : > { %4858 = vmatprep.mubr.bf16.mxu0 %v9691_v7  ;;  %4899 = vmatprep.mubr.bf16.mxu1 %v9691_v7 }
 0xa03   : > { %4829 = vmatpush1.bf16.msra.mxu0 %v8804_v32  ;;  %4870 = vmatpush1.bf16.msra.mxu1 %v8807_v14  ;;  %v8893_v32 = vld [vmem:[#allocation4 + $0x20c] ss:$16 sps:$4 sm:$0xff]   ;;  %v8888_v14 = vld [vmem:[#allocation4 + $0x200] ss:$16 sps:$4 sm:$0xff]  }
 0xa04   : > { %4830 = vmatprep.subr.bf16.mxu0 %v8812_v18  ;;  %4871 = vmatprep.subr.bf16.mxu1 %v8815_v16  ;;  %v8891_v18 = vld [vmem:[#allocation4 + $0x208] ss:$16 sps:$4 sm:$0xff]   ;;  %v8896_v16 = vld [vmem:[#allocation4 + $0x3e4] ss:$16 sps:$4 sm:$0xff]  }
 0xa07   : > { %4831 = vmatpush1.bf16.msra.mxu0 %v8810_v24  ;;  %4872 = vmatpush1.bf16.msra.mxu1 %v8813_v35  ;;  %v8899_v24 = vld [vmem:[#allocation4 + $0x3ec] ss:$16 sps:$4 sm:$0xff]   ;;  %v4971_v35 = vrot.slane %v10632_v40, 1 }
 0xa08   : > { %4832 = vmatprep.subr.bf16.mxu0 %v8818_v56  ;;  %4873 = vmatprep.subr.bf16.mxu1 %v8821_v21  ;;  %v8894_v56 = vld [vmem:[#allocation4 + $0x3e0] ss:$16 sps:$4 sm:$0xff]   ;;  %v8897_v21 = vld [vmem:[#allocation4 + $0x3e8] ss:$16 sps:$4 sm:$0xff]  }
 0xa0b   : > { %4833 = vmatpush1.bf16.msra.mxu0 %v8816_v41  ;;  %4874 = vmatpush1.bf16.msra.mxu1 %v8819_v58  ;;  %v8902_v41 = vld [vmem:[#allocation4 + $0x3c4] ss:$16 sps:$4 sm:$0xff]   ;;  %v8905_v58 = vld [vmem:[#allocation4 + $0x3cc] ss:$16 sps:$4 sm:$0xff]  }
 0xa0c   : > { %4834 = vmatprep.subr.bf16.mxu0 %v8824_v10  ;;  %4875 = vmatprep.subr.bf16.mxu1 %v8827_v55  ;;  %v8900_v10 = vld [vmem:[#allocation4 + $0x3c0] ss:$16 sps:$4 sm:$0xff]   ;;  %v8903_v55 = vld [vmem:[#allocation4 + $0x3c8] ss:$16 sps:$4 sm:$0xff]  }
 0xa0f   : > { %4835 = vmatpush1.bf16.msra.mxu0 %v8822_v0  ;;  %4876 = vmatpush1.bf16.msra.mxu1 %v8825_v1  ;;  %v8908_v0 = vld [vmem:[#allocation4 + $0x3a4] ss:$16 sps:$4 sm:$0xff]   ;;  %v8911_v1 = vld [vmem:[#allocation4 + $0x3ac] ss:$16 sps:$4 sm:$0xff]  }
 0xa10   : > { %4836 = vmatprep.subr.bf16.mxu0 %v8830_v52  ;;  %4877 = vmatprep.subr.bf16.mxu1 %v8833_v20  ;;  %v8906_v52 = vld [vmem:[#allocation4 + $0x3a0] ss:$16 sps:$4 sm:$0xff]   ;;  %v8909_v20 = vld [vmem:[#allocation4 + $0x3a8] ss:$16 sps:$4 sm:$0xff]  }
 0xa13   : > { %4837 = vmatpush1.bf16.msra.mxu0 %v8828_v57  ;;  %4878 = vmatpush1.bf16.msra.mxu1 %v8831_v22  ;;  %v8914_v57 = vld [vmem:[#allocation4 + $0x384] ss:$16 sps:$4 sm:$0xff]   ;;  %v8917_v22 = vld [vmem:[#allocation4 + $0x38c] ss:$16 sps:$4 sm:$0xff]  }
 0xa14   : > { %4838 = vmatprep.subr.bf16.mxu0 %v8836_v54  ;;  %4879 = vmatprep.subr.bf16.mxu1 %v8839_v44  ;;  %v8912_v54 = vld [vmem:[#allocation4 + $0x380] ss:$16 sps:$4 sm:$0xff]   ;;  %v8915_v44 = vld [vmem:[#allocation4 + $0x388] ss:$16 sps:$4 sm:$0xff]  }
 0xa17   : > { %4839 = vmatpush1.bf16.msra.mxu0 %v8834_v43  ;;  %4880 = vmatpush1.bf16.msra.mxu1 %v8837_v60  ;;  %v8920_v43 = vld [vmem:[#allocation4 + $0x364] ss:$16 sps:$4 sm:$0xff]   ;;  %v8923_v60 = vld [vmem:[#allocation4 + $0x36c] ss:$16 sps:$4 sm:$0xff]  }
 0xa18   : > { %4840 = vmatprep.subr.bf16.mxu0 %v8842_v29  ;;  %4881 = vmatprep.subr.bf16.mxu1 %v8845_v2  ;;  %v8918_v29 = vld [vmem:[#allocation4 + $0x360] ss:$16 sps:$4 sm:$0xff]   ;;  %v8921_v2 = vld [vmem:[#allocation4 + $0x368] ss:$16 sps:$4 sm:$0xff]  }
 0xa1b   : > { %4841 = vmatpush1.bf16.msra.mxu0 %v8840_v6  ;;  %4882 = vmatpush1.bf16.msra.mxu1 %v8843_v11  ;;  %v8926_v6 = vld [vmem:[#allocation4 + $0x344] ss:$16 sps:$4 sm:$0xff]   ;;  %v8929_v11 = vld [vmem:[#allocation4 + $0x34c] ss:$16 sps:$4 sm:$0xff]  }
 0xa1c   : > { %5133 = vmatprep.subr.bf16.mxu0 %v8848_v3  ;;  %5174 = vmatprep.subr.bf16.mxu1 %v8851_v8  ;;  %v8924_v3 = vld [vmem:[#allocation4 + $0x340] ss:$16 sps:$4 sm:$0xff]   ;;  %v8927_v8 = vld [vmem:[#allocation4 + $0x348] ss:$16 sps:$4 sm:$0xff]  }
 0xa1e   : > { %4859 = vmatmul.mubr.bf16.vlgmr.msra.gmra.mxu0 %v10641_v12  ;;  %4900 = vmatmul.mubr.bf16.vlgmr.msra.gmra.mxu1 %v10641_v12 }
 0xa1f   : > { %5134 = vmatpush1.bf16.msra.mxu0 %v8846_v42  ;;  %5175 = vmatpush1.bf16.msra.mxu1 %v8849_v31  ;;  %v8932_v42 = vld [vmem:[#allocation4 + $0x324] ss:$16 sps:$4 sm:$0xff]   ;;  %v8935_v31 = vld [vmem:[#allocation4 + $0x32c] ss:$16 sps:$4 sm:$0xff]  }
 0xa20   : > { %5135 = vmatprep.subr.bf16.mxu0 %v8854_v61  ;;  %5176 = vmatprep.subr.bf16.mxu1 %v8857_v19  ;;  %v8930_v61 = vld [vmem:[#allocation4 + $0x320] ss:$16 sps:$4 sm:$0xff]   ;;  %v8933_v19 = vld [vmem:[#allocation4 + $0x328] ss:$16 sps:$4 sm:$0xff]  }
 0xa21   : > { %5165 = vmatprep.mubr.bf16.mxu0 %v9691_v7  ;;  %5206 = vmatprep.mubr.bf16.mxu1 %v9691_v7 }
 0xa23   : > { %5136 = vmatpush1.bf16.msra.mxu0 %v8852_v4  ;;  %5177 = vmatpush1.bf16.msra.mxu1 %v8855_v5  ;;  %v8938_v4 = vld [vmem:[#allocation4 + $0x304] ss:$16 sps:$4 sm:$0xff]   ;;  %v8941_v5 = vld [vmem:[#allocation4 + $0x30c] ss:$16 sps:$4 sm:$0xff]  }
 0xa24   : > { %5137 = vmatprep.subr.bf16.mxu0 %v8860_v23  ;;  %5178 = vmatprep.subr.bf16.mxu1 %v8863_v63  ;;  %v8936_v23 = vld [vmem:[#allocation4 + $0x300] ss:$16 sps:$4 sm:$0xff]   ;;  %v8939_v63 = vld [vmem:[#allocation4 + $0x308] ss:$16 sps:$4 sm:$0xff]  }
 0xa27   : > { %5138 = vmatpush1.bf16.msra.mxu0 %v8858_v38  ;;  %5179 = vmatpush1.bf16.msra.mxu1 %v8861_v34  ;;  %v8944_v38 = vld [vmem:[#allocation4 + $0x4e4] ss:$16 sps:$4 sm:$0xff]   ;;  %v8947_v34 = vld [vmem:[#allocation4 + $0x4ec] ss:$16 sps:$4 sm:$0xff]  }
 0xa28   : > { %5139 = vmatprep.subr.bf16.mxu0 %v8866_v51  ;;  %5180 = vmatprep.subr.bf16.mxu1 %v8869_v15  ;;  %v5277_v51 = vrot.slane %v10641_v12, 1  ;;  %v8942_v15 = vld [vmem:[#allocation4 + $0x4e0] ss:$16 sps:$4 sm:$0xff]  }
 0xa2b   : > { %5140 = vmatpush1.bf16.msra.mxu0 %v8864_v17  ;;  %5181 = vmatpush1.bf16.msra.mxu1 %v8867_v62  ;;  %v8945_v17 = vld [vmem:[#allocation4 + $0x4e8] ss:$16 sps:$4 sm:$0xff]   ;;  %v8950_v62 = vld [vmem:[#allocation4 + $0x4c4] ss:$16 sps:$4 sm:$0xff]  }
 0xa2c   : > { %5141 = vmatprep.subr.bf16.mxu0 %v8872_v13  ;;  %5182 = vmatprep.subr.bf16.mxu1 %v8875_v28  ;;  %v8953_v13 = vld [vmem:[#allocation4 + $0x4cc] ss:$16 sps:$4 sm:$0xff]   ;;  %v8948_v28 = vld [vmem:[#allocation4 + $0x4c0] ss:$16 sps:$4 sm:$0xff]  }
 0xa2f   : > { %5142 = vmatpush1.bf16.msra.mxu0 %v8870_v25  ;;  %5183 = vmatpush1.bf16.msra.mxu1 %v8873_v39  ;;  %v8951_v25 = vld [vmem:[#allocation4 + $0x4c8] ss:$16 sps:$4 sm:$0xff]   ;;  %v8956_v39 = vld [vmem:[#allocation4 + $0x4a4] ss:$16 sps:$4 sm:$0xff]  }
 0xa30   : > { %5143 = vmatprep.subr.bf16.mxu0 %v8878_v37  ;;  %5184 = vmatprep.subr.bf16.mxu1 %v8881_v26  ;;  %v8959_v37 = vld [vmem:[#allocation4 + $0x4ac] ss:$16 sps:$4 sm:$0xff]   ;;  %v8954_v26 = vld [vmem:[#allocation4 + $0x4a0] ss:$16 sps:$4 sm:$0xff]  }
 0xa33   : > { %5144 = vmatpush1.bf16.msra.mxu0 %v8876_v27  ;;  %5185 = vmatpush1.bf16.msra.mxu1 %v8879_v9  ;;  %v8957_v27 = vld [vmem:[#allocation4 + $0x4a8] ss:$16 sps:$4 sm:$0xff]   ;;  %v8962_v9 = vld [vmem:[#allocation4 + $0x484] ss:$16 sps:$4 sm:$0xff]  }
 0xa34   : > { %5145 = vmatprep.subr.bf16.mxu0 %v8884_v33  ;;  %5186 = vmatprep.subr.bf16.mxu1 %v8887_v30  ;;  %v8965_v33 = vld [vmem:[#allocation4 + $0x48c] ss:$16 sps:$4 sm:$0xff]   ;;  %v8960_v30 = vld [vmem:[#allocation4 + $0x480] ss:$16 sps:$4 sm:$0xff]  }
 0xa37   : > { %5146 = vmatpush1.bf16.msra.mxu0 %v8882_v36  ;;  %5187 = vmatpush1.bf16.msra.mxu1 %v8885_v48  ;;  %v8963_v36 = vld [vmem:[#allocation4 + $0x488] ss:$16 sps:$4 sm:$0xff]   ;;  %v8968_v48 = vld [vmem:[#allocation4 + $0x464] ss:$16 sps:$4 sm:$0xff]  }
 0xa38   : > { %5147 = vmatprep.subr.bf16.mxu0 %v8890_v53  ;;  %5188 = vmatprep.subr.bf16.mxu1 %v8893_v32  ;;  %v8971_v53 = vld [vmem:[#allocation4 + $0x46c] ss:$16 sps:$4 sm:$0xff]   ;;  %v8966_v32 = vld [vmem:[#allocation4 + $0x460] ss:$16 sps:$4 sm:$0xff]  }
 0xa3b   : > { %5148 = vmatpush1.bf16.msra.mxu0 %v8888_v14  ;;  %5189 = vmatpush1.bf16.msra.mxu1 %v8891_v18  ;;  %v8969_v14 = vld [vmem:[#allocation4 + $0x468] ss:$16 sps:$4 sm:$0xff]   ;;  %v8974_v18 = vld [vmem:[#allocation4 + $0x444] ss:$16 sps:$4 sm:$0xff]  }
 0xa3c   : > { %5439 = vmatprep.subr.bf16.mxu0 %v8896_v16  ;;  %5480 = vmatprep.subr.bf16.mxu1 %v8899_v24  ;;  %v8977_v16 = vld [vmem:[#allocation4 + $0x44c] ss:$16 sps:$4 sm:$0xff]   ;;  %v8972_v24 = vld [vmem:[#allocation4 + $0x440] ss:$16 sps:$4 sm:$0xff]  }
 0xa3e   : > { %5166 = vmatmul.mubr.bf16.vlgmr.msra.gmra.mxu0 %v4971_v35  ;;  %5207 = vmatmul.mubr.bf16.vlgmr.msra.gmra.mxu1 %v4971_v35  ;;  %v8975_v35 = vld [vmem:[#allocation4 + $0x448] ss:$16 sps:$4 sm:$0xff]  }
 0xa3f   : > { %5440 = vmatpush1.bf16.msra.mxu0 %v8894_v56  ;;  %5481 = vmatpush1.bf16.msra.mxu1 %v8897_v21  ;;  %v8980_v56 = vld [vmem:[#allocation4 + $0x424] ss:$16 sps:$4 sm:$0xff]   ;;  %v8983_v21 = vld [vmem:[#allocation4 + $0x42c] ss:$16 sps:$4 sm:$0xff]  }
 0xa40   : > { %5441 = vmatprep.subr.bf16.mxu0 %v8902_v41  ;;  %5482 = vmatprep.subr.bf16.mxu1 %v8905_v58  ;;  %v8978_v41 = vld [vmem:[#allocation4 + $0x420] ss:$16 sps:$4 sm:$0xff]   ;;  %v8981_v58 = vld [vmem:[#allocation4 + $0x428] ss:$16 sps:$4 sm:$0xff]  }
 0xa41   : > { %5471 = vmatprep.mubr.bf16.mxu0 %v9691_v7  ;;  %5512 = vmatprep.mubr.bf16.mxu1 %v9691_v7 }
 0xa43   : > { %5442 = vmatpush1.bf16.msra.mxu0 %v8900_v10  ;;  %5483 = vmatpush1.bf16.msra.mxu1 %v8903_v55  ;;  %v8986_v10 = vld [vmem:[#allocation4 + $0x404] ss:$16 sps:$4 sm:$0xff]   ;;  %v8989_v55 = vld [vmem:[#allocation4 + $0x40c] ss:$16 sps:$4 sm:$0xff]  }
 0xa44   : > { %5443 = vmatprep.subr.bf16.mxu0 %v8908_v0  ;;  %5484 = vmatprep.subr.bf16.mxu1 %v8911_v1  ;;  %v8984_v0 = vld [vmem:[#allocation4 + $0x400] ss:$16 sps:$4 sm:$0xff]   ;;  %v8987_v1 = vld [vmem:[#allocation4 + $0x408] ss:$16 sps:$4 sm:$0xff]  }
 0xa47   : > { %5444 = vmatpush1.bf16.msra.mxu0 %v8906_v52  ;;  %5485 = vmatpush1.bf16.msra.mxu1 %v8909_v20  ;;  %v8992_v52 = vld [vmem:[#allocation4 + $0x5e4] ss:$16 sps:$4 sm:$0xff]   ;;  %v8995_v20 = vld [vmem:[#allocation4 + $0x5ec] ss:$16 sps:$4 sm:$0xff]  }
 0xa48   : > { %5445 = vmatprep.subr.bf16.mxu0 %v8914_v57  ;;  %5486 = vmatprep.subr.bf16.mxu1 %v8917_v22  ;;  %v5583_v57 = vrot.slane %v10632_v40, 2  ;;  %v8990_v22 = vld [vmem:[#allocation4 + $0x5e0] ss:$16 sps:$4 sm:$0xff]  }
 0xa4b   : > { %5446 = vmatpush1.bf16.msra.mxu0 %v8912_v54  ;;  %5487 = vmatpush1.bf16.msra.mxu1 %v8915_v44  ;;  %v8993_v54 = vld [vmem:[#allocation4 + $0x5e8] ss:$16 sps:$4 sm:$0xff]   ;;  %v8998_v44 = vld [vmem:[#allocation4 + $0x5c4] ss:$16 sps:$4 sm:$0xff]  }
 0xa4c   : > { %5447 = vmatprep.subr.bf16.mxu0 %v8920_v43  ;;  %5488 = vmatprep.subr.bf16.mxu1 %v8923_v60  ;;  %v9001_v43 = vld [vmem:[#allocation4 + $0x5cc] ss:$16 sps:$4 sm:$0xff]   ;;  %v8996_v60 = vld [vmem:[#allocation4 + $0x5c0] ss:$16 sps:$4 sm:$0xff]  }
 0xa4f   : > { %5448 = vmatpush1.bf16.msra.mxu0 %v8918_v29  ;;  %5489 = vmatpush1.bf16.msra.mxu1 %v8921_v2  ;;  %v8999_v29 = vld [vmem:[#allocation4 + $0x5c8] ss:$16 sps:$4 sm:$0xff]   ;;  %v9004_v2 = vld [vmem:[#allocation4 + $0x5a4] ss:$16 sps:$4 sm:$0xff]  }
 0xa50   : > { %5449 = vmatprep.subr.bf16.mxu0 %v8926_v6  ;;  %5490 = vmatprep.subr.bf16.mxu1 %v8929_v11  ;;  %v9007_v6 = vld [vmem:[#allocation4 + $0x5ac] ss:$16 sps:$4 sm:$0xff]   ;;  %v9002_v11 = vld [vmem:[#allocation4 + $0x5a0] ss:$16 sps:$4 sm:$0xff]  }
 0xa53   : > { %5450 = vmatpush1.bf16.msra.mxu0 %v8924_v3  ;;  %5491 = vmatpush1.bf16.msra.mxu1 %v8927_v8  ;;  %v9005_v3 = vld [vmem:[#allocation4 + $0x5a8] ss:$16 sps:$4 sm:$0xff]   ;;  %v9010_v8 = vld [vmem:[#allocation4 + $0x584] ss:$16 sps:$4 sm:$0xff]  }
 0xa54   : > { %5451 = vmatprep.subr.bf16.mxu0 %v8932_v42  ;;  %5492 = vmatprep.subr.bf16.mxu1 %v8935_v31  ;;  %v9013_v42 = vld [vmem:[#allocation4 + $0x58c] ss:$16 sps:$4 sm:$0xff]   ;;  %v9008_v31 = vld [vmem:[#allocation4 + $0x580] ss:$16 sps:$4 sm:$0xff]  }
 0xa57   : > { %5452 = vmatpush1.bf16.msra.mxu0 %v8930_v61  ;;  %5493 = vmatpush1.bf16.msra.mxu1 %v8933_v19  ;;  %v9011_v61 = vld [vmem:[#allocation4 + $0x588] ss:$16 sps:$4 sm:$0xff]   ;;  %v9016_v19 = vld [vmem:[#allocation4 + $0x564] ss:$16 sps:$4 sm:$0xff]  }
 0xa58   : > { %5453 = vmatprep.subr.bf16.mxu0 %v8938_v4  ;;  %5494 = vmatprep.subr.bf16.mxu1 %v8941_v5  ;;  %v9019_v4 = vld [vmem:[#allocation4 + $0x56c] ss:$16 sps:$4 sm:$0xff]   ;;  %v9014_v5 = vld [vmem:[#allocation4 + $0x560] ss:$16 sps:$4 sm:$0xff]  }
 0xa5b   : > { %5454 = vmatpush1.bf16.msra.mxu0 %v8936_v23  ;;  %5495 = vmatpush1.bf16.msra.mxu1 %v8939_v63  ;;  %v9017_v23 = vld [vmem:[#allocation4 + $0x568] ss:$16 sps:$4 sm:$0xff]   ;;  %v9022_v63 = vld [vmem:[#allocation4 + $0x544] ss:$16 sps:$4 sm:$0xff]  }
 0xa5c   : > { %5745 = vmatprep.subr.bf16.mxu0 %v8944_v38  ;;  %5786 = vmatprep.subr.bf16.mxu1 %v8947_v34  ;;  %v9025_v38 = vld [vmem:[#allocation4 + $0x54c] ss:$16 sps:$4 sm:$0xff]   ;;  %v9020_v34 = vld [vmem:[#allocation4 + $0x540] ss:$16 sps:$4 sm:$0xff]  }
 0xa5e   : > { %5472 = vmatmul.mubr.bf16.vlgmr.msra.gmra.mxu0 %v5277_v51  ;;  %5513 = vmatmul.mubr.bf16.vlgmr.msra.gmra.mxu1 %v5277_v51  ;;  %v9023_v51 = vld [vmem:[#allocation4 + $0x548] ss:$16 sps:$4 sm:$0xff]  }
 0xa5f   : > { %5746 = vmatpush1.bf16.msra.mxu0 %v8942_v15  ;;  %5787 = vmatpush1.bf16.msra.mxu1 %v8945_v17  ;;  %v9028_v15 = vld [vmem:[#allocation4 + $0x524] ss:$16 sps:$4 sm:$0xff]   ;;  %v9031_v17 = vld [vmem:[#allocation4 + $0x52c] ss:$16 sps:$4 sm:$0xff]  }
 0xa60   : > { %5747 = vmatprep.subr.bf16.mxu0 %v8950_v62  ;;  %5788 = vmatprep.subr.bf16.mxu1 %v8953_v13  ;;  %v9026_v62 = vld [vmem:[#allocation4 + $0x520] ss:$16 sps:$4 sm:$0xff]   ;;  %v9029_v13 = vld [vmem:[#allocation4 + $0x528] ss:$16 sps:$4 sm:$0xff]  }
 0xa61   : > { %5777 = vmatprep.mubr.bf16.mxu0 %v9691_v7  ;;  %5818 = vmatprep.mubr.bf16.mxu1 %v9691_v7 }
 0xa63   : > { %5748 = vmatpush1.bf16.msra.mxu0 %v8948_v28  ;;  %5789 = vmatpush1.bf16.msra.mxu1 %v8951_v25  ;;  %v9034_v28 = vld [vmem:[#allocation4 + $0x504] ss:$16 sps:$4 sm:$0xff]   ;;  %v9037_v25 = vld [vmem:[#allocation4 + $0x50c] ss:$16 sps:$4 sm:$0xff]  }
 0xa64   : > { %5749 = vmatprep.subr.bf16.mxu0 %v8956_v39  ;;  %5790 = vmatprep.subr.bf16.mxu1 %v8959_v37  ;;  %v9032_v39 = vld [vmem:[#allocation4 + $0x500] ss:$16 sps:$4 sm:$0xff]   ;;  %v9035_v37 = vld [vmem:[#allocation4 + $0x508] ss:$16 sps:$4 sm:$0xff]  }
 0xa67   : > { %5750 = vmatpush1.bf16.msra.mxu0 %v8954_v26  ;;  %5791 = vmatpush1.bf16.msra.mxu1 %v8957_v27  ;;  %v9040_v26 = vld [vmem:[#allocation4 + $0x6e4] ss:$16 sps:$4 sm:$0xff]   ;;  %v9043_v27 = vld [vmem:[#allocation4 + $0x6ec] ss:$16 sps:$4 sm:$0xff]  }
 0xa68   : > { %5751 = vmatprep.subr.bf16.mxu0 %v8962_v9  ;;  %5792 = vmatprep.subr.bf16.mxu1 %v8965_v33  ;;  %v5889_v9 = vrot.slane %v10641_v12, 2  ;;  %v9038_v33 = vld [vmem:[#allocation4 + $0x6e0] ss:$16 sps:$4 sm:$0xff]  }
 0xa6b   : > { %5752 = vmatpush1.bf16.msra.mxu0 %v8960_v30  ;;  %5793 = vmatpush1.bf16.msra.mxu1 %v8963_v36  ;;  %v9041_v30 = vld [vmem:[#allocation4 + $0x6e8] ss:$16 sps:$4 sm:$0xff]   ;;  %v9046_v36 = vld [vmem:[#allocation4 + $0x6c4] ss:$16 sps:$4 sm:$0xff]  }
 0xa6c   : > { %5753 = vmatprep.subr.bf16.mxu0 %v8968_v48  ;;  %5794 = vmatprep.subr.bf16.mxu1 %v8971_v53  ;;  %v9049_v48 = vld [vmem:[#allocation4 + $0x6cc] ss:$16 sps:$4 sm:$0xff]   ;;  %v9044_v53 = vld [vmem:[#allocation4 + $0x6c0] ss:$16 sps:$4 sm:$0xff]  }
 0xa6f   : > { %5754 = vmatpush1.bf16.msra.mxu0 %v8966_v32  ;;  %5795 = vmatpush1.bf16.msra.mxu1 %v8969_v14  ;;  %v9047_v32 = vld [vmem:[#allocation4 + $0x6c8] ss:$16 sps:$4 sm:$0xff]   ;;  %v9052_v14 = vld [vmem:[#allocation4 + $0x6a4] ss:$16 sps:$4 sm:$0xff]  }
 0xa70   : > { %5755 = vmatprep.subr.bf16.mxu0 %v8974_v18  ;;  %5796 = vmatprep.subr.bf16.mxu1 %v8977_v16  ;;  %v9055_v18 = vld [vmem:[#allocation4 + $0x6ac] ss:$16 sps:$4 sm:$0xff]   ;;  %v9050_v16 = vld [vmem:[#allocation4 + $0x6a0] ss:$16 sps:$4 sm:$0xff]  }
 0xa73   : > { %5756 = vmatpush1.bf16.msra.mxu0 %v8972_v24  ;;  %5797 = vmatpush1.bf16.msra.mxu1 %v8975_v35  ;;  %v9053_v24 = vld [vmem:[#allocation4 + $0x6a8] ss:$16 sps:$4 sm:$0xff]   ;;  %v9058_v35 = vld [vmem:[#allocation4 + $0x684] ss:$16 sps:$4 sm:$0xff]  }
 0xa74   : > { %5757 = vmatprep.subr.bf16.mxu0 %v8980_v56  ;;  %5798 = vmatprep.subr.bf16.mxu1 %v8983_v21  ;;  %v9061_v56 = vld [vmem:[#allocation4 + $0x68c] ss:$16 sps:$4 sm:$0xff]   ;;  %v9056_v21 = vld [vmem:[#allocation4 + $0x680] ss:$16 sps:$4 sm:$0xff]  }
 0xa77   : > { %5758 = vmatpush1.bf16.msra.mxu0 %v8978_v41  ;;  %5799 = vmatpush1.bf16.msra.mxu1 %v8981_v58  ;;  %v9059_v41 = vld [vmem:[#allocation4 + $0x688] ss:$16 sps:$4 sm:$0xff]   ;;  %v9064_v58 = vld [vmem:[#allocation4 + $0x664] ss:$16 sps:$4 sm:$0xff]  }
 0xa78   : > { %5759 = vmatprep.subr.bf16.mxu0 %v8986_v10  ;;  %5800 = vmatprep.subr.bf16.mxu1 %v8989_v55  ;;  %v9067_v10 = vld [vmem:[#allocation4 + $0x66c] ss:$16 sps:$4 sm:$0xff]   ;;  %v9062_v55 = vld [vmem:[#allocation4 + $0x660] ss:$16 sps:$4 sm:$0xff]  }
 0xa7b   : > { %5760 = vmatpush1.bf16.msra.mxu0 %v8984_v0  ;;  %5801 = vmatpush1.bf16.msra.mxu1 %v8987_v1  ;;  %v9065_v0 = vld [vmem:[#allocation4 + $0x668] ss:$16 sps:$4 sm:$0xff]   ;;  %v9070_v1 = vld [vmem:[#allocation4 + $0x644] ss:$16 sps:$4 sm:$0xff]  }
 0xa7c   : > { %6051 = vmatprep.subr.bf16.mxu0 %v8992_v52  ;;  %6092 = vmatprep.subr.bf16.mxu1 %v8995_v20  ;;  %v9073_v52 = vld [vmem:[#allocation4 + $0x64c] ss:$16 sps:$4 sm:$0xff]   ;;  %v9068_v20 = vld [vmem:[#allocation4 + $0x640] ss:$16 sps:$4 sm:$0xff]  }
 0xa7e   : > { %5778 = vmatmul.mubr.bf16.vlgmr.msra.gmra.mxu0 %v5583_v57  ;;  %5819 = vmatmul.mubr.bf16.vlgmr.msra.gmra.mxu1 %v5583_v57  ;;  %v9071_v57 = vld [vmem:[#allocation4 + $0x648] ss:$16 sps:$4 sm:$0xff]  }
 0xa7f   : > { %6052 = vmatpush1.bf16.msra.mxu0 %v8990_v22  ;;  %6093 = vmatpush1.bf16.msra.mxu1 %v8993_v54  ;;  %v9076_v22 = vld [vmem:[#allocation4 + $0x624] ss:$16 sps:$4 sm:$0xff]   ;;  %v9079_v54 = vld [vmem:[#allocation4 + $0x62c] ss:$16 sps:$4 sm:$0xff]  }
 0xa80   : > { %6053 = vmatprep.subr.bf16.mxu0 %v8998_v44  ;;  %6094 = vmatprep.subr.bf16.mxu1 %v9001_v43  ;;  %v9074_v44 = vld [vmem:[#allocation4 + $0x620] ss:$16 sps:$4 sm:$0xff]   ;;  %v9077_v43 = vld [vmem:[#allocation4 + $0x628] ss:$16 sps:$4 sm:$0xff]  }
 0xa81   : > { %6083 = vmatprep.mubr.bf16.mxu0 %v9691_v7  ;;  %6124 = vmatprep.mubr.bf16.mxu1 %v9691_v7 }
 0xa83   : > { %6054 = vmatpush1.bf16.msra.mxu0 %v8996_v60  ;;  %6095 = vmatpush1.bf16.msra.mxu1 %v8999_v29  ;;  %v9082_v60 = vld [vmem:[#allocation4 + $0x604] ss:$16 sps:$4 sm:$0xff]   ;;  %v9085_v29 = vld [vmem:[#allocation4 + $0x60c] ss:$16 sps:$4 sm:$0xff]  }
 0xa84   : > { %6055 = vmatprep.subr.bf16.mxu0 %v9004_v2  ;;  %6096 = vmatprep.subr.bf16.mxu1 %v9007_v6  ;;  %v9080_v2 = vld [vmem:[#allocation4 + $0x600] ss:$16 sps:$4 sm:$0xff]   ;;  %v9083_v6 = vld [vmem:[#allocation4 + $0x608] ss:$16 sps:$4 sm:$0xff]  }
 0xa87   : > { %6056 = vmatpush1.bf16.msra.mxu0 %v9002_v11  ;;  %6097 = vmatpush1.bf16.msra.mxu1 %v9005_v3  ;;  %v9088_v11 = vld [vmem:[#allocation4 + $0x7e4] ss:$16 sps:$4 sm:$0xff]   ;;  %v9091_v3 = vld [vmem:[#allocation4 + $0x7ec] ss:$16 sps:$4 sm:$0xff]  }
 0xa88   : > { %6057 = vmatprep.subr.bf16.mxu0 %v9010_v8  ;;  %6098 = vmatprep.subr.bf16.mxu1 %v9013_v42  ;;  %v6195_v8 = vrot.slane %v10632_v40, 3  ;;  %v9086_v42 = vld [vmem:[#allocation4 + $0x7e0] ss:$16 sps:$4 sm:$0xff]  }
 0xa8b   : > { %6058 = vmatpush1.bf16.msra.mxu0 %v9008_v31  ;;  %6099 = vmatpush1.bf16.msra.mxu1 %v9011_v61  ;;  %v9089_v31 = vld [vmem:[#allocation4 + $0x7e8] ss:$16 sps:$4 sm:$0xff]   ;;  %v9094_v61 = vld [vmem:[#allocation4 + $0x7c4] ss:$16 sps:$4 sm:$0xff]  }
 0xa8c   : > { %6059 = vmatprep.subr.bf16.mxu0 %v9016_v19  ;;  %6100 = vmatprep.subr.bf16.mxu1 %v9019_v4  ;;  %v9097_v19 = vld [vmem:[#allocation4 + $0x7cc] ss:$16 sps:$4 sm:$0xff]  }
 0xa8f   : > { %6060 = vmatpush1.bf16.msra.mxu0 %v9014_v5  ;;  %6101 = vmatpush1.bf16.msra.mxu1 %v9017_v23  ;;  %v9092_v23 = vld [vmem:[#allocation4 + $0x7c0] ss:$16 sps:$4 sm:$0xff]  }
 0xa90   : > { %6061 = vmatprep.subr.bf16.mxu0 %v9022_v63  ;;  %6102 = vmatprep.subr.bf16.mxu1 %v9025_v38  ;;  %v9095_v63 = vld [vmem:[#allocation4 + $0x7c8] ss:$16 sps:$4 sm:$0xff]  }
 0xa93   : > { %6062 = vmatpush1.bf16.msra.mxu0 %v9020_v34  ;;  %6103 = vmatpush1.bf16.msra.mxu1 %v9023_v51  ;;  %v9100_v51 = vld [vmem:[#allocation4 + $0x7a4] ss:$16 sps:$4 sm:$0xff]  }
 0xa94   : > { %6063 = vmatprep.subr.bf16.mxu0 %v9028_v15  ;;  %6104 = vmatprep.subr.bf16.mxu1 %v9031_v17  ;;  %v9103_v15 = vld [vmem:[#allocation4 + $0x7ac] ss:$16 sps:$4 sm:$0xff]  }
 0xa97   : > { %6064 = vmatpush1.bf16.msra.mxu0 %v9026_v62  ;;  %6105 = vmatpush1.bf16.msra.mxu1 %v9029_v13 }
 0xa98   : > { %6065 = vmatprep.subr.bf16.mxu0 %v9034_v28  ;;  %6106 = vmatprep.subr.bf16.mxu1 %v9037_v25 }
 0xa9b   : > { %6066 = vmatpush1.bf16.msra.mxu0 %v9032_v39  ;;  %6107 = vmatpush1.bf16.msra.mxu1 %v9035_v37  ;;  %v9098_v37 = vld [vmem:[#allocation4 + $0x7a0] ss:$16 sps:$4 sm:$0xff]  }
 0xa9c   : > { %6357 = vmatprep.subr.bf16.mxu0 %v9040_v26  ;;  %6398 = vmatprep.subr.bf16.mxu1 %v9043_v27  ;;  %v9101_v26 = vld [vmem:[#allocation4 + $0x7a8] ss:$16 sps:$4 sm:$0xff]  }
 0xa9e   : > { %6084 = vmatmul.mubr.bf16.vlgmr.msra.gmra.mxu0 %v5889_v9  ;;  %6125 = vmatmul.mubr.bf16.vlgmr.msra.gmra.mxu1 %v5889_v9 }
 0xa9f   : > { %6358 = vmatpush1.bf16.msra.mxu0 %v9038_v33  ;;  %6399 = vmatpush1.bf16.msra.mxu1 %v9041_v30  ;;  %v9106_v33 = vld [vmem:[#allocation4 + $0x784] ss:$16 sps:$4 sm:$0xff]   ;;  %v9109_v30 = vld [vmem:[#allocation4 + $0x78c] ss:$16 sps:$4 sm:$0xff]  }
 0xaa0   : > { %6359 = vmatprep.subr.bf16.mxu0 %v9046_v36  ;;  %6400 = vmatprep.subr.bf16.mxu1 %v9049_v48  ;;  %v9104_v48 = vld [vmem:[#allocation4 + $0x780] ss:$16 sps:$4 sm:$0xff]  }
 0xaa1   : > { %6389 = vmatprep.mubr.bf16.mxu0 %v9691_v7  ;;  %6430 = vmatprep.mubr.bf16.mxu1 %v9691_v7 }
 0xaa3   : > { %6360 = vmatpush1.bf16.msra.mxu0 %v9044_v53  ;;  %6401 = vmatpush1.bf16.msra.mxu1 %v9047_v32  ;;  %v9107_v53 = vld [vmem:[#allocation4 + $0x788] ss:$16 sps:$4 sm:$0xff]   ;;  %v9112_v32 = vld [vmem:[#allocation4 + $0x764] ss:$16 sps:$4 sm:$0xff]  }
 0xaa4   : > { %6361 = vmatprep.subr.bf16.mxu0 %v9052_v14  ;;  %6402 = vmatprep.subr.bf16.mxu1 %v9055_v18  ;;  %v9115_v14 = vld [vmem:[#allocation4 + $0x76c] ss:$16 sps:$4 sm:$0xff]   ;;  %v9110_v18 = vld [vmem:[#allocation4 + $0x760] ss:$16 sps:$4 sm:$0xff]  }
 0xaa7   : > { %6362 = vmatpush1.bf16.msra.mxu0 %v9050_v16  ;;  %6403 = vmatpush1.bf16.msra.mxu1 %v9053_v24  ;;  %v9113_v16 = vld [vmem:[#allocation4 + $0x768] ss:$16 sps:$4 sm:$0xff]   ;;  %v9118_v24 = vld [vmem:[#allocation4 + $0x744] ss:$16 sps:$4 sm:$0xff]  }
 0xaa8   : > { %6363 = vmatprep.subr.bf16.mxu0 %v9058_v35  ;;  %6404 = vmatprep.subr.bf16.mxu1 %v9061_v56  ;;  %v9121_v35 = vld [vmem:[#allocation4 + $0x74c] ss:$16 sps:$4 sm:$0xff]   ;;  %v9116_v56 = vld [vmem:[#allocation4 + $0x740] ss:$16 sps:$4 sm:$0xff]  }
 0xaab   : > { %6364 = vmatpush1.bf16.msra.mxu0 %v9056_v21  ;;  %6405 = vmatpush1.bf16.msra.mxu1 %v9059_v41  ;;  %v9119_v21 = vld [vmem:[#allocation4 + $0x748] ss:$16 sps:$4 sm:$0xff]   ;;  %v9124_v41 = vld [vmem:[#allocation4 + $0x724] ss:$16 sps:$4 sm:$0xff]  }
 0xaac   : > { %6365 = vmatprep.subr.bf16.mxu0 %v9064_v58  ;;  %6406 = vmatprep.subr.bf16.mxu1 %v9067_v10  ;;  %v9127_v58 = vld [vmem:[#allocation4 + $0x72c] ss:$16 sps:$4 sm:$0xff]   ;;  %v9122_v10 = vld [vmem:[#allocation4 + $0x720] ss:$16 sps:$4 sm:$0xff]  }
 0xaaf   : > { %6366 = vmatpush1.bf16.msra.mxu0 %v9062_v55  ;;  %6407 = vmatpush1.bf16.msra.mxu1 %v9065_v0  ;;  %v9125_v55 = vld [vmem:[#allocation4 + $0x728] ss:$16 sps:$4 sm:$0xff]   ;;  %v9130_v0 = vld [vmem:[#allocation4 + $0x704] ss:$16 sps:$4 sm:$0xff]  }
 0xab0   : > { %6367 = vmatprep.subr.bf16.mxu0 %v9070_v1  ;;  %6408 = vmatprep.subr.bf16.mxu1 %v9073_v52  ;;  %v9133_v1 = vld [vmem:[#allocation4 + $0x70c] ss:$16 sps:$4 sm:$0xff]   ;;  %v9128_v52 = vld [vmem:[#allocation4 + $0x700] ss:$16 sps:$4 sm:$0xff]  }
 0xab3   : > { %6368 = vmatpush1.bf16.msra.mxu0 %v9068_v20  ;;  %6409 = vmatpush1.bf16.msra.mxu1 %v9071_v57  ;;  %v9131_v20 = vld [vmem:[#allocation4 + $0x708] ss:$16 sps:$4 sm:$0xff]   ;;  %v9136_v57 = vld [vmem:[#allocation4 + $0x8e4] ss:$16 sps:$4 sm:$0xff]  }
 0xab4   : > { %6369 = vmatprep.subr.bf16.mxu0 %v9076_v22  ;;  %6410 = vmatprep.subr.bf16.mxu1 %v9079_v54  ;;  %v9139_v22 = vld [vmem:[#allocation4 + $0x8ec] ss:$16 sps:$4 sm:$0xff]   ;;  %v6501_v54 = vrot.slane %v10641_v12, 3  ;;  %v9148_v12 = vld [vmem:[#allocation4 + $0x8a4] ss:$16 sps:$4 sm:$0xff]  }
 0xab7   : > { %6370 = vmatpush1.bf16.msra.mxu0 %v9074_v44  ;;  %6411 = vmatpush1.bf16.msra.mxu1 %v9077_v43  ;;  %v9134_v44 = vld [vmem:[#allocation4 + $0x8e0] ss:$16 sps:$4 sm:$0xff]   ;;  %v9137_v43 = vld [vmem:[#allocation4 + $0x8e8] ss:$16 sps:$4 sm:$0xff]  }
 0xab8   : > { %6371 = vmatprep.subr.bf16.mxu0 %v9082_v60  ;;  %6412 = vmatprep.subr.bf16.mxu1 %v9085_v29  ;;  %v9142_v60 = vld [vmem:[#allocation4 + $0x8c4] ss:$16 sps:$4 sm:$0xff]   ;;  %v9145_v29 = vld [vmem:[#allocation4 + $0x8cc] ss:$16 sps:$4 sm:$0xff]  }
 0xabb   : > { %6372 = vmatpush1.bf16.msra.mxu0 %v9080_v2  ;;  %6413 = vmatpush1.bf16.msra.mxu1 %v9083_v6 }
 0xabc   : > { %6663 = vmatprep.subr.bf16.mxu0 %v9088_v11  ;;  %6704 = vmatprep.subr.bf16.mxu1 %v9091_v3  ;;  %v9140_v11 = vld [vmem:[#allocation4 + $0x8c0] ss:$16 sps:$4 sm:$0xff]   ;;  %v9143_v3 = vld [vmem:[#allocation4 + $0x8c8] ss:$16 sps:$4 sm:$0xff]  }
 0xabe   : > { %v4552_v4 = vpop.f32.mrf.mxu0  ;;  %v4593_v5 = vpop.f32.mrf.mxu1  ;;  %6390 = vmatmul.mubr.bf16.vlgmr.msra.gmra.mxu0 %v6195_v8  ;;  %6431 = vmatmul.mubr.bf16.vlgmr.msra.gmra.mxu1 %v6195_v8 }
 0xabf   : > { %6664 = vmatpush1.bf16.msra.mxu0 %v9086_v42  ;;  %6705 = vmatpush1.bf16.msra.mxu1 %v9089_v31  ;;  %v9151_v31 = vld [vmem:[#allocation4 + $0x8ac] ss:$16 sps:$4 sm:$0xff]  }
 0xac0   : > { %v4554_v38 = vpop.f32.mrf.mxu0  ;;  %v4595_v34 = vpop.f32.mrf.mxu1  ;;  %6665 = vmatprep.subr.bf16.mxu0 %v9094_v61  ;;  %6706 = vmatprep.subr.bf16.mxu1 %v9097_v19 }
 0xac1   : > { %v4604_v17 = vcombine.low %v4552_v4, %v4554_v38  ;;  %v4605_v62 = vcombine.low %v4593_v5, %v4595_v34  ;;  %6695 = vmatprep.mubr.bf16.mxu0 %v9691_v7  ;;  %6736 = vmatprep.mubr.bf16.mxu1 %v9691_v7  ;;  %v9146_v34 = vld [vmem:[#allocation4 + $0x8a0] ss:$16 sps:$4 sm:$0xff]  }
 0xac2   : > { %v4556_v13 = vpop.f32.mrf.mxu0  ;;  %v4597_v28 = vpop.f32.mrf.mxu1 }
 0xac3   : > { %v10663_v25 = vrot.slane %v4604_v17, %v10625_v59  ;;  %v10666_v39 = vrot.slane %v4605_v62, %v10625_v59  ;;  %6666 = vmatpush1.bf16.msra.mxu0 %v9092_v23  ;;  %6707 = vmatpush1.bf16.msra.mxu1 %v9095_v63  ;;  %v9157_v62 = vld [vmem:[#allocation4 + $0x88c] ss:$16 sps:$4 sm:$0xff]  }
 0xac4   : > { %v4557_v27 = vpop.f32.mrf.mxu0  ;;  %v4598_v9 = vpop.f32.mrf.mxu1  ;;  %6667 = vmatprep.subr.bf16.mxu0 %v9100_v51  ;;  %6708 = vmatprep.subr.bf16.mxu1 %v9103_v15  ;;  %v9149_v51 = vld [vmem:[#allocation4 + $0x8a8] ss:$16 sps:$4 sm:$0xff]  }
 0xac5   : > { %v4620_v36 = vcombine.low %v10663_v25, %v10666_v39  ;;  %v9152_v39 = vld [vmem:[#allocation4 + $0x880] ss:$16 sps:$4 sm:$0xff]   ;;  %v9163_v27 = vld [vmem:[#allocation4 + $0x86c] ss:$16 sps:$4 sm:$0xff]  }
 0xac7   : > { %6668 = vmatpush1.bf16.msra.mxu0 %v9098_v37  ;;  %6709 = vmatpush1.bf16.msra.mxu1 %v9101_v26  ;;  %v4627_v23 = vrot.slane %v4620_v36, %v10625_v59  ;;  %v9155_v37 = vld [vmem:[#allocation4 + $0x888] ss:$16 sps:$4 sm:$0xff]   ;;  %v9160_v26 = vld [vmem:[#allocation4 + $0x864] ss:$16 sps:$4 sm:$0xff]  }
 0xac8   : > { %6669 = vmatprep.subr.bf16.mxu0 %v9106_v33  ;;  %6710 = vmatprep.subr.bf16.mxu1 %v9109_v30  ;;  %v9158_v33 = vld [vmem:[#allocation4 + $0x860] ss:$16 sps:$4 sm:$0xff]   ;;  %v9161_v30 = vld [vmem:[#allocation4 + $0x868] ss:$16 sps:$4 sm:$0xff]   ;;  %v9166_v36 = vld [vmem:[#allocation4 + $0x844] ss:$16 sps:$4 sm:$0xff]  }
 0xac9   : > { %v4629_v28 = vadd.f32 %v4627_v23, %v10630_v45  ;;  %v9164_v45 = vld [vmem:[#allocation4 + $0x840] ss:$16 sps:$4 sm:$0xff]  }
 0xacb   : > { %6670 = vmatpush1.bf16.msra.mxu0 %v9104_v48  ;;  %6711 = vmatpush1.bf16.msra.mxu1 %v9107_v53  ;;  %v9169_v48 = vld [vmem:[#allocation4 + $0x84c] ss:$16 sps:$4 sm:$0xff]   ;;  %v9167_v53 = vld [vmem:[#allocation4 + $0x848] ss:$16 sps:$4 sm:$0xff]  }
 0xacc   : > { %6671 = vmatprep.subr.bf16.mxu0 %v9112_v32  ;;  %6712 = vmatprep.subr.bf16.mxu1 %v9115_v14  ;;  %v9172_v32 = vld [vmem:[#allocation4 + $0x824] ss:$16 sps:$4 sm:$0xff]   ;;  %v9175_v14 = vld [vmem:[#allocation4 + $0x82c] ss:$16 sps:$4 sm:$0xff]  }
 0xacf   : > { %6672 = vmatpush1.bf16.msra.mxu0 %v9110_v18  ;;  %6713 = vmatpush1.bf16.msra.mxu1 %v9113_v16  ;;  %v9170_v18 = vld [vmem:[#allocation4 + $0x820] ss:$16 sps:$4 sm:$0xff]   ;;  %v9173_v16 = vld [vmem:[#allocation4 + $0x828] ss:$16 sps:$4 sm:$0xff]  }
 0xad0   : > { %6673 = vmatprep.subr.bf16.mxu0 %v9118_v24  ;;  %6714 = vmatprep.subr.bf16.mxu1 %v9121_v35  ;;  %v9178_v24 = vld [vmem:[#allocation4 + $0x804] ss:$16 sps:$4 sm:$0xff]   ;;  %v9181_v35 = vld [vmem:[#allocation4 + $0x80c] ss:$16 sps:$4 sm:$0xff]  }
 0xad3   : > { %6674 = vmatpush1.bf16.msra.mxu0 %v9116_v56  ;;  %6715 = vmatpush1.bf16.msra.mxu1 %v9119_v21  ;;  %v9176_v56 = vld [vmem:[#allocation4 + $0x800] ss:$16 sps:$4 sm:$0xff]   ;;  %v9179_v21 = vld [vmem:[#allocation4 + $0x808] ss:$16 sps:$4 sm:$0xff]  }
 0xad4   : > { %6675 = vmatprep.subr.bf16.mxu0 %v9124_v41  ;;  %6716 = vmatprep.subr.bf16.mxu1 %v9127_v58  ;;  %v6807_v41 = vrot.slane %v10632_v40, 4 }
 0xad7   : > { %6676 = vmatpush1.bf16.msra.mxu0 %v9122_v10  ;;  %6717 = vmatpush1.bf16.msra.mxu1 %v9125_v55 }
 0xad8   : > { %6677 = vmatprep.subr.bf16.mxu0 %v9130_v0  ;;  %6718 = vmatprep.subr.bf16.mxu1 %v9133_v1 }
 0xadb   : > { %6678 = vmatpush1.bf16.msra.mxu0 %v9128_v52  ;;  %6719 = vmatpush1.bf16.msra.mxu1 %v9131_v20 }
 0xadc   : > { %6969 = vmatprep.subr.bf16.mxu0 %v9136_v57  ;;  %7010 = vmatprep.subr.bf16.mxu1 %v9139_v22 }
 0xade   : > { %v4860_v2 = vpop.f32.mrf.mxu0  ;;  %v4901_v6 = vpop.f32.mrf.mxu1  ;;  %6696 = vmatmul.mubr.bf16.vlgmr.msra.gmra.mxu0 %v6501_v54  ;;  %6737 = vmatmul.mubr.bf16.vlgmr.msra.gmra.mxu1 %v6501_v54 }
 0xadf   : > { %6970 = vmatpush1.bf16.msra.mxu0 %v9134_v44  ;;  %7011 = vmatpush1.bf16.msra.mxu1 %v9137_v43 }
 0xae0   : > { %v4862_v8 = vpop.f32.mrf.mxu0  ;;  %v4903_v42 = vpop.f32.mrf.mxu1  ;;  %6971 = vmatprep.subr.bf16.mxu0 %v9142_v60  ;;  %7012 = vmatprep.subr.bf16.mxu1 %v9145_v29 }
 0xae1   : > { %v4912_v61 = vcombine.low %v4860_v2, %v4862_v8  ;;  %v4913_v19 = vcombine.low %v4901_v6, %v4903_v42  ;;  %7001 = vmatprep.mubr.bf16.mxu0 %v9691_v7  ;;  %7042 = vmatprep.mubr.bf16.mxu1 %v9691_v7  ;;  %v9154_v7 = vld [vmem:[#allocation4 + $0x884] ss:$16 sps:$4 sm:$0xff]  }
 0xae2   : > { %v4864_v4 = vpop.f32.mrf.mxu0  ;;  %v4905_v5 = vpop.f32.mrf.mxu1 }
 0xae3   : > { %v4920_v63 = vrot.slane %v4912_v61, %v10625_v59  ;;  %v4927_v38 = vrot.slane %v4913_v19, %v10625_v59  ;;  %6972 = vmatpush1.bf16.msra.mxu0 %v9140_v11  ;;  %7013 = vmatpush1.bf16.msra.mxu1 %v9143_v3 }
 0xae4   : > { %v4865_v15 = vpop.f32.mrf.mxu0  ;;  %v4906_v17 = vpop.f32.mrf.mxu1  ;;  %6973 = vmatprep.subr.bf16.mxu0 %v9148_v12  ;;  %7014 = vmatprep.subr.bf16.mxu1 %v9151_v31 }
 0xae5   : > { %v4928_v13 = vcombine.low %v4920_v63, %v4927_v38 }
 0xae7   : > { %v4935_v25 = vrot.slane %v4928_v13, %v10625_v59  ;;  %6974 = vmatpush1.bf16.msra.mxu0 %v9146_v34  ;;  %7015 = vmatpush1.bf16.msra.mxu1 %v9149_v51 }
 0xae8   : > { %6975 = vmatprep.subr.bf16.mxu0 %v9154_v7  ;;  %7016 = vmatprep.subr.bf16.mxu1 %v9157_v62 }
 0xae9   : > { %v4937_v9 = vadd.f32 %v4935_v25, %v4629_v28 }
 0xaeb   : > { %6976 = vmatpush1.bf16.msra.mxu0 %v9152_v39  ;;  %7017 = vmatpush1.bf16.msra.mxu1 %v9155_v37 }
 0xaec   : > { %6977 = vmatprep.subr.bf16.mxu0 %v9160_v26  ;;  %7018 = vmatprep.subr.bf16.mxu1 %v9163_v27 }
 0xaef   : > { %6978 = vmatpush1.bf16.msra.mxu0 %v9158_v33  ;;  %7019 = vmatpush1.bf16.msra.mxu1 %v9161_v30 }
 0xaf0   : > { %6979 = vmatprep.subr.bf16.mxu0 %v9166_v36  ;;  %7020 = vmatprep.subr.bf16.mxu1 %v9169_v48 }
 0xaf3   : > { %6980 = vmatpush1.bf16.msra.mxu0 %v9164_v45  ;;  %7021 = vmatpush1.bf16.msra.mxu1 %v9167_v53 }
 0xaf4   : > { %6981 = vmatprep.subr.bf16.mxu0 %v9172_v32  ;;  %7022 = vmatprep.subr.bf16.mxu1 %v9175_v14 }
 0xaf7   : > { %6982 = vmatpush1.bf16.msra.mxu0 %v9170_v18  ;;  %7023 = vmatpush1.bf16.msra.mxu1 %v9173_v16 }
 0xaf8   : > { %6983 = vmatprep.subr.bf16.mxu0 %v9178_v24  ;;  %7024 = vmatprep.subr.bf16.mxu1 %v9181_v35 }
 0xafb   : > { %6984 = vmatpush1.bf16.msra.mxu0 %v9176_v56  ;;  %7025 = vmatpush1.bf16.msra.mxu1 %v9179_v21 }
 0xafe   : > { %v5167_v58 = vpop.f32.mrf.mxu0  ;;  %v5208_v10 = vpop.f32.mrf.mxu1  ;;  %7002 = vmatmul.mubr.bf16.vlgmr.msra.gmra.mxu0 %v6807_v41  ;;  %7043 = vmatmul.mubr.bf16.vlgmr.msra.gmra.mxu1 %v6807_v41 }
 0xb00   : > { %v5169_v55 = vpop.f32.mrf.mxu0  ;;  %v5210_v0 = vpop.f32.mrf.mxu1 }
 0xb01   : > { %v5219_v1 = vcombine.low %v5167_v58, %v5169_v55  ;;  %v5220_v52 = vcombine.low %v5208_v10, %v5210_v0 }
 0xb02   : > { %v5171_v20 = vpop.f32.mrf.mxu0  ;;  %v5212_v57 = vpop.f32.mrf.mxu1 }
 0xb03   : > { %v5227_v22 = vrot.slane %v5219_v1, %v10625_v59  ;;  %v5234_v54 = vrot.slane %v5220_v52, %v10625_v59 }
 0xb04   : > { %v5172_v44 = vpop.f32.mrf.mxu0  ;;  %v5213_v43 = vpop.f32.mrf.mxu1 }
 0xb05   : > { %v5235_v60 = vcombine.low %v5227_v22, %v5234_v54 }
 0xb07   : > { %v5242_v40 = vrot.slane %v5235_v60, %v10625_v59 }
 0xb09   : > { %v5244_v29 = vadd.f32 %v5242_v40, %v4937_v9 }
 0xb1e   : > { %v5473_v2 = vpop.f32.mrf.mxu0  ;;  %v5514_v6 = vpop.f32.mrf.mxu1 }
 0xb20   : > { %v5475_v11 = vpop.f32.mrf.mxu0  ;;  %v5516_v3 = vpop.f32.mrf.mxu1 }
 0xb21   : > { %v5525_v8 = vcombine.low %v5473_v2, %v5475_v11  ;;  %v5526_v42 = vcombine.low %v5514_v6, %v5516_v3 }
 0xb22   : > { %v5477_v12 = vpop.f32.mrf.mxu0  ;;  %v5518_v31 = vpop.f32.mrf.mxu1 }
 0xb23   : > { %v5533_v61 = vrot.slane %v5525_v8, %v10625_v59  ;;  %v5540_v19 = vrot.slane %v5526_v42, %v10625_v59 }
 0xb24   : > { %v5478_v4 = vpop.f32.mrf.mxu0  ;;  %v5519_v5 = vpop.f32.mrf.mxu1 }
 0xb25   : > { %v5541_v23 = vcombine.low %v5533_v61, %v5540_v19 }
 0xb27   : > { %v5548_v63 = vrot.slane %v5541_v23, %v10625_v59 }
 0xb29   : > { %v5550_v38 = vadd.f32 %v5548_v63, %v5244_v29 }
 0xb3e   : > { %v5779_v34 = vpop.f32.mrf.mxu0  ;;  %v5820_v51 = vpop.f32.mrf.mxu1 }
 0xb40   : > { %v5781_v15 = vpop.f32.mrf.mxu0  ;;  %v5822_v17 = vpop.f32.mrf.mxu1 }
 0xb41   : > { %v5831_v7 = vcombine.low %v5779_v34, %v5781_v15  ;;  %v5832_v62 = vcombine.low %v5820_v51, %v5822_v17 }
 0xb42   : > { %v5783_v13 = vpop.f32.mrf.mxu0  ;;  %v5824_v28 = vpop.f32.mrf.mxu1 }
 0xb43   : > { %v5839_v25 = vrot.slane %v5831_v7, %v10625_v59  ;;  %v5846_v39 = vrot.slane %v5832_v62, %v10625_v59 }
 0xb44   : > { %v5784_v37 = vpop.f32.mrf.mxu0  ;;  %v5825_v26 = vpop.f32.mrf.mxu1 }
 0xb45   : > { %v5847_v27 = vcombine.low %v5839_v25, %v5846_v39 }
 0xb47   : > { %v5854_v9 = vrot.slane %v5847_v27, %v10625_v59 }
 0xb49   : > { %v5856_v33 = vadd.f32 %v5854_v9, %v5550_v38 }
 0xb5e   : > { %v6085_v30 = vpop.f32.mrf.mxu0  ;;  %v6126_v36 = vpop.f32.mrf.mxu1 }
 0xb60   : > { %v6087_v48 = vpop.f32.mrf.mxu0  ;;  %v6128_v45 = vpop.f32.mrf.mxu1 }
 0xb61   : > { %v6137_v53 = vcombine.low %v6085_v30, %v6087_v48  ;;  %v6138_v32 = vcombine.low %v6126_v36, %v6128_v45  ;;  %v7084_v48 = vld [vmem:[#allocation30] sm:$0xf] }
 0xb62   : > { %v6089_v14 = vpop.f32.mrf.mxu0  ;;  %v6130_v18 = vpop.f32.mrf.mxu1 }
 0xb63   : > { %v6145_v16 = vrot.slane %v6137_v53, %v10625_v59  ;;  %v6152_v24 = vrot.slane %v6138_v32, %v10625_v59 }
 0xb64   : > { %v6090_v35 = vpop.f32.mrf.mxu0  ;;  %v6131_v56 = vpop.f32.mrf.mxu1 }
 0xb65   : > { %v6153_v21 = vcombine.low %v6145_v16, %v6152_v24 }
 0xb67   : > { %v6160_v41 = vrot.slane %v6153_v21, %v10625_v59 }
 0xb69   : > { %v6162_v58 = vadd.f32 %v6160_v41, %v5856_v33 }
 0xb7e   : > { %v6391_v10 = vpop.f32.mrf.mxu0  ;;  %v6432_v55 = vpop.f32.mrf.mxu1 }
 0xb80   : > { %v6393_v0 = vpop.f32.mrf.mxu0  ;;  %v6434_v1 = vpop.f32.mrf.mxu1 }
 0xb81   : > { %v6443_v11 = vcombine.low %v6391_v10, %v6393_v0  ;;  %v6444_v3 = vcombine.low %v6432_v55, %v6434_v1  ;;  %v7118_v10 = vstv %s7117_s2 }
 0xb82   : > { %v6395_v52 = vpop.f32.mrf.mxu0  ;;  %v6436_v20 = vpop.f32.mrf.mxu1 }
 0xb83   : > { %v6451_v12 = vrot.slane %v6443_v11, %v10625_v59  ;;  %v6458_v31 = vrot.slane %v6444_v3, %v10625_v59 }
 0xb84   : > { %v6396_v57 = vpop.f32.mrf.mxu0  ;;  %v6437_v22 = vpop.f32.mrf.mxu1 }
 0xb85   : > { %v6459_v4 = vcombine.low %v6451_v12, %v6458_v31 }
 0xb87   : > { %v6466_v51 = vrot.slane %v6459_v4, %v10625_v59 }
 0xb89   : > { %v6468_v26 = vadd.f32 %v6466_v51, %v6162_v58 }
 0xb9e   : > { %v6697_v54 = vpop.f32.mrf.mxu0  ;;  %v6738_v44 = vpop.f32.mrf.mxu1 }
 0xba0   : > { %v6699_v43 = vpop.f32.mrf.mxu0  ;;  %v6740_v60 = vpop.f32.mrf.mxu1 }
 0xba1   : > { %v6749_v8 = vcombine.low %v6697_v54, %v6699_v43  ;;  %v6750_v42 = vcombine.low %v6738_v44, %v6740_v60 }
 0xba2   : > { %v6701_v40 = vpop.f32.mrf.mxu0  ;;  %v6742_v29 = vpop.f32.mrf.mxu1 }
 0xba3   : > { %v6757_v61 = vrot.slane %v6749_v8, %v10625_v59  ;;  %v6764_v19 = vrot.slane %v6750_v42, %v10625_v59 }
 0xba4   : > { %v6702_v2 = vpop.f32.mrf.mxu0  ;;  %v6743_v6 = vpop.f32.mrf.mxu1 }
 0xba5   : > { %v6765_v63 = vcombine.low %v6757_v61, %v6764_v19 }
 0xba7   : > { %v6772_v13 = vrot.slane %v6765_v63, %v10625_v59 }
 0xba9   : > { %v6774_v9 = vadd.f32 %v6772_v13, %v6468_v26 }
 0xbbe   : > { %v7003_v5 = vpop.f32.mrf.mxu0  ;;  %v7044_v23 = vpop.f32.mrf.mxu1 }
 0xbc0   : > { %v7005_v38 = vpop.f32.mrf.mxu0  ;;  %v7046_v34 = vpop.f32.mrf.mxu1 }
 0xbc1   : > { %v7055_v15 = vcombine.low %v7003_v5, %v7005_v38  ;;  %v7056_v17 = vcombine.low %v7044_v23, %v7046_v34 }
 0xbc2   : > { %v7007_v7 = vpop.f32.mrf.mxu0  ;;  %v7048_v62 = vpop.f32.mrf.mxu1 }
 0xbc3   : > { %v7063_v28 = vrot.slane %v7055_v15, %v10625_v59  ;;  %v7070_v25 = vrot.slane %v7056_v17, %v10625_v59 }
 0xbc4   : > { %v7008_v39 = vpop.f32.mrf.mxu0  ;;  %v7049_v37 = vpop.f32.mrf.mxu1 }
 0xbc5   : > { %v7071_v27 = vcombine.low %v7063_v28, %v7070_v25 }
 0xbc7   : > { %v7078_v33 = vrot.slane %v7071_v27, %v10625_v59 }
 0xbc9   : > { %v7080_v30 = vadd.f32 %v7078_v33, %v6774_v9 }
 0xbcb   : > { %vm7081_vm0 = vcmp.ge.f32.partialorder %v7080_v30, 0.0  ;;  %v7082_v36 = vmul.f32 0.01, %v7080_v30 }
 0xbcd   : > { %v7083_v45 = vsel %vm7081_vm0, %v7080_v30, %v7082_v36 }
 0xbce   : > { %v7085_v53 = vmul.f32 %v7084_v48, %v7083_v45 }
 0xbd0   : > { %v7090_v32 = vrot.slane %v7085_v53, %v10143_v46  ;;  %v7094_v14 = vrot.slane %v7085_v53, %v10149_v49  ;;  %v7098_v18 = vrot.slane %v7085_v53, %v10146_v47  ;;  %v7102_v16 = vrot.slane %v7085_v53, %v10152_v50 }
 0xbd2   : > { %v7108_v24 = vsel %vm7107_vm1, %v7090_v32, 0.0  ;;  %v7109_v35 = vsel %vm7107_vm1, %v7094_v14, 0.0  ;;  %v7111_v59 = vsel %vm7107_vm1, %v7098_v18, 0.0  ;;  %v7113_v41 = vsel %vm7107_vm1, %v7102_v16, 0.0 }
 0xbd3   : > { %v7110_v56 = vadd.f32 %v7109_v35, %v7108_v24 }
 0xbd5   : > { %v7112_v21 = vadd.f32 %v7111_v59, %v7110_v56 }
 0xbd7   : > { %v7114_v58 = vadd.f32 %v7113_v41, %v7112_v21 }
 0xbd9   : > { %7115 = vadd.xlane.f32.xlu0 %v7114_v58 }
 0xc62   : > { %v7116_v55 = vpop.xlane.xlu0 %7115 }
 0xc63   : > { %v7119_v0 = vadd.f32 %v7118_v10, %v7116_v55 }
 0xc65   : > { %7120 = vst [vmem:[%s824_s24] sm:$0x1] %v7119_v0 }
 0xc66 PF: > { %s44_s1 = sadd.s32 1, %s9665_s1  }
 0xc67   : > { %p41_p2 = scmp.ge.s32.totalorder %s44_s1, 4  }
 0xc69   :  { %43 = sbr.rel (!%p41_p2) target bundleno = 30 (0x1e), region = 208 }
 0xc6e   :  { %7138 = vsyncpa [#allocation9], 1 }
 0xc6f   :  { %7140 = vsyncpa [#allocation9 + $0x1], 1 }
 0xc70   :  { %7141 = vsyncpa [#allocation13], 1 }
 0xc71   :  { %7142 = vsyncpa [#allocation16], 1 }
 0xc72   :  { %7143 = vsyncpa [#allocation19], 1 }
 0xc73   :  { %7144 = vsyncpa [#allocation22], 1 }
 0xc74   :  { %7145 = vsyncpa [#allocation25], 1 }
 0xc75   :  { %7146 = vsyncpa [#allocation28], 1 }
 0xc76   :  { %7147 = vsyncpa [#allocation31], 1 }
 0xc77   :  { %7148 = vsyncpa [#allocation10], 1 }
 0xc78   :  { %7150 = vsyncpa [#allocation10 + $0x1], 1 }
 0xc79   :  { %7151 = vsyncmov [#allocation5] }
 0xc7c   :  { %s7152_s6 = vpop.sfrf %7151 }
 0xc7d   :  { %p7981_p3 = scmp.ne.s32.totalorder %s7152_s6, 0 }
 0xc7f   :  { %7156 = shalt.err (%p7981_p3)  }
 0xc80   :  { %7158 = vsyncmov [#allocation5 + $0x1] }
 0xc83   :  { %s7159_s24 = vpop.sfrf %7158 }
 0xc84   :  { %p7982_p0 = scmp.ne.s32.totalorder %s7159_s24, 0 }
 0xc86   :  { %7163 = shalt.err (%p7982_p0)  }
 0xc87   :  { %7165 = vsyncmov [#allocation5 + $0x2] }
 0xc8a   :  { %s7166_s10 = vpop.sfrf %7165 }
 0xc8b   :  { %p7983_p1 = scmp.ne.s32.totalorder %s7166_s10, 0 }
 0xc8d   :  { %7170 = shalt.err (%p7983_p1)  }

</bundles_post_ra>
